<compile_context>
chip_gen: v7x
topology: tpu7x:2x2x1
jax: 0.10.0
libtpu: 0.0.40
codegen_flags: <defaults>
</compile_context>

<pallas_src>
import jax
import jax.numpy as jnp
from jax.experimental import pallas as pl
from jax.experimental.pallas import tpu as pltpu


# ---------------------------------------------------------------------------
# Kernel
# ---------------------------------------------------------------------------
def _make_kernel(tI, acc_into_out):
    """Build the SwiGLU MLP kernel for a given intermediate tile size."""

    def _step(x_ref, gu_ref, dw_ref, acc_ref):
        # x_ref : (tm, H)      original dtype, cast to bf16 here (in-kernel cast
        #                      avoids a separate wrapper-side HBM pass over x)
        # gu_ref: (H, 2*tI)    fused bf16 [gate_tile | up_tile]
        # dw_ref: (tI, H)      bf16 down-proj tile
        # acc_ref: (tm, H)     f32 accumulator (output block or scratch)
        xb = x_ref[...].astype(jnp.bfloat16)
        gu = jnp.dot(xb, gu_ref[...], preferred_element_type=jnp.float32)
        g = gu[:, :tI]
        u = gu[:, tI:]
        # SiLU with exp + approx reciprocal: both land on the EUP slot.
        h = (g * pl.reciprocal(1.0 + jnp.exp(-g), approx=True)) * u
        acc_ref[...] += jnp.dot(
            h.astype(jnp.bfloat16), dw_ref[...], preferred_element_type=jnp.float32
        )

    if acc_into_out:
        # f32 output: the output block is resident across the reduction axis, so
        # accumulate directly into it (saves tm*H*4 bytes of VMEM + final copy).
        def kernel(x_ref, gu_ref, dw_ref, o_ref):
            @pl.when(pl.program_id(1) == 0)
            def _():
                o_ref[...] = jnp.zeros_like(o_ref)

            _step(x_ref, gu_ref, dw_ref, o_ref)

        return kernel

    def kernel(x_ref, gu_ref, dw_ref, o_ref, acc_ref):
        @pl.when(pl.program_id(1) == 0)
        def _():
            acc_ref[...] = jnp.zeros_like(acc_ref)

        _step(x_ref, gu_ref, dw_ref, acc_ref)

        @pl.when(pl.program_id(1) == pl.num_programs(1) - 1)
        def _():
            o_ref[...] = acc_ref[...].astype(o_ref.dtype)

    return kernel


# ---------------------------------------------------------------------------
# Tile / VMEM planning (generation-aware)
# ---------------------------------------------------------------------------
def _round_up(x, m):
    return ((x + m - 1) // m) * m


def _vmem_budget():
    """Return (vmem_limit_bytes, tile_budget_bytes) with headroom for the compiler."""
    phys = 64 * 1024 * 1024  # conservative default: v7x per-TensorCore VMEM
    try:
        info = pltpu.get_tpu_info()
        cap = getattr(info, "vmem_capacity_bytes", None)
        if cap:
            phys = int(cap)
    except Exception:  # not queryable here -> stay conservative
        pass
    # Leave ~16 MiB for compiler-internal scratch; never request the full device.
    limit = min(max(phys - 16 * 1024 * 1024, 32 * 1024 * 1024), 120 * 1024 * 1024)
    budget = max(limit - 4 * 1024 * 1024, 24 * 1024 * 1024)
    return limit, budget


def _working_set(tm, H, tI, x_bytes, out_bytes, use_scratch):
    """Rough VMEM working-set estimate for one grid step (double-buffered DMA)."""
    w = 2 * (H * 2 * tI + tI * H) * 2          # fused gate|up + down bf16 tiles
    xin = 2 * tm * H * x_bytes                 # x tile
    out = 2 * tm * H * out_bytes               # output tile
    acc = tm * H * 4 if use_scratch else 0     # f32 accumulator scratch
    inter = tm * 2 * tI * 4 + 2 * tm * tI * 4  # gu result + SiLU temporaries (f32)
    return w + xin + out + acc + inter


def pick_intermediate_tile(H, I, budget=None):
    """Choose tI: 256-aligned (full MXU passes), >=4 reduction steps, fits VMEM."""
    if budget is None:
        _, budget = _vmem_budget()
    cands = [c for c in range(256, I + 1, 256) if I % c == 0]
    if not cands:
        cands = [c for c in range(128, I + 1, 128) if I % c == 0]
    if not cands:
        cands = [I]
    deep = [c for c in cands if I // c >= 4]   # keep pipeline steady state
    if deep:
        cands = deep
    tI = cands[0]
    for c in cands:                            # ascending -> keep largest that fits
        if _working_set(128, H, c, 4, 4, True) <= budget:
            tI = c
    return tI


def _pick_tm(M, H, tI, budget, x_bytes, out_bytes, use_scratch):
    if M < 128:
        return _round_up(max(M, 8), 8)
    for tm in (512, 256, 128, 64, 32, 16, 8):
        if tm <= M and _working_set(tm, H, tI, x_bytes, out_bytes, use_scratch) <= budget:
            return tm
    # TODO(synk): for very large hidden sizes, tile H as a second reduction axis
    # instead of shrinking tm below a full MXU pass.
    return 8


# ---------------------------------------------------------------------------
# Weight preparation (do ONCE per model, outside the per-call hot path)
# ---------------------------------------------------------------------------
def prepare_weights(gate_w, up_w, down_w, tI):
    """Cast weights to bf16 and fuse gate/up into (H, 2*I) with per-tile layout
    [gate_tile_k | up_tile_k] so each grid step streams a single contiguous block."""
    H, I = gate_w.shape
    assert I % tI == 0, "intermediate tile must divide intermediate_size"
    nk = I // tI
    g = gate_w.astype(jnp.bfloat16).reshape(H, nk, tI)
    u = up_w.astype(jnp.bfloat16).reshape(H, nk, tI)
    gu = jnp.stack([g, u], axis=2).reshape(H, 2 * I)
    dw = down_w.astype(jnp.bfloat16)
    return gu, dw


# ---------------------------------------------------------------------------
# Pallas call wrappers
# ---------------------------------------------------------------------------
def hnet_mlp_prepared(x, gu_w, down_w, *, tI, tm=None):
    """SwiGLU MLP forward with pre-prepared (bf16, fused) weights.

    x: (B, S, H).  gu_w: (H, 2*I) from prepare_weights.  down_w: (I, H) bf16.
    """
    B, S, H = x.shape
    I = down_w.shape[0]
    assert gu_w.shape == (H, 2 * I)
    assert I % tI == 0
    M = B * S

    vmem_limit, budget = _vmem_budget()
    x_bytes = jnp.dtype(x.dtype).itemsize
    out_dtype = x.dtype
    out_bytes = jnp.dtype(out_dtype).itemsize
    acc_into_out = out_dtype == jnp.float32

    if tm is None:
        tm = _pick_tm(M, H, tI, budget, x_bytes, out_bytes, not acc_into_out)

    # Pad rows so the row grid divides evenly (zero rows; sliced off afterwards).
    Mp = _round_up(M, tm)
    x2 = x.reshape(M, H)
    if Mp != M:
        x2 = jnp.pad(x2, ((0, Mp - M), (0, 0)))

    grid = (Mp // tm, I // tI)
    n_row_tiles = Mp // tm

    cost = pl.CostEstimate(
        flops=6 * Mp * H * I,                       # gate+up (fused) + down matmuls
        transcendentals=2 * Mp * I,                 # exp + reciprocal
        bytes_accessed=(n_row_tiles * 3 * H * I * 2)  # weight re-stream per row tile
        + Mp * H * x_bytes                           # x read
        + Mp * H * out_bytes,                        # output write
    )

    kernel = _make_kernel(tI, acc_into_out)
    scratch = () if acc_into_out else (pltpu.VMEM((tm, H), jnp.float32),)

    out = pl.pallas_call(
        kernel,
        out_shape=jax.ShapeDtypeStruct((Mp, H), out_dtype),
        grid_spec=pltpu.PrefetchScalarGridSpec(
            num_scalar_prefetch=0,
            grid=grid,
            in_specs=[
                pl.BlockSpec((tm, H), lambda i, k: (i, 0)),       # x rows (const over k)
                pl.BlockSpec((H, 2 * tI), lambda i, k: (0, k)),   # fused gate|up tile
                pl.BlockSpec((tI, H), lambda i, k: (k, 0)),       # down-proj tile
            ],
            out_specs=pl.BlockSpec((tm, H), lambda i, k: (i, 0)),
            scratch_shapes=scratch,
        ),
        compiler_params=pltpu.CompilerParams(
            dimension_semantics=("parallel", "arbitrary"),
            vmem_limit_bytes=int(vmem_limit),
        ),
        cost_estimate=cost,
    )(x2, gu_w, down_w)

    if Mp != M:
        out = out[:M]
    return out.reshape(B, S, H)


def hnet_mlp(x, gate_w, up_w, down_w):
    """Convenience one-shot wrapper (prep + call). Prefer prepare_weights once +
    hnet_mlp_prepared per step to avoid re-casting weights in the hot path."""
    H, I = gate_w.shape
    tI = pick_intermediate_tile(H, I)
    gu_w, dw = prepare_weights(gate_w, up_w, down_w, tI)
    return hnet_mlp_prepared(x, gu_w, dw, tI=tI)


# ---------------------------------------------------------------------------
# Reference
# ---------------------------------------------------------------------------
def reference_mlp(x, gate_w, up_w, down_w):
    """Pure-JAX reference using the same bf16-weights / f32-accumulation recipe."""
    B, S, H = x.shape
    xb = x.reshape(B * S, H).astype(jnp.bfloat16)
    g = jnp.dot(xb, gate_w.astype(jnp.bfloat16), preferred_element_type=jnp.float32)
    u = jnp.dot(xb, up_w.astype(jnp.bfloat16), preferred_element_type=jnp.float32)
    h = (g * jax.nn.sigmoid(g)) * u
    y = jnp.dot(
        h.astype(jnp.bfloat16),
        down_w.astype(jnp.bfloat16),
        preferred_element_type=jnp.float32,
    )
    return y.reshape(B, S, H).astype(x.dtype)


if __name__ == "__main__":
    # Small shapes consistent with HNetConfig defaults: hidden=768, intermediate=3072.
    B, S, H, I = 2, 8, 768, 3072

    key = jax.random.PRNGKey(0)
    kx, kg, ku, kd = jax.random.split(key, 4)

    x = jax.random.normal(kx, (B, S, H), dtype=jnp.float32)

    # nn.Linear-style uniform(-1/sqrt(fan_in), +1/sqrt(fan_in)) init, stored
    # pre-transposed as (in, out) so the kernel computes plain x @ W.
    gate_w = jax.random.uniform(kg, (H, I), jnp.float32, -1.0, 1.0) / jnp.sqrt(H)
    up_w = jax.random.uniform(ku, (H, I), jnp.float32, -1.0, 1.0) / jnp.sqrt(H)
    down_w = jax.random.uniform(kd, (I, H), jnp.float32, -1.0, 1.0) / jnp.sqrt(I)

    # Prepare weights once (bf16 cast + gate/up fusion) outside the hot path.
    tI = pick_intermediate_tile(H, I)
    gu_w, dw_bf16 = prepare_weights(gate_w, up_w, down_w, tI)
    gu_w, dw_bf16 = jax.block_until_ready((gu_w, dw_bf16))

    y = hnet_mlp_prepared(x, gu_w, dw_bf16, tI=tI)
    y = jax.block_until_ready(y)

    y_ref = reference_mlp(x, gate_w, up_w, down_w)
    assert y.shape == (B, S, H)
    max_err = float(jnp.max(jnp.abs(y - y_ref)))
    assert jnp.allclose(y, y_ref, atol=5e-3, rtol=5e-3), (
        f"mismatch vs reference (max abs err {max_err})"
    )

    print("KERNEL_OK")
</pallas_src>

<mosaic_0001>
module attributes {stable_mosaic.version = 11 : i64} {
  func.func @kernel(%arg0: i32, %arg1: i32, %arg2: memref<16x768xf32, #tpu.memory_space<vmem>>, %arg3: memref<768x1536xbf16, #tpu.memory_space<vmem>>, %arg4: memref<768x768xbf16, #tpu.memory_space<vmem>>, %arg5: memref<16x768xf32, #tpu.memory_space<vmem>>) attributes {dimension_semantics = [#tpu.dimension_semantics<parallel>, #tpu.dimension_semantics<arbitrary>], iteration_bounds = array<i64: 1, 4>, scalar_prefetch = 0 : i64, scratch_operands = 0 : i64, tpu.core_type = #tpu.core_type<tc>, window_params = [{transform_indices = @transform_0, window_bounds = array<i64: 16, 768>}, {transform_indices = @transform_1, window_bounds = array<i64: 768, 1536>}, {transform_indices = @transform_2, window_bounds = array<i64: 768, 768>}, {transform_indices = @transform_3, window_bounds = array<i64: 16, 768>}]} {
    %c0_i32 = arith.constant 0 : i32
    %0 = arith.cmpi eq, %arg1, %c0_i32 : i32
    %1 = arith.extui %0 : i1 to i32
    %c0_i32_0 = arith.constant 0 : i32
    %2 = arith.cmpi ne, %1, %c0_i32_0 : i32
    scf.if %2 {
      %cst_13 = arith.constant 0.000000e+00 : f32
      %23 = vector.broadcast %cst_13 : f32 to vector<16x768xf32>
      %c0_14 = arith.constant 0 : index
      %c0_15 = arith.constant 0 : index
      %24 = vector.load %arg5[%c0_14, %c0_15] : memref<16x768xf32, #tpu.memory_space<vmem>>, vector<16x768xf32>
      tpu.vector_store %arg5[%c0_14, %c0_15], %23 {strides = array<i32>} : memref<16x768xf32, #tpu.memory_space<vmem>>, vector<16x768xf32>,
    } else {
    }
    %c0 = arith.constant 0 : index
    %c0_1 = arith.constant 0 : index
    %3 = vector.load %arg2[%c0, %c0_1] : memref<16x768xf32, #tpu.memory_space<vmem>>, vector<16x768xf32>
    %4 = arith.truncf %3 : vector<16x768xf32> to vector<16x768xbf16>
    %c0_2 = arith.constant 0 : index
    %c0_3 = arith.constant 0 : index
    %5 = vector.load %arg3[%c0_2, %c0_3] : memref<768x1536xbf16, #tpu.memory_space<vmem>>, vector<768x1536xbf16>
    %cst = arith.constant dense<0.000000e+00> : vector<16x1536xf32>
    %6 = tpu.matmul %4, %5, %cst {dimension_numbers = #tpu.dot_dimension_numbers<[1], [0], [0], [1], [0, 0, 1, 1], [], []>} : vector<16x768xbf16>, vector<768x1536xbf16>, vector<16x1536xf32> -> vector<16x1536xf32>
    %7 = vector.extract_strided_slice %6 {offsets = [0, 0], sizes = [16, 768], strides = [1, 1]} : vector<16x1536xf32> to vector<16x768xf32>
    %8 = vector.extract_strided_slice %6 {offsets = [0, 768], sizes = [16, 768], strides = [1, 1]} : vector<16x1536xf32> to vector<16x768xf32>
    %cst_4 = arith.constant 0.000000e+00 : f32
    %9 = vector.broadcast %cst_4 : f32 to vector<16x768xf32>
    %10 = arith.subf %9, %7 : vector<16x768xf32>
    %11 = math.exp %10 : vector<16x768xf32>
    %cst_5 = arith.constant 1.000000e+00 : f32
    %12 = vector.broadcast %cst_5 : f32 to vector<16x768xf32>
    %13 = arith.addf %12, %11 : vector<16x768xf32>
    %14 = tpu.reciprocal %13 {approx = true} : vector<16x768xf32> -> vector<16x768xf32>
    %15 = arith.mulf %7, %14 : vector<16x768xf32>
    %16 = arith.mulf %15, %8 : vector<16x768xf32>
    %c0_6 = arith.constant 0 : index
    %c0_7 = arith.constant 0 : index
    %17 = vector.load %arg5[%c0_6, %c0_7] : memref<16x768xf32, #tpu.memory_space<vmem>>, vector<16x768xf32>
    %18 = arith.truncf %16 : vector<16x768xf32> to vector<16x768xbf16>
    %c0_8 = arith.constant 0 : index
    %c0_9 = arith.constant 0 : index
    %19 = vector.load %arg4[%c0_8, %c0_9] : memref<768x768xbf16, #tpu.memory_space<vmem>>, vector<768x768xbf16>
    %cst_10 = arith.constant dense<0.000000e+00> : vector<16x768xf32>
    %20 = tpu.matmul %18, %19, %cst_10 {dimension_numbers = #tpu.dot_dimension_numbers<[1], [0], [0], [1], [0, 0, 1, 1], [], []>} : vector<16x768xbf16>, vector<768x768xbf16>, vector<16x768xf32> -> vector<16x768xf32>
    %21 = arith.addf %17, %20 : vector<16x768xf32>
    %c0_11 = arith.constant 0 : index
    %c0_12 = arith.constant 0 : index
    %22 = vector.load %arg5[%c0_11, %c0_12] : memref<16x768xf32, #tpu.memory_space<vmem>>, vector<16x768xf32>
    tpu.vector_store %arg5[%c0_11, %c0_12], %21 {strides = array<i32>} : memref<16x768xf32, #tpu.memory_space<vmem>>, vector<16x768xf32>,
    return
  }
  func.func @transform_0(%arg0: i32, %arg1: i32) -> (i32, i32) {
    %c0_i32 = arith.constant 0 : i32
    %c0_i32_0 = arith.constant 0 : i32
    return %arg0, %c0_i32 : i32, i32
  }
  func.func @transform_1(%arg0: i32, %arg1: i32) -> (i32, i32) {
    %c0_i32 = arith.constant 0 : i32
    %c0_i32_0 = arith.constant 0 : i32
    return %c0_i32, %arg1 : i32, i32
  }
  func.func @transform_2(%arg0: i32, %arg1: i32) -> (i32, i32) {
    %c0_i32 = arith.constant 0 : i32
    %c0_i32_0 = arith.constant 0 : i32
    return %arg1, %c0_i32 : i32, i32
  }
  func.func @transform_3(%arg0: i32, %arg1: i32) -> (i32, i32) {
    %c0_i32 = arith.constant 0 : i32
    %c0_i32_0 = arith.constant 0 : i32
    return %arg0, %c0_i32 : i32, i32
  }
}

</mosaic_0001>

<bundles_post_ra>
// kernel: tpu_custom_call.1
= control target key start
LH: loop header
LB: loop body
LE: loop exit
PB: predicated region body
PF: predicated region fallthrough
CT: control target
= control target key end

     0   :  { %8 = vsyncpa [#allocation3], 0  ;;  %s10693_s0 = inlined_call_operand.hbm [shape: f32[16,768], index: 0, kind: input, shape index: {}]   ;;  %s10694_s1 = inlined_call_operand.hbm [shape: bf16[768,6144], index: 1, kind: input, shape index: {}]   ;;  %s10695_s2 = inlined_call_operand.hbm [shape: bf16[3072,768], index: 2, kind: input, shape index: {}]   ;;  %s10696_s3 = inlined_call_operand.hbm [shape: f32[16,768], index: 3, kind: output, shape index: {}]  }
   0x1   :  { %9 = vsyncpa [#allocation6], 0 }
   0x2   :  { %11 = vsyncpa [#allocation6 + $0x1], 0 }
   0x3   :  { %12 = vsyncpa [#allocation4], 0  ;;  %s9465_s12 = smov 0   ;;  %s9467_s13 = smov 0  }
   0x4   :  { %s9469_s14 = smov 0   ;;  %s9471_s15 = smov 0  }
   0x5   :  { %s9473_s16 = smov 0   ;;  %s9475_s17 = smov 0  }
   0x6 LB: > { %s27_s18 = sadd.s32 1, %s9427_s16  ;;  %s63_s19 = sadd.s32 1, %s9419_s14  ;;  %s9431_s17 = sphi %s9475_s17, %s18_s17   ;;  %s9427_s16 = sphi %s9473_s16, %s10720_s16   ;;  %s9423_s15 = sphi %s9471_s15, %s10719_s15   ;;  %s9419_s14 = sphi %s9469_s14, %s10718_s14   ;;  %s9415_s13 = sphi %s9467_s13, %s10717_s13   ;;  %s9411_s12 = sphi %s9465_s12, %s10716_s12  }
   0x7   : > { %p28_p0 = scmp.ge.s32.totalorder %s27_s18, 4  ;;  %p70_p1 = scmp.ne.s32.totalorder %s9419_s14, %s9415_s13 }
   0x8   : > { %p71_p2 = scmp.eq.s32.totalorder %s9431_s17, 0  ;;  %p7852_p5 = scmp.lt.s32.totalorder %s9431_s17, 4 }
   0x9   : > { %s10722_s18 = smov (%p28_p0, %s27_s18), 0  ;;  %s169_s21 = sand.u32 1, %s9431_s17  }
   0xa   : > { %p72_p3 = por %p71_p2, %p70_p1  ;;  %s60_s20 = ssub.s32 %s9427_s16, %s10722_s18 }
   0xb   : > { %p61_p4 = scmp.eq.s32.totalorder %s60_s20, 0  ;;  %s171_s22 = sand.u32 1, %s9419_s14  }
   0xc   : > { %s7823_s24 = smul.u32 4608, %s171_s22  ;;  %p9513_p6 = pnand %p7852_p5, %p72_p3 }
   0xd   : > { %s9508_s23 = scalar_select %p61_p4, %s9419_s14, %s63_s19  }
   0xe   : > { %s7750_s25 = smul.u32 768, %s9427_s16  ;;  %s173_s30 = scalar_lea.vmem [#allocation5], %s7823_s24 }
   0xf   : > { %s10704_s26 = scalar_select %p9513_p6, 1, 0 }
  0x10   : > { %s9520_s29 = scalar_lea.hbm %s10694_s1, %s7750_s25  ;;  %s180_s4 = sshll.u32 %s173_s30, 4  ;;  %s9522_s4 = int_to_ptr.vmem [resolvable:$true] %s180_s4 }
  0x11   : > { %s9524_s5 = scalar_lea.sflag [#allocation6], %s169_s21  ;;  %s9259_s6 = scalar_lea.hbm %s9520_s29, 73728 }
  0x12   : > { %p9260_p7 = scmp.ne.s32.totalorder %s9520_s29, %s9259_s6  ;;  %p10699_p8 = pneg %p9513_p6 }
  0x13   : > { %s9264_s9 = scalar_lea.hbm %s10694_s1, 294912  ;;  %p9265_p11 = scmp.lt.u32.totalorder %s9520_s29, %s10694_s1 }
  0x14   : > { %p9262_p9 = pnand %p10699_p8, %p9260_p7  ;;  %p9266_p12 = scmp.lt.u32.totalorder %s9264_s9, %s9259_s6 }
  0x15   : > { %p9268_p0 = scmp.lt.u32.totalorder %s9259_s6, %s9520_s29 }
  0x16   : > { %p9263_p10 = pneg %p9262_p9  ;;  %p9267_p13 = por %p9266_p12, %p9265_p11 }
  0x18   : > { %p9269_p1 = por %p9268_p0, %p9267_p13 }
  0x1a   : > { %p9270_p2 = pnand %p9269_p1, %p9263_p10 }
  0x1c   : > { %9273 = shalt.err (!%p9270_p2)
}
  0x1d   : > { %s9274_s19 = scalar_lea.vmem %s9522_s4, 73728  ;;  %s9433_s20 = smov [#allocation5]  }
  0x1e   : > { %p9275_p3 = scmp.ne.s32.totalorder %s9522_s4, %s9274_s19  ;;  %s9279_s21 = sshll.u32 %s9433_s20, 4  ;;  %s9280_s21 = int_to_ptr.vmem [resolvable:$false] %s9279_s21 }
  0x1f   : > { %s9281_s24 = scalar_lea.vmem %s9280_s21, 147456  ;;  %p9282_p7 = scmp.lt.s32.totalorder %s9522_s4, %s9280_s21 }
  0x20   : > { %p9277_p4 = pnand %p9275_p3, %p10699_p8  ;;  %p9283_p9 = scmp.lt.s32.totalorder %s9281_s24, %s9274_s19 }
  0x22   : > { %p9278_p5 = pneg %p9277_p4  ;;  %p9284_p11 = por %p9283_p9, %p9282_p7 }
  0x24   : > { %p9285_p12 = pnand %p9284_p11, %p9278_p5 }
  0x26   : > { %9288 = shalt.err (!%p9285_p12)
}
  0x27   : > { %s9434_s25 = smov 3072   ;;  %s10697_s27 = smov 768  }
  0x28   : > { %s9436_s28 = smov 48   ;;  %s9555_s30 = sadd.s32 4294967295, %s9431_s17  }
  0x29   : > { %7847 = dma.hbm_to_vmem [thread:$0]  (!%p9513_p6), %s9520_s29, 73728, %s9522_s4, %s9524_s5, %s9434_s25, %s10697_s27, %s9436_s28  }
  0x2a   : > { %p76_p10 = scmp.ne.s32.totalorder %s9415_s13, %s9411_s12  ;;  %p10698_p13 = scmp.eq.s32.totalorder %s9555_s30, 0 }
  0x2b   : > { %p6874_p0 = scmp.ge.s32.totalorder %s9431_s17, 1  ;;  %p139_p1 = scmp.lt.s32.totalorder %s9431_s17, 5 }
  0x2c   : > { %p9564_p2 = por %p10698_p13, %p76_p10  ;;  %s9437_s29 = smov [#allocation2]  }
  0x2d   : > { %p9568_p3 = pnand %p6874_p0, %p139_p1  ;;  %s155_s4 = sshll.u32 %s9437_s29, 4  ;;  %s156_s4 = int_to_ptr.vmem [resolvable:$true] %s155_s4 }
  0x2e   : > { %s10705_s6 = scalar_select %p9564_p2, 1, 0 }
  0x2f   : > { %s10706_s7 = scalar_select %p9568_p3, 1, 0 }
  0x30   : > { %s7824_s8 = smul.u32 2304, %s171_s22  ;;  %p7840_p4 = pneg %p9568_p3 }
  0x31   : > { %s7853_s12 = smul.u32 36864, %s9427_s16  ;;  %s9289_s25 = scalar_lea.hbm %s10693_s0, 1536 }
  0x32   : > { %p9579_p5 = pnand %p7840_p4, %p10698_p13  ;;  %s194_s10 = scalar_lea.vmem [#allocation7], %s7824_s8 }
  0x33   : > { %s202_s11 = sshll.u32 %s194_s10, 4  ;;  %s9586_s21 = scalar_lea.hbm %s10695_s2, %s7853_s12  ;;  %s9588_s11 = int_to_ptr.vmem [resolvable:$true] %s202_s11 }
  0x34   : > { %p9290_p7 = scmp.ne.s32.totalorder %s10693_s0, %s9289_s25  ;;  %p9291_p9 = pneg %p9579_p5 }
  0x35   : > { %p9296_p10 = scmp.lt.u32.totalorder %s9289_s25, %s10693_s0 }
  0x36   : > { %p9292_p11 = pnand %p9291_p9, %p9290_p7 }
  0x38   : > { %p9293_p12 = pneg %p9292_p11 }
  0x3a   : > { %p9298_p0 = pnand %p9296_p10, %p9293_p12 }
  0x3c   : > { %9301 = shalt.err (!%p9298_p0)
}
  0x3d   : > { %s9302_s12 = scalar_lea.vmem %s156_s4, 1536  ;;  %p9310_p8 = scmp.lt.s32.totalorder %s156_s4, %s156_s4 }
  0x3e   : > { %p9303_p1 = scmp.ne.s32.totalorder %s156_s4, %s9302_s12  ;;  %p9311_p2 = scmp.lt.s32.totalorder %s9302_s12, %s9302_s12 }
  0x40   : > { %p9305_p4 = pnand %p9303_p1, %p9291_p9  ;;  %p9312_p3 = por %p9311_p2, %p9310_p8 }
  0x42   : > { %p9306_p13 = pneg %p9305_p4 }
  0x44   : > { %p9313_p6 = pnand %p9312_p3, %p9306_p13 }
  0x46   : > { %9316 = shalt.err (!%p9313_p6)
}
  0x47   : > { %s10708_s27 = smov 768   ;;  %s9317_s22 = scalar_lea.hbm %s9586_s21, 36864 }
  0x48   : > { %7843 = dma.hbm_to_vmem [thread:$0]  (!%p9579_p5), %s10693_s0, 1536, %s156_s4, [#allocation3], %s10708_s27, %s10708_s27, %s9436_s28  }
  0x49   : > { %p9318_p7 = scmp.ne.s32.totalorder %s9586_s21, %s9317_s22  ;;  %p10709_p9 = scmp.ne.s32.totalorder %s10704_s26, 0 }
  0x4a   : > { %s9322_s25 = scalar_lea.hbm %s10695_s2, 147456  ;;  %p9323_p2 = scmp.lt.u32.totalorder %s9586_s21, %s10695_s2 }
  0x4b   : > { %p10710_p8 = pneg %p10709_p9  ;;  %p9324_p3 = scmp.lt.u32.totalorder %s9322_s25, %s9317_s22 }
  0x4c   : > { %p9326_p12 = scmp.lt.u32.totalorder %s9317_s22, %s9586_s21 }
  0x4d   : > { %p9320_p13 = pnand %p9318_p7, %p10710_p8  ;;  %p9325_p11 = por %p9324_p3, %p9323_p2 }
  0x4f   : > { %p9321_p6 = pneg %p9320_p13  ;;  %p9327_p10 = por %p9326_p12, %p9325_p11 }
  0x51   : > { %p9328_p0 = pnand %p9327_p10, %p9321_p6 }
  0x53   : > { %9331 = shalt.err (!%p9328_p0)
}
  0x54   : > { %s9332_s28 = scalar_lea.vmem %s9588_s11, 36864  ;;  %p10711_p1 = pmov %p10710_p8 }
  0x55   : > { %p9333_p5 = scmp.ne.s32.totalorder %s9588_s11, %s9332_s28  ;;  %s9438_s4 = smov [#allocation7]  }
  0x56   : > { %s9337_s10 = sshll.u32 %s9438_s4, 4  ;;  %s9338_s10 = int_to_ptr.vmem [resolvable:$false] %s9337_s10 }
  0x57   : > { %p9335_p4 = pnand %p9333_p5, %p10711_p1  ;;  %s9339_s12 = scalar_lea.vmem %s9338_s10, 73728 }
  0x58   : > { %p9340_p8 = scmp.lt.s32.totalorder %s9588_s11, %s9338_s10  ;;  %p9341_p13 = scmp.lt.s32.totalorder %s9339_s12, %s9332_s28 }
  0x59   : > { %p9336_p7 = pneg %p9335_p4 }
  0x5a   : > { %p9342_p2 = por %p9341_p13, %p9340_p8 }
  0x5c   : > { %p9343_p3 = pnand %p9342_p2, %p9336_p7 }
  0x5e   : > { %9346 = shalt.err (!%p9343_p3)
}
  0x5f   : > { %s9439_s27 = smov 384   ;;  %s9440_s19 = smov 24  }
  0x60   : > { %7850 = dma.hbm_to_vmem [thread:$0]  (!%p10709_p9), %s9586_s21, 36864, %s9588_s11, %s9524_s5, %s9439_s27, %s9439_s27, %s9440_s19  }
  0x61   : > { %p10712_p6 = scmp.ne.s32.totalorder %s10706_s7, 0 }
  0x62   : > { %p10713_p11 = scmp.eq.s32.totalorder (!%p10712_p6), %s9555_s30, 0 }
  0x63   : > { %214 = sbr.rel (%p10712_p6) target bundleno = 1407 (0x57f), region = 32 }
  0x6a   : > { %9398 = dma.done.wait (%p10713_p11), [#allocation3], 1536   ;;  %p10714_p12 = pmov %p10713_p11 }
  0x6b   : > { %s220_s20 = sand.u32 1, %s9555_s30   ;;  %s222_s22 = sand.u32 1, %s9415_s13  }
  0x6c   : > { %9400 = vsyncadd (%p10714_p12), [#allocation3], 4294965760  ;;  %s7826_s24 = smul.u32 4608, %s222_s22  ;;  %s221_s9 = scalar_lea.sflag [#allocation6], %s220_s20 }
  0x6d   : > { %p10715_p10 = scmp.ne.s32.totalorder %s10705_s6, 0 }
  0x6e   : > { %s9641_s25 = scalar_lea.vmem [#allocation5], %s7826_s24 }
  0x6f   : > { %9402 = dma.done.wait (%p10715_p10), %s221_s9, 110592  }
  0x70   : > { %9404 = vsyncadd (%p10715_p10), %s221_s9, 4294856704  ;;  %s7827_s26 = smul.u32 2304, %s222_s22  ;;  %p6881_p9 = scmp.ne.s32.totalorder %s9423_s15, 0 }
  0x71   : > { %v9441_v0 = vmov (!%p6881_p9), 0.0  }
  0x72   : > { %s9647_s5 = scalar_lea.vmem [#allocation7], %s7827_s26  ;;  %263 = sbr.rel (%p6881_p9) target bundleno = 121 (0x79), region = 48  ;;  %264 = vst [vmem:[#allocation8] sm:$0xff] (!%p6881_p9), %v9441_v0  ;;  %265 = vst [vmem:[#allocation8 + $0x8] sm:$0xff] (!%p6881_p9), %v9441_v0 }
  0x73   : > { %266 = vst [vmem:[#allocation8 + $0x10] sm:$0xff] (!%p6881_p9), %v9441_v0  ;;  %267 = vst [vmem:[#allocation8 + $0x18] sm:$0xff] (!%p6881_p9), %v9441_v0 }
  0x74   : > { %268 = vst [vmem:[#allocation8 + $0x20] sm:$0xff] (!%p6881_p9), %v9441_v0  ;;  %269 = vst [vmem:[#allocation8 + $0x28] sm:$0xff] (!%p6881_p9), %v9441_v0 }
  0x75   : > { %270 = vst [vmem:[#allocation8 + $0x30] sm:$0xff] (!%p6881_p9), %v9441_v0  ;;  %271 = vst [vmem:[#allocation8 + $0x38] sm:$0xff] (!%p6881_p9), %v9441_v0 }
  0x76   : > { %272 = vst [vmem:[#allocation8 + $0x40] sm:$0xff] (!%p6881_p9), %v9441_v0  ;;  %273 = vst [vmem:[#allocation8 + $0x48] sm:$0xff] (!%p6881_p9), %v9441_v0 }
  0x77   : > { %274 = vst [vmem:[#allocation8 + $0x50] sm:$0xff] (!%p6881_p9), %v9441_v0  ;;  %275 = vst [vmem:[#allocation8 + $0x58] sm:$0xff] (!%p6881_p9), %v9441_v0 }
  0x79 PF: > { %v7915_v1 = vld [vmem:[%s9641_s25 + $0x4] ss:$48 sps:$4 sm:$0xff]   ;;  %v7919_v3 = vld [vmem:[%s9641_s25] ss:$48 sps:$4 sm:$0xff]   ;;  %v277_v47 = vld [vmem:[#allocation2 + $0x8] sm:$0xff]  ;;  %s9442_s15 = smov [#allocation8]  }
  0x7a   : > { %v7917_v2 = vld [vmem:[%s9641_s25 + $0x604] ss:$48 sps:$4 sm:$0xff]   ;;  %3750 = vmatprep.subr.bf16.mxu1 %v7915_v1  ;;  %v7920_v4 = vld [vmem:[%s9641_s25 + $0x600] ss:$48 sps:$4 sm:$0xff]   ;;  %v283_v50 = vld [vmem:[#allocation2 + $0x38] sm:$0xff]  ;;  %s6775_s6 = sshll.u32 %s9442_s15, 4  ;;  %s6776_s6 = int_to_ptr.vmem [resolvable:$true] %s6775_s6 }
  0x7b   : > { %3793 = vmatprep.subr.bf16.mxu0 %v7917_v2  ;;  %v7921_v5 = vld [vmem:[%s9641_s25 + $0x64] ss:$48 sps:$4 sm:$0xff]   ;;  %3751 = vmatpush1.bf16.msra.mxu1 %v7919_v3  ;;  %v7925_v7 = vld [vmem:[%s9641_s25 + $0x60] ss:$48 sps:$4 sm:$0xff]   ;;  %v9698_v51 = vpack.c.bf16 %v283_v50, %v277_v47  ;;  %v279_v52 = vld [vmem:[#allocation2 + $0x18] sm:$0xff]  ;;  %p7855_p0 = scmp.eq.s32.totalorder %s9555_s30, 3  ;;  %p9354_p7 = scmp.lt.s32.totalorder %s6776_s6, %s6776_s6 }
  0x7c   : > { %3794 = vmatpush1.bf16.msra.mxu0 %v7920_v4  ;;  %v7923_v6 = vld [vmem:[%s9641_s25 + $0x664] ss:$48 sps:$4 sm:$0xff]   ;;  %3752 = vmatprep.subr.bf16.mxu1 %v7921_v5  ;;  %v7926_v8 = vld [vmem:[%s9641_s25 + $0x660] ss:$48 sps:$4 sm:$0xff]   ;;  %v285_v53 = vld [vmem:[#allocation2 + $0x48] sm:$0xff]  ;;  %s9347_s7 = scalar_lea.vmem %s6776_s6, 1536 }
  0x7d   : > { %3795 = vmatprep.subr.bf16.mxu0 %v7923_v6  ;;  %v7927_v9 = vld [vmem:[%s9641_s25 + $0xc4] ss:$48 sps:$4 sm:$0xff]   ;;  %v7931_v11 = vld [vmem:[%s9641_s25 + $0xc0] ss:$48 sps:$4 sm:$0xff]   ;;  %v9702_v56 = vpack.c.bf16 %v285_v53, %v279_v52  ;;  %3782 = vmatprep.mubr.bf16.mxu1 %v9698_v51  ;;  %v8056_v47 = vld [vmem:[%s9641_s25 + $0x2a8] ss:$48 sps:$4 sm:$0xff]   ;;  %p9348_p5 = scmp.ne.s32.totalorder %s6776_s6, %s9347_s7  ;;  %p9355_p8 = scmp.lt.s32.totalorder %s9347_s7, %s9347_s7 }
  0x7e   : > { %v7929_v10 = vld [vmem:[%s9641_s25 + $0x6c4] ss:$48 sps:$4 sm:$0xff]   ;;  %v7932_v12 = vld [vmem:[%s9641_s25 + $0x6c0] ss:$48 sps:$4 sm:$0xff]   ;;  %v8062_v52 = vld [vmem:[%s9641_s25 + $0x308] ss:$48 sps:$4 sm:$0xff]  }
  0x7f   : > { %3753 = vmatpush1.bf16.msra.mxu1 %v7925_v7  ;;  %v7933_v13 = vld [vmem:[%s9641_s25 + $0x124] ss:$48 sps:$4 sm:$0xff]   ;;  %v7937_v15 = vld [vmem:[%s9641_s25 + $0x120] ss:$48 sps:$4 sm:$0xff]   ;;  %3825 = vmatprep.mubr.bf16.mxu0 %v9702_v56  ;;  %p9349_p1 = pnand %p9348_p5, %p7855_p0  ;;  %p9356_p13 = por %p9355_p8, %p9354_p7 }
  0x80   : > { %3796 = vmatpush1.bf16.msra.mxu0 %v7926_v8  ;;  %3754 = vmatprep.subr.bf16.mxu1 %v7927_v9  ;;  %v7935_v14 = vld [vmem:[%s9641_s25 + $0x724] ss:$48 sps:$4 sm:$0xff]   ;;  %v7938_v16 = vld [vmem:[%s9641_s25 + $0x720] ss:$48 sps:$4 sm:$0xff]  }
  0x81   : > { %3797 = vmatprep.subr.bf16.mxu0 %v7929_v10  ;;  %v7939_v17 = vld [vmem:[%s9641_s25 + $0x184] ss:$48 sps:$4 sm:$0xff]   ;;  %v7943_v19 = vld [vmem:[%s9641_s25 + $0x180] ss:$48 sps:$4 sm:$0xff]   ;;  %p9350_p4 = pneg %p9349_p1 }
  0x82   : > { %v7941_v18 = vld [vmem:[%s9641_s25 + $0x784] ss:$48 sps:$4 sm:$0xff]   ;;  %v7944_v20 = vld [vmem:[%s9641_s25 + $0x780] ss:$48 sps:$4 sm:$0xff]  }
  0x83   : > { %3755 = vmatpush1.bf16.msra.mxu1 %v7931_v11  ;;  %v7945_v21 = vld [vmem:[%s9641_s25 + $0x1e4] ss:$48 sps:$4 sm:$0xff]   ;;  %v7949_v23 = vld [vmem:[%s9641_s25 + $0x1e0] ss:$48 sps:$4 sm:$0xff]   ;;  %p9357_p2 = pnand %p9356_p13, %p9350_p4 }
  0x84   : > { %3798 = vmatpush1.bf16.msra.mxu0 %v7932_v12  ;;  %3756 = vmatprep.subr.bf16.mxu1 %v7933_v13  ;;  %v7947_v22 = vld [vmem:[%s9641_s25 + $0x7e4] ss:$48 sps:$4 sm:$0xff]   ;;  %v7950_v24 = vld [vmem:[%s9641_s25 + $0x7e0] ss:$48 sps:$4 sm:$0xff]   ;;  %v8016_v12 = vld [vmem:[%s9641_s25 + $0xc] ss:$48 sps:$4 sm:$0xff]  }
  0x85   : > { %3799 = vmatprep.subr.bf16.mxu0 %v7935_v14  ;;  %v7951_v25 = vld [vmem:[%s9641_s25 + $0x244] ss:$48 sps:$4 sm:$0xff]   ;;  %v7955_v27 = vld [vmem:[%s9641_s25 + $0x240] ss:$48 sps:$4 sm:$0xff]  }
  0x86   : > { %v7953_v26 = vld [vmem:[%s9641_s25 + $0x844] ss:$48 sps:$4 sm:$0xff]   ;;  %v7956_v28 = vld [vmem:[%s9641_s25 + $0x840] ss:$48 sps:$4 sm:$0xff]  }
  0x87   : > { %3757 = vmatpush1.bf16.msra.mxu1 %v7937_v15  ;;  %v7957_v29 = vld [vmem:[%s9641_s25 + $0x2a4] ss:$48 sps:$4 sm:$0xff]   ;;  %v7961_v31 = vld [vmem:[%s9641_s25 + $0x2a0] ss:$48 sps:$4 sm:$0xff]   ;;  %v8014_v15 = vld [vmem:[%s9641_s25 + $0x8] ss:$48 sps:$4 sm:$0xff]  }
  0x88   : > { %3800 = vmatpush1.bf16.msra.mxu0 %v7938_v16  ;;  %3758 = vmatprep.subr.bf16.mxu1 %v7939_v17  ;;  %v7959_v30 = vld [vmem:[%s9641_s25 + $0x8a4] ss:$48 sps:$4 sm:$0xff]   ;;  %v7962_v32 = vld [vmem:[%s9641_s25 + $0x8a0] ss:$48 sps:$4 sm:$0xff]  }
  0x89   : > { %3801 = vmatprep.subr.bf16.mxu0 %v7941_v18  ;;  %v7963_v33 = vld [vmem:[%s9641_s25 + $0x304] ss:$48 sps:$4 sm:$0xff]   ;;  %v7967_v35 = vld [vmem:[%s9641_s25 + $0x300] ss:$48 sps:$4 sm:$0xff]   ;;  %v8022_v18 = vld [vmem:[%s9641_s25 + $0x6c] ss:$48 sps:$4 sm:$0xff]  }
  0x8a   : > { %v7965_v34 = vld [vmem:[%s9641_s25 + $0x904] ss:$48 sps:$4 sm:$0xff]   ;;  %v7968_v36 = vld [vmem:[%s9641_s25 + $0x900] ss:$48 sps:$4 sm:$0xff]  }
  0x8b   : > { %3759 = vmatpush1.bf16.msra.mxu1 %v7943_v19  ;;  %v7969_v37 = vld [vmem:[%s9641_s25 + $0x364] ss:$48 sps:$4 sm:$0xff]   ;;  %v7973_v39 = vld [vmem:[%s9641_s25 + $0x360] ss:$48 sps:$4 sm:$0xff]  }
  0x8c   : > { %3802 = vmatpush1.bf16.msra.mxu0 %v7944_v20  ;;  %3760 = vmatprep.subr.bf16.mxu1 %v7945_v21  ;;  %v7971_v38 = vld [vmem:[%s9641_s25 + $0x964] ss:$48 sps:$4 sm:$0xff]   ;;  %v7974_v40 = vld [vmem:[%s9641_s25 + $0x960] ss:$48 sps:$4 sm:$0xff]   ;;  %v8020_v20 = vld [vmem:[%s9641_s25 + $0x68] ss:$48 sps:$4 sm:$0xff]  }
  0x8d   : > { %3803 = vmatprep.subr.bf16.mxu0 %v7947_v22  ;;  %v7975_v41 = vld [vmem:[%s9641_s25 + $0x3c4] ss:$48 sps:$4 sm:$0xff]   ;;  %v7979_v43 = vld [vmem:[%s9641_s25 + $0x3c0] ss:$48 sps:$4 sm:$0xff]   ;;  %v8028_v22 = vld [vmem:[%s9641_s25 + $0xcc] ss:$48 sps:$4 sm:$0xff]  }
  0x8e   : > { %v7977_v42 = vld [vmem:[%s9641_s25 + $0x9c4] ss:$48 sps:$4 sm:$0xff]   ;;  %v7980_v44 = vld [vmem:[%s9641_s25 + $0x9c0] ss:$48 sps:$4 sm:$0xff]  }
  0x8f   : > { %3761 = vmatpush1.bf16.msra.mxu1 %v7949_v23  ;;  %v7981_v45 = vld [vmem:[%s9641_s25 + $0x424] ss:$48 sps:$4 sm:$0xff]   ;;  %v7985_v48 = vld [vmem:[%s9641_s25 + $0x420] ss:$48 sps:$4 sm:$0xff]  }
  0x90   : > { %3804 = vmatpush1.bf16.msra.mxu0 %v7950_v24  ;;  %3762 = vmatprep.subr.bf16.mxu1 %v7951_v25  ;;  %v7983_v46 = vld [vmem:[%s9641_s25 + $0xa24] ss:$48 sps:$4 sm:$0xff]   ;;  %v7986_v49 = vld [vmem:[%s9641_s25 + $0xa20] ss:$48 sps:$4 sm:$0xff]   ;;  %v8026_v24 = vld [vmem:[%s9641_s25 + $0xc8] ss:$48 sps:$4 sm:$0xff]  }
  0x91   : > { %3805 = vmatprep.subr.bf16.mxu0 %v7953_v26  ;;  %v7987_v54 = vld [vmem:[%s9641_s25 + $0x484] ss:$48 sps:$4 sm:$0xff]   ;;  %v7991_v57 = vld [vmem:[%s9641_s25 + $0x480] ss:$48 sps:$4 sm:$0xff]   ;;  %v8034_v26 = vld [vmem:[%s9641_s25 + $0x12c] ss:$48 sps:$4 sm:$0xff]  }
  0x92   : > { %v7989_v55 = vld [vmem:[%s9641_s25 + $0xa84] ss:$48 sps:$4 sm:$0xff]   ;;  %v7992_v58 = vld [vmem:[%s9641_s25 + $0xa80] ss:$48 sps:$4 sm:$0xff]  }
  0x93   : > { %3763 = vmatpush1.bf16.msra.mxu1 %v7955_v27  ;;  %v7993_v59 = vld [vmem:[%s9641_s25 + $0x4e4] ss:$48 sps:$4 sm:$0xff]   ;;  %v7997_v61 = vld [vmem:[%s9641_s25 + $0x4e0] ss:$48 sps:$4 sm:$0xff]  }
  0x94   : > { %3806 = vmatpush1.bf16.msra.mxu0 %v7956_v28  ;;  %3764 = vmatprep.subr.bf16.mxu1 %v7957_v29  ;;  %v7995_v60 = vld [vmem:[%s9641_s25 + $0xae4] ss:$48 sps:$4 sm:$0xff]   ;;  %v7998_v62 = vld [vmem:[%s9641_s25 + $0xae0] ss:$48 sps:$4 sm:$0xff]   ;;  %v8032_v28 = vld [vmem:[%s9641_s25 + $0x128] ss:$48 sps:$4 sm:$0xff]  }
  0x95   : > { %3807 = vmatprep.subr.bf16.mxu0 %v7959_v30  ;;  %v7999_v63 = vld [vmem:[%s9641_s25 + $0x544] ss:$48 sps:$4 sm:$0xff]   ;;  %v8003_v1 = vld [vmem:[%s9641_s25 + $0x540] ss:$48 sps:$4 sm:$0xff]   ;;  %v8040_v30 = vld [vmem:[%s9641_s25 + $0x18c] ss:$48 sps:$4 sm:$0xff]  }
  0x96   : > { %v8001_v0 = vld [vmem:[%s9641_s25 + $0xb44] ss:$48 sps:$4 sm:$0xff]   ;;  %v8004_v2 = vld [vmem:[%s9641_s25 + $0xb40] ss:$48 sps:$4 sm:$0xff]  }
  0x97   : > { %3765 = vmatpush1.bf16.msra.mxu1 %v7961_v31  ;;  %v8005_v3 = vld [vmem:[%s9641_s25 + $0x5a4] ss:$48 sps:$4 sm:$0xff]   ;;  %v8009_v5 = vld [vmem:[%s9641_s25 + $0x5a0] ss:$48 sps:$4 sm:$0xff]  }
  0x98   : > { %3808 = vmatpush1.bf16.msra.mxu0 %v7962_v32  ;;  %3766 = vmatprep.subr.bf16.mxu1 %v7963_v33  ;;  %v8007_v4 = vld [vmem:[%s9641_s25 + $0xba4] ss:$48 sps:$4 sm:$0xff]   ;;  %v8010_v6 = vld [vmem:[%s9641_s25 + $0xba0] ss:$48 sps:$4 sm:$0xff]   ;;  %v8038_v32 = vld [vmem:[%s9641_s25 + $0x188] ss:$48 sps:$4 sm:$0xff]  }
  0x99   : > { %3809 = vmatprep.subr.bf16.mxu0 %v7965_v34  ;;  %v276_v7 = vld [vmem:[#allocation2] sm:$0xff]  ;;  %v282_v8 = vld [vmem:[#allocation2 + $0x30] sm:$0xff]  ;;  %v8046_v34 = vld [vmem:[%s9641_s25 + $0x1ec] ss:$48 sps:$4 sm:$0xff]  }
  0x9a   : > { %v8013_v9 = vld [vmem:[%s9641_s25 + $0xc04] ss:$48 sps:$4 sm:$0xff]   ;;  %v9722_v13 = vpack.c.bf16 %v282_v8, %v276_v7  ;;  %v8011_v14 = vld [vmem:[%s9641_s25 + $0xc00] ss:$48 sps:$4 sm:$0xff]   ;;  %v8094_v7 = vld [vmem:[%s9641_s25 + $0x4ec] ss:$48 sps:$4 sm:$0xff]  }
  0x9b   : > { %3767 = vmatpush1.bf16.msra.mxu1 %v7967_v35  ;;  %v278_v10 = vld [vmem:[#allocation2 + $0x10] sm:$0xff]  ;;  %v284_v11 = vld [vmem:[#allocation2 + $0x40] sm:$0xff] }
  0x9c   : > { %3810 = vmatpush1.bf16.msra.mxu0 %v7968_v36  ;;  %3768 = vmatprep.subr.bf16.mxu1 %v7969_v37  ;;  %v9726_v16 = vpack.c.bf16 %v284_v11, %v278_v10  ;;  %v8019_v17 = vld [vmem:[%s9641_s25 + $0xc64] ss:$48 sps:$4 sm:$0xff]   ;;  %v8017_v19 = vld [vmem:[%s9641_s25 + $0xc60] ss:$48 sps:$4 sm:$0xff]   ;;  %v8044_v36 = vld [vmem:[%s9641_s25 + $0x1e8] ss:$48 sps:$4 sm:$0xff]  }
  0x9d   : > { %3811 = vmatprep.subr.bf16.mxu0 %v7971_v38  ;;  %v8025_v21 = vld [vmem:[%s9641_s25 + $0xcc4] ss:$48 sps:$4 sm:$0xff]   ;;  %v8023_v23 = vld [vmem:[%s9641_s25 + $0xcc0] ss:$48 sps:$4 sm:$0xff]   ;;  %v8052_v38 = vld [vmem:[%s9641_s25 + $0x24c] ss:$48 sps:$4 sm:$0xff]  }
  0x9e   : > { %v8031_v25 = vld [vmem:[%s9641_s25 + $0xd24] ss:$48 sps:$4 sm:$0xff]   ;;  %v8029_v27 = vld [vmem:[%s9641_s25 + $0xd20] ss:$48 sps:$4 sm:$0xff]   ;;  %v8100_v11 = vld [vmem:[%s9641_s25 + $0x54c] ss:$48 sps:$4 sm:$0xff]  }
  0x9f   : > { %3769 = vmatpush1.bf16.msra.mxu1 %v7973_v39  ;;  %v8037_v29 = vld [vmem:[%s9641_s25 + $0xd84] ss:$48 sps:$4 sm:$0xff]   ;;  %v8035_v31 = vld [vmem:[%s9641_s25 + $0xd80] ss:$48 sps:$4 sm:$0xff]  }
  0xa0   : > { %3812 = vmatpush1.bf16.msra.mxu0 %v7974_v40  ;;  %3770 = vmatprep.subr.bf16.mxu1 %v7975_v41  ;;  %v8043_v33 = vld [vmem:[%s9641_s25 + $0xde4] ss:$48 sps:$4 sm:$0xff]   ;;  %v8041_v35 = vld [vmem:[%s9641_s25 + $0xde0] ss:$48 sps:$4 sm:$0xff]   ;;  %v8050_v40 = vld [vmem:[%s9641_s25 + $0x248] ss:$48 sps:$4 sm:$0xff]  }
  0xa1   : > { %3813 = vmatprep.subr.bf16.mxu0 %v7977_v42  ;;  %v8049_v37 = vld [vmem:[%s9641_s25 + $0xe44] ss:$48 sps:$4 sm:$0xff]   ;;  %v8047_v39 = vld [vmem:[%s9641_s25 + $0xe40] ss:$48 sps:$4 sm:$0xff]   ;;  %v281_v42 = vld [vmem:[#allocation2 + $0x28] sm:$0xff] }
  0xa2   : > { %v8055_v41 = vld [vmem:[%s9641_s25 + $0xea4] ss:$48 sps:$4 sm:$0xff]   ;;  %v8059_v50 = vld [vmem:[%s9641_s25 + $0xf00] ss:$48 sps:$4 sm:$0xff]  }
  0xa3   : > { %3771 = vmatpush1.bf16.msra.mxu1 %v7979_v43  ;;  %v287_v43 = vld [vmem:[#allocation2 + $0x58] sm:$0xff]  ;;  %v8067_v53 = vld [vmem:[%s9641_s25 + $0xf64] ss:$48 sps:$4 sm:$0xff]   ;;  %v8089_v8 = vld [vmem:[%s9641_s25 + $0x10e0] ss:$48 sps:$4 sm:$0xff]  }
  0xa4   : > { %3814 = vmatpush1.bf16.msra.mxu0 %v7980_v44  ;;  %3772 = vmatprep.subr.bf16.mxu1 %v7981_v45  ;;  %v8058_v44 = vld [vmem:[%s9641_s25 + $0x2ac] ss:$48 sps:$4 sm:$0xff]   ;;  %v9757_v45 = vpack.c.bf16 %v287_v43, %v281_v42  ;;  %v8097_v10 = vld [vmem:[%s9641_s25 + $0x1144] ss:$48 sps:$4 sm:$0xff]   ;;  %v8134_v42 = vld [vmem:[%s9641_s25 + $0x190] ss:$48 sps:$4 sm:$0xff]  }
  0xa5   : > { %3815 = vmatprep.subr.bf16.mxu0 %v7983_v46  ;;  %v8053_v46 = vld [vmem:[%s9641_s25 + $0xea0] ss:$48 sps:$4 sm:$0xff]   ;;  %v8139_v43 = vld [vmem:[%s9641_s25 + $0x7ec] ss:$48 sps:$4 sm:$0xff]  }
  0xa7   : > { %3773 = vmatpush1.bf16.msra.mxu1 %v7985_v48  ;;  %v8061_v48 = vld [vmem:[%s9641_s25 + $0xf04] ss:$48 sps:$4 sm:$0xff]  }
  0xa8   : > { %3816 = vmatpush1.bf16.msra.mxu0 %v7986_v49  ;;  %3774 = vmatprep.subr.bf16.mxu1 %v7987_v54  ;;  %v8064_v49 = vld [vmem:[%s9641_s25 + $0x30c] ss:$48 sps:$4 sm:$0xff]  }
  0xa9   : > { %3817 = vmatprep.subr.bf16.mxu0 %v7989_v55  ;;  %v8070_v54 = vld [vmem:[%s9641_s25 + $0x36c] ss:$48 sps:$4 sm:$0xff]   ;;  %v8065_v55 = vld [vmem:[%s9641_s25 + $0xf60] ss:$48 sps:$4 sm:$0xff]  }
  0xab   : > { %3775 = vmatpush1.bf16.msra.mxu1 %v7991_v57  ;;  %v8068_v57 = vld [vmem:[%s9641_s25 + $0x368] ss:$48 sps:$4 sm:$0xff]  }
  0xac   : > { %3818 = vmatpush1.bf16.msra.mxu0 %v7992_v58  ;;  %3776 = vmatprep.subr.bf16.mxu1 %v7993_v59  ;;  %v8073_v58 = vld [vmem:[%s9641_s25 + $0xfc4] ss:$48 sps:$4 sm:$0xff]   ;;  %v8076_v59 = vld [vmem:[%s9641_s25 + $0x3cc] ss:$48 sps:$4 sm:$0xff]  }
  0xad   : > { %3819 = vmatprep.subr.bf16.mxu0 %v7995_v60  ;;  %v8071_v60 = vld [vmem:[%s9641_s25 + $0xfc0] ss:$48 sps:$4 sm:$0xff]  }
  0xaf   : > { %3777 = vmatpush1.bf16.msra.mxu1 %v7997_v61  ;;  %v8074_v61 = vld [vmem:[%s9641_s25 + $0x3c8] ss:$48 sps:$4 sm:$0xff]  }
  0xb0   : > { %3820 = vmatpush1.bf16.msra.mxu0 %v7998_v62  ;;  %3778 = vmatprep.subr.bf16.mxu1 %v7999_v63  ;;  %v8079_v62 = vld [vmem:[%s9641_s25 + $0x1024] ss:$48 sps:$4 sm:$0xff]   ;;  %v8082_v63 = vld [vmem:[%s9641_s25 + $0x42c] ss:$48 sps:$4 sm:$0xff]  }
  0xb1   : > { %3821 = vmatprep.subr.bf16.mxu0 %v8001_v0  ;;  %v8077_v0 = vld [vmem:[%s9641_s25 + $0x1020] ss:$48 sps:$4 sm:$0xff]  }
  0xb3   : > { %3779 = vmatpush1.bf16.msra.mxu1 %v8003_v1  ;;  %v8080_v1 = vld [vmem:[%s9641_s25 + $0x428] ss:$48 sps:$4 sm:$0xff]  }
  0xb4   : > { %3822 = vmatpush1.bf16.msra.mxu0 %v8004_v2  ;;  %3780 = vmatprep.subr.bf16.mxu1 %v8005_v3  ;;  %v8085_v2 = vld [vmem:[%s9641_s25 + $0x1084] ss:$48 sps:$4 sm:$0xff]   ;;  %v8088_v3 = vld [vmem:[%s9641_s25 + $0x48c] ss:$48 sps:$4 sm:$0xff]  }
  0xb5   : > { %3823 = vmatprep.subr.bf16.mxu0 %v8007_v4  ;;  %v8083_v4 = vld [vmem:[%s9641_s25 + $0x1080] ss:$48 sps:$4 sm:$0xff]  }
  0xb7   : > { %3781 = vmatpush1.bf16.msra.mxu1 %v8009_v5  ;;  %v8086_v5 = vld [vmem:[%s9641_s25 + $0x488] ss:$48 sps:$4 sm:$0xff]  }
  0xb8   : > { %3824 = vmatpush1.bf16.msra.mxu0 %v8010_v6  ;;  %3879 = vmatprep.subr.bf16.mxu1 %v8016_v12  ;;  %v8091_v6 = vld [vmem:[%s9641_s25 + $0x10e4] ss:$48 sps:$4 sm:$0xff]   ;;  %v8095_v12 = vld [vmem:[%s9641_s25 + $0x1140] ss:$48 sps:$4 sm:$0xff]  }
  0xb9   : > { %3836 = vmatprep.subr.bf16.mxu0 %v8013_v9  ;;  %v8092_v9 = vld [vmem:[%s9641_s25 + $0x4e8] ss:$48 sps:$4 sm:$0xff]  }
  0xba   : > { %3783 = vmatmul.mubr.bf16.vlgmr.msra.gmra.mrb[0].mxu1 %v9722_v13 }
  0xbb   : > { %3826 = vmatmul.mubr.bf16.vlgmr.msra.gmra.mrb[0].mxu0 %v9726_v16  ;;  %3880 = vmatpush1.bf16.msra.mxu1 %v8014_v15  ;;  %v8103_v15 = vld [vmem:[%s9641_s25 + $0x11a4] ss:$48 sps:$4 sm:$0xff]  }
  0xbc   : > { %3837 = vmatpush1.bf16.msra.mxu0 %v8011_v14  ;;  %3881 = vmatprep.subr.bf16.mxu1 %v8022_v18  ;;  %v8098_v14 = vld [vmem:[%s9641_s25 + $0x548] ss:$48 sps:$4 sm:$0xff]   ;;  %v8101_v18 = vld [vmem:[%s9641_s25 + $0x11a0] ss:$48 sps:$4 sm:$0xff]  }
  0xbd   : > { %3838 = vmatprep.subr.bf16.mxu0 %v8019_v17  ;;  %3911 = vmatprep.mubr.bf16.mxu1 %v9698_v51  ;;  %v8106_v17 = vld [vmem:[%s9641_s25 + $0x5ac] ss:$48 sps:$4 sm:$0xff]  }
  0xbe   : > { %3868 = vmatprep.mubr.bf16.mxu0 %v9757_v45 }
  0xbf   : > { %3882 = vmatpush1.bf16.msra.mxu1 %v8020_v20  ;;  %v280_v20 = vld [vmem:[#allocation2 + $0x20] sm:$0xff] }
  0xc0   : > { %3839 = vmatpush1.bf16.msra.mxu0 %v8017_v19  ;;  %3883 = vmatprep.subr.bf16.mxu1 %v8028_v22  ;;  %v8104_v19 = vld [vmem:[%s9641_s25 + $0x5a8] ss:$48 sps:$4 sm:$0xff]   ;;  %v8109_v22 = vld [vmem:[%s9641_s25 + $0x60c] ss:$48 sps:$4 sm:$0xff]  }
  0xc1   : > { %3840 = vmatprep.subr.bf16.mxu0 %v8025_v21  ;;  %v286_v21 = vld [vmem:[#allocation2 + $0x50] sm:$0xff] }
  0xc3   : > { %3884 = vmatpush1.bf16.msra.mxu1 %v8026_v24  ;;  %v9796_v24 = vpack.c.bf16 %v286_v21, %v280_v20  ;;  %v8193_v20 = vld [vmem:[%s9641_s25 + $0xb4c] ss:$48 sps:$4 sm:$0xff]   ;;  %v8196_v21 = vld [vmem:[%s9641_s25 + $0x554] ss:$48 sps:$4 sm:$0xff]  }
  0xc4   : > { %3841 = vmatpush1.bf16.msra.mxu0 %v8023_v23  ;;  %3885 = vmatprep.subr.bf16.mxu1 %v8034_v26  ;;  %v8112_v23 = vld [vmem:[%s9641_s25 + $0x14] ss:$48 sps:$4 sm:$0xff]   ;;  %v8110_v26 = vld [vmem:[%s9641_s25 + $0x10] ss:$48 sps:$4 sm:$0xff]  }
  0xc5   : > { %3842 = vmatprep.subr.bf16.mxu0 %v8031_v25  ;;  %v8107_v25 = vld [vmem:[%s9641_s25 + $0x608] ss:$48 sps:$4 sm:$0xff]  }
  0xc7   : > { %3886 = vmatpush1.bf16.msra.mxu1 %v8032_v28  ;;  %v8118_v28 = vld [vmem:[%s9641_s25 + $0x74] ss:$48 sps:$4 sm:$0xff]  }
  0xc8   : > { %3843 = vmatpush1.bf16.msra.mxu0 %v8029_v27  ;;  %3887 = vmatprep.subr.bf16.mxu1 %v8040_v30  ;;  %v8115_v27 = vld [vmem:[%s9641_s25 + $0x66c] ss:$48 sps:$4 sm:$0xff]   ;;  %v8116_v30 = vld [vmem:[%s9641_s25 + $0x70] ss:$48 sps:$4 sm:$0xff]  }
  0xc9   : > { %3844 = vmatprep.subr.bf16.mxu0 %v8037_v29  ;;  %v8113_v29 = vld [vmem:[%s9641_s25 + $0x668] ss:$48 sps:$4 sm:$0xff]  }
  0xcb   : > { %3888 = vmatpush1.bf16.msra.mxu1 %v8038_v32  ;;  %v8124_v32 = vld [vmem:[%s9641_s25 + $0xd4] ss:$48 sps:$4 sm:$0xff]  }
  0xcc   : > { %3845 = vmatpush1.bf16.msra.mxu0 %v8035_v31  ;;  %3889 = vmatprep.subr.bf16.mxu1 %v8046_v34  ;;  %v8121_v31 = vld [vmem:[%s9641_s25 + $0x6cc] ss:$48 sps:$4 sm:$0xff]   ;;  %v8122_v34 = vld [vmem:[%s9641_s25 + $0xd0] ss:$48 sps:$4 sm:$0xff]  }
  0xcd   : > { %3846 = vmatprep.subr.bf16.mxu0 %v8043_v33  ;;  %v8119_v33 = vld [vmem:[%s9641_s25 + $0x6c8] ss:$48 sps:$4 sm:$0xff]  }
  0xcf   : > { %3890 = vmatpush1.bf16.msra.mxu1 %v8044_v36  ;;  %v8130_v36 = vld [vmem:[%s9641_s25 + $0x134] ss:$48 sps:$4 sm:$0xff]  }
  0xd0   : > { %3847 = vmatpush1.bf16.msra.mxu0 %v8041_v35  ;;  %3891 = vmatprep.subr.bf16.mxu1 %v8052_v38  ;;  %v8127_v35 = vld [vmem:[%s9641_s25 + $0x72c] ss:$48 sps:$4 sm:$0xff]   ;;  %v8128_v38 = vld [vmem:[%s9641_s25 + $0x130] ss:$48 sps:$4 sm:$0xff]  }
  0xd1   : > { %3848 = vmatprep.subr.bf16.mxu0 %v8049_v37  ;;  %v8125_v37 = vld [vmem:[%s9641_s25 + $0x728] ss:$48 sps:$4 sm:$0xff]  }
  0xd3   : > { %3892 = vmatpush1.bf16.msra.mxu1 %v8050_v40  ;;  %v8136_v40 = vld [vmem:[%s9641_s25 + $0x194] ss:$48 sps:$4 sm:$0xff]  }
  0xd4   : > { %3849 = vmatpush1.bf16.msra.mxu0 %v8047_v39  ;;  %3893 = vmatprep.subr.bf16.mxu1 %v8058_v44  ;;  %v8133_v39 = vld [vmem:[%s9641_s25 + $0x78c] ss:$48 sps:$4 sm:$0xff]   ;;  %v8142_v44 = vld [vmem:[%s9641_s25 + $0x1f4] ss:$48 sps:$4 sm:$0xff]  }
  0xd5   : > { %3850 = vmatprep.subr.bf16.mxu0 %v8055_v41  ;;  %v8131_v41 = vld [vmem:[%s9641_s25 + $0x788] ss:$48 sps:$4 sm:$0xff]  }
  0xd7   : > { %3894 = vmatpush1.bf16.msra.mxu1 %v8056_v47  ;;  %v8140_v47 = vld [vmem:[%s9641_s25 + $0x1f0] ss:$48 sps:$4 sm:$0xff]  }
  0xd8   : > { %3851 = vmatpush1.bf16.msra.mxu0 %v8053_v46  ;;  %3895 = vmatprep.subr.bf16.mxu1 %v8064_v49  ;;  %v8137_v46 = vld [vmem:[%s9641_s25 + $0x7e8] ss:$48 sps:$4 sm:$0xff]   ;;  %v8148_v49 = vld [vmem:[%s9641_s25 + $0x254] ss:$48 sps:$4 sm:$0xff]  }
  0xd9   : > { %3852 = vmatprep.subr.bf16.mxu0 %v8061_v48  ;;  %v8145_v48 = vld [vmem:[%s9641_s25 + $0x84c] ss:$48 sps:$4 sm:$0xff]  }
  0xdb   : > { %3896 = vmatpush1.bf16.msra.mxu1 %v8062_v52  ;;  %v8146_v52 = vld [vmem:[%s9641_s25 + $0x250] ss:$48 sps:$4 sm:$0xff]  }
  0xdc   : > { %3853 = vmatpush1.bf16.msra.mxu0 %v8059_v50  ;;  %3897 = vmatprep.subr.bf16.mxu1 %v8070_v54  ;;  %v8143_v50 = vld [vmem:[%s9641_s25 + $0x848] ss:$48 sps:$4 sm:$0xff]   ;;  %v8154_v54 = vld [vmem:[%s9641_s25 + $0x2b4] ss:$48 sps:$4 sm:$0xff]  }
  0xdd   : > { %3854 = vmatprep.subr.bf16.mxu0 %v8067_v53  ;;  %v8151_v53 = vld [vmem:[%s9641_s25 + $0x8ac] ss:$48 sps:$4 sm:$0xff]  }
  0xdf   : > { %3898 = vmatpush1.bf16.msra.mxu1 %v8068_v57  ;;  %v8152_v57 = vld [vmem:[%s9641_s25 + $0x2b0] ss:$48 sps:$4 sm:$0xff]  }
  0xe0   : > { %3855 = vmatpush1.bf16.msra.mxu0 %v8065_v55  ;;  %3899 = vmatprep.subr.bf16.mxu1 %v8076_v59  ;;  %v8149_v55 = vld [vmem:[%s9641_s25 + $0x8a8] ss:$48 sps:$4 sm:$0xff]   ;;  %v8160_v59 = vld [vmem:[%s9641_s25 + $0x314] ss:$48 sps:$4 sm:$0xff]  }
  0xe1   : > { %3856 = vmatprep.subr.bf16.mxu0 %v8073_v58  ;;  %v8157_v58 = vld [vmem:[%s9641_s25 + $0x90c] ss:$48 sps:$4 sm:$0xff]  }
  0xe3   : > { %3900 = vmatpush1.bf16.msra.mxu1 %v8074_v61  ;;  %v8158_v61 = vld [vmem:[%s9641_s25 + $0x310] ss:$48 sps:$4 sm:$0xff]  }
  0xe4   : > { %3857 = vmatpush1.bf16.msra.mxu0 %v8071_v60  ;;  %3901 = vmatprep.subr.bf16.mxu1 %v8082_v63  ;;  %v8155_v60 = vld [vmem:[%s9641_s25 + $0x908] ss:$48 sps:$4 sm:$0xff]   ;;  %v8166_v63 = vld [vmem:[%s9641_s25 + $0x374] ss:$48 sps:$4 sm:$0xff]  }
  0xe5   : > { %3858 = vmatprep.subr.bf16.mxu0 %v8079_v62  ;;  %v8163_v62 = vld [vmem:[%s9641_s25 + $0x96c] ss:$48 sps:$4 sm:$0xff]  }
  0xe7   : > { %3902 = vmatpush1.bf16.msra.mxu1 %v8080_v1  ;;  %v8164_v1 = vld [vmem:[%s9641_s25 + $0x370] ss:$48 sps:$4 sm:$0xff]  }
  0xe8   : > { %3859 = vmatpush1.bf16.msra.mxu0 %v8077_v0  ;;  %3903 = vmatprep.subr.bf16.mxu1 %v8088_v3  ;;  %v8161_v0 = vld [vmem:[%s9641_s25 + $0x968] ss:$48 sps:$4 sm:$0xff]   ;;  %v8172_v3 = vld [vmem:[%s9641_s25 + $0x3d4] ss:$48 sps:$4 sm:$0xff]  }
  0xe9   : > { %3860 = vmatprep.subr.bf16.mxu0 %v8085_v2  ;;  %v8169_v2 = vld [vmem:[%s9641_s25 + $0x9cc] ss:$48 sps:$4 sm:$0xff]  }
  0xeb   : > { %3904 = vmatpush1.bf16.msra.mxu1 %v8086_v5  ;;  %v8170_v5 = vld [vmem:[%s9641_s25 + $0x3d0] ss:$48 sps:$4 sm:$0xff]  }
  0xec   : > { %3861 = vmatpush1.bf16.msra.mxu0 %v8083_v4  ;;  %3905 = vmatprep.subr.bf16.mxu1 %v8094_v7  ;;  %v8167_v4 = vld [vmem:[%s9641_s25 + $0x9c8] ss:$48 sps:$4 sm:$0xff]   ;;  %v8178_v7 = vld [vmem:[%s9641_s25 + $0x434] ss:$48 sps:$4 sm:$0xff]  }
  0xed   : > { %3862 = vmatprep.subr.bf16.mxu0 %v8091_v6  ;;  %v8175_v6 = vld [vmem:[%s9641_s25 + $0xa2c] ss:$48 sps:$4 sm:$0xff]  }
  0xef   : > { %3906 = vmatpush1.bf16.msra.mxu1 %v8092_v9  ;;  %v8176_v9 = vld [vmem:[%s9641_s25 + $0x430] ss:$48 sps:$4 sm:$0xff]  }
  0xf0   : > { %3863 = vmatpush1.bf16.msra.mxu0 %v8089_v8  ;;  %3907 = vmatprep.subr.bf16.mxu1 %v8100_v11  ;;  %v8173_v8 = vld [vmem:[%s9641_s25 + $0xa28] ss:$48 sps:$4 sm:$0xff]   ;;  %v8184_v11 = vld [vmem:[%s9641_s25 + $0x494] ss:$48 sps:$4 sm:$0xff]  }
  0xf1   : > { %3864 = vmatprep.subr.bf16.mxu0 %v8097_v10  ;;  %v8181_v10 = vld [vmem:[%s9641_s25 + $0xa8c] ss:$48 sps:$4 sm:$0xff]  }
  0xf3   : > { %3908 = vmatpush1.bf16.msra.mxu1 %v8098_v14  ;;  %v8182_v14 = vld [vmem:[%s9641_s25 + $0x490] ss:$48 sps:$4 sm:$0xff]  }
  0xf4   : > { %3865 = vmatpush1.bf16.msra.mxu0 %v8095_v12  ;;  %3909 = vmatprep.subr.bf16.mxu1 %v8106_v17  ;;  %v8179_v12 = vld [vmem:[%s9641_s25 + $0xa88] ss:$48 sps:$4 sm:$0xff]   ;;  %v8190_v17 = vld [vmem:[%s9641_s25 + $0x4f4] ss:$48 sps:$4 sm:$0xff]  }
  0xf5   : > { %3866 = vmatprep.subr.bf16.mxu0 %v8103_v15  ;;  %v8187_v15 = vld [vmem:[%s9641_s25 + $0xaec] ss:$48 sps:$4 sm:$0xff]  }
  0xf7   : > { %3910 = vmatpush1.bf16.msra.mxu1 %v8104_v19  ;;  %v8188_v19 = vld [vmem:[%s9641_s25 + $0x4f0] ss:$48 sps:$4 sm:$0xff]  }
  0xf8   : > { %3867 = vmatpush1.bf16.msra.mxu0 %v8101_v18  ;;  %3922 = vmatprep.subr.bf16.mxu1 %v8109_v22  ;;  %v8185_v18 = vld [vmem:[%s9641_s25 + $0xae8] ss:$48 sps:$4 sm:$0xff]  }
  0xf9   : > { %4008 = vmatprep.subr.bf16.mxu0 %v8112_v23  ;;  %v8191_v22 = vld [vmem:[%s9641_s25 + $0xb48] ss:$48 sps:$4 sm:$0xff]   ;;  %v8194_v23 = vld [vmem:[%s9641_s25 + $0x550] ss:$48 sps:$4 sm:$0xff]  }
  0xfa   : > { %3912 = vmatmul.mubr.bf16.vlgmr.msra.gmra.mrb[4].mxu1 %v9722_v13 }
  0xfb   : > { %3869 = vmatmul.mubr.bf16.vlgmr.msra.gmra.mrb[0].mxu0 %v9796_v24  ;;  %3923 = vmatpush1.bf16.msra.mxu1 %v8107_v25  ;;  %v8199_v25 = vld [vmem:[%s9641_s25 + $0xbac] ss:$48 sps:$4 sm:$0xff]  }
  0xfc   : > { %4009 = vmatpush1.bf16.msra.mxu0 %v8110_v26  ;;  %3924 = vmatprep.subr.bf16.mxu1 %v8115_v27  ;;  %v8202_v26 = vld [vmem:[%s9641_s25 + $0x5b4] ss:$48 sps:$4 sm:$0xff]   ;;  %v8197_v27 = vld [vmem:[%s9641_s25 + $0xba8] ss:$48 sps:$4 sm:$0xff]  }
  0xfd   : > { %4010 = vmatprep.subr.bf16.mxu0 %v8118_v28  ;;  %3954 = vmatprep.mubr.bf16.mxu1 %v9702_v56  ;;  %v8200_v28 = vld [vmem:[%s9641_s25 + $0x5b0] ss:$48 sps:$4 sm:$0xff]  }
  0xfe   : > { %4040 = vmatprep.mubr.bf16.mxu0 %v9698_v51 }
  0xff   : > { %3925 = vmatpush1.bf16.msra.mxu1 %v8113_v29  ;;  %v8205_v29 = vld [vmem:[%s9641_s25 + $0xc0c] ss:$48 sps:$4 sm:$0xff]  }
 0x100   : > { %4011 = vmatpush1.bf16.msra.mxu0 %v8116_v30  ;;  %3926 = vmatprep.subr.bf16.mxu1 %v8121_v31  ;;  %v8208_v30 = vld [vmem:[%s9641_s25 + $0x614] ss:$48 sps:$4 sm:$0xff]   ;;  %v8203_v31 = vld [vmem:[%s9641_s25 + $0xc08] ss:$48 sps:$4 sm:$0xff]  }
 0x101   : > { %4012 = vmatprep.subr.bf16.mxu0 %v8124_v32  ;;  %v8206_v32 = vld [vmem:[%s9641_s25 + $0x610] ss:$48 sps:$4 sm:$0xff]  }
 0x103   : > { %3927 = vmatpush1.bf16.msra.mxu1 %v8119_v33  ;;  %v8211_v33 = vld [vmem:[%s9641_s25 + $0xc6c] ss:$48 sps:$4 sm:$0xff]  }
 0x104   : > { %4013 = vmatpush1.bf16.msra.mxu0 %v8122_v34  ;;  %3928 = vmatprep.subr.bf16.mxu1 %v8127_v35  ;;  %v8214_v34 = vld [vmem:[%s9641_s25 + $0x674] ss:$48 sps:$4 sm:$0xff]   ;;  %v8209_v35 = vld [vmem:[%s9641_s25 + $0xc68] ss:$48 sps:$4 sm:$0xff]  }
 0x105   : > { %4014 = vmatprep.subr.bf16.mxu0 %v8130_v36  ;;  %v8212_v36 = vld [vmem:[%s9641_s25 + $0x670] ss:$48 sps:$4 sm:$0xff]  }
 0x107   : > { %3929 = vmatpush1.bf16.msra.mxu1 %v8125_v37  ;;  %v8217_v37 = vld [vmem:[%s9641_s25 + $0xccc] ss:$48 sps:$4 sm:$0xff]  }
 0x108   : > { %4015 = vmatpush1.bf16.msra.mxu0 %v8128_v38  ;;  %3930 = vmatprep.subr.bf16.mxu1 %v8133_v39  ;;  %v8220_v38 = vld [vmem:[%s9641_s25 + $0x6d4] ss:$48 sps:$4 sm:$0xff]   ;;  %v8215_v39 = vld [vmem:[%s9641_s25 + $0xcc8] ss:$48 sps:$4 sm:$0xff]  }
 0x109   : > { %4016 = vmatprep.subr.bf16.mxu0 %v8136_v40  ;;  %v8218_v40 = vld [vmem:[%s9641_s25 + $0x6d0] ss:$48 sps:$4 sm:$0xff]  }
 0x10b   : > { %3931 = vmatpush1.bf16.msra.mxu1 %v8131_v41  ;;  %v8223_v41 = vld [vmem:[%s9641_s25 + $0xd2c] ss:$48 sps:$4 sm:$0xff]  }
 0x10c   : > { %4017 = vmatpush1.bf16.msra.mxu0 %v8134_v42  ;;  %3932 = vmatprep.subr.bf16.mxu1 %v8139_v43  ;;  %v8226_v42 = vld [vmem:[%s9641_s25 + $0x734] ss:$48 sps:$4 sm:$0xff]   ;;  %v8221_v43 = vld [vmem:[%s9641_s25 + $0xd28] ss:$48 sps:$4 sm:$0xff]  }
 0x10d   : > { %4018 = vmatprep.subr.bf16.mxu0 %v8142_v44  ;;  %v8224_v44 = vld [vmem:[%s9641_s25 + $0x730] ss:$48 sps:$4 sm:$0xff]  }
 0x10f   : > { %3933 = vmatpush1.bf16.msra.mxu1 %v8137_v46  ;;  %v8229_v46 = vld [vmem:[%s9641_s25 + $0xd8c] ss:$48 sps:$4 sm:$0xff]  }
 0x110   : > { %4019 = vmatpush1.bf16.msra.mxu0 %v8140_v47  ;;  %3934 = vmatprep.subr.bf16.mxu1 %v8145_v48  ;;  %v8232_v47 = vld [vmem:[%s9641_s25 + $0x794] ss:$48 sps:$4 sm:$0xff]   ;;  %v8227_v48 = vld [vmem:[%s9641_s25 + $0xd88] ss:$48 sps:$4 sm:$0xff]  }
 0x111   : > { %4020 = vmatprep.subr.bf16.mxu0 %v8148_v49  ;;  %v8230_v49 = vld [vmem:[%s9641_s25 + $0x790] ss:$48 sps:$4 sm:$0xff]  }
 0x113   : > { %3935 = vmatpush1.bf16.msra.mxu1 %v8143_v50  ;;  %v8235_v50 = vld [vmem:[%s9641_s25 + $0xdec] ss:$48 sps:$4 sm:$0xff]  }
 0x114   : > { %4021 = vmatpush1.bf16.msra.mxu0 %v8146_v52  ;;  %3936 = vmatprep.subr.bf16.mxu1 %v8151_v53  ;;  %v8238_v52 = vld [vmem:[%s9641_s25 + $0x7f4] ss:$48 sps:$4 sm:$0xff]   ;;  %v8233_v53 = vld [vmem:[%s9641_s25 + $0xde8] ss:$48 sps:$4 sm:$0xff]  }
 0x115   : > { %4022 = vmatprep.subr.bf16.mxu0 %v8154_v54  ;;  %v8236_v54 = vld [vmem:[%s9641_s25 + $0x7f0] ss:$48 sps:$4 sm:$0xff]  }
 0x117   : > { %3937 = vmatpush1.bf16.msra.mxu1 %v8149_v55  ;;  %v8241_v55 = vld [vmem:[%s9641_s25 + $0xe4c] ss:$48 sps:$4 sm:$0xff]  }
 0x118   : > { %4023 = vmatpush1.bf16.msra.mxu0 %v8152_v57  ;;  %3938 = vmatprep.subr.bf16.mxu1 %v8157_v58  ;;  %v8244_v57 = vld [vmem:[%s9641_s25 + $0x854] ss:$48 sps:$4 sm:$0xff]   ;;  %v8239_v58 = vld [vmem:[%s9641_s25 + $0xe48] ss:$48 sps:$4 sm:$0xff]  }
 0x119   : > { %4024 = vmatprep.subr.bf16.mxu0 %v8160_v59  ;;  %v8242_v59 = vld [vmem:[%s9641_s25 + $0x850] ss:$48 sps:$4 sm:$0xff]  }
 0x11b   : > { %3939 = vmatpush1.bf16.msra.mxu1 %v8155_v60  ;;  %v8247_v60 = vld [vmem:[%s9641_s25 + $0xeac] ss:$48 sps:$4 sm:$0xff]  }
 0x11c   : > { %4025 = vmatpush1.bf16.msra.mxu0 %v8158_v61  ;;  %3940 = vmatprep.subr.bf16.mxu1 %v8163_v62  ;;  %v8250_v61 = vld [vmem:[%s9641_s25 + $0x8b4] ss:$48 sps:$4 sm:$0xff]   ;;  %v8245_v62 = vld [vmem:[%s9641_s25 + $0xea8] ss:$48 sps:$4 sm:$0xff]  }
 0x11d   : > { %4026 = vmatprep.subr.bf16.mxu0 %v8166_v63  ;;  %v8248_v63 = vld [vmem:[%s9641_s25 + $0x8b0] ss:$48 sps:$4 sm:$0xff]  }
 0x11f   : > { %3941 = vmatpush1.bf16.msra.mxu1 %v8161_v0  ;;  %v8253_v0 = vld [vmem:[%s9641_s25 + $0xf0c] ss:$48 sps:$4 sm:$0xff]  }
 0x120   : > { %4027 = vmatpush1.bf16.msra.mxu0 %v8164_v1  ;;  %3942 = vmatprep.subr.bf16.mxu1 %v8169_v2  ;;  %v8256_v1 = vld [vmem:[%s9641_s25 + $0x914] ss:$48 sps:$4 sm:$0xff]   ;;  %v8251_v2 = vld [vmem:[%s9641_s25 + $0xf08] ss:$48 sps:$4 sm:$0xff]  }
 0x121   : > { %4028 = vmatprep.subr.bf16.mxu0 %v8172_v3  ;;  %v8254_v3 = vld [vmem:[%s9641_s25 + $0x910] ss:$48 sps:$4 sm:$0xff]  }
 0x123   : > { %3943 = vmatpush1.bf16.msra.mxu1 %v8167_v4  ;;  %v8259_v4 = vld [vmem:[%s9641_s25 + $0xf6c] ss:$48 sps:$4 sm:$0xff]  }
 0x124   : > { %4029 = vmatpush1.bf16.msra.mxu0 %v8170_v5  ;;  %3944 = vmatprep.subr.bf16.mxu1 %v8175_v6  ;;  %v8262_v5 = vld [vmem:[%s9641_s25 + $0x974] ss:$48 sps:$4 sm:$0xff]   ;;  %v8257_v6 = vld [vmem:[%s9641_s25 + $0xf68] ss:$48 sps:$4 sm:$0xff]  }
 0x125   : > { %4030 = vmatprep.subr.bf16.mxu0 %v8178_v7  ;;  %v8260_v7 = vld [vmem:[%s9641_s25 + $0x970] ss:$48 sps:$4 sm:$0xff]  }
 0x127   : > { %3945 = vmatpush1.bf16.msra.mxu1 %v8173_v8  ;;  %v8265_v8 = vld [vmem:[%s9641_s25 + $0xfcc] ss:$48 sps:$4 sm:$0xff]  }
 0x128   : > { %4031 = vmatpush1.bf16.msra.mxu0 %v8176_v9  ;;  %3946 = vmatprep.subr.bf16.mxu1 %v8181_v10  ;;  %v8268_v9 = vld [vmem:[%s9641_s25 + $0x9d4] ss:$48 sps:$4 sm:$0xff]   ;;  %v8263_v10 = vld [vmem:[%s9641_s25 + $0xfc8] ss:$48 sps:$4 sm:$0xff]  }
 0x129   : > { %4032 = vmatprep.subr.bf16.mxu0 %v8184_v11  ;;  %v8266_v11 = vld [vmem:[%s9641_s25 + $0x9d0] ss:$48 sps:$4 sm:$0xff]  }
 0x12b   : > { %3947 = vmatpush1.bf16.msra.mxu1 %v8179_v12  ;;  %v8271_v12 = vld [vmem:[%s9641_s25 + $0x102c] ss:$48 sps:$4 sm:$0xff]  }
 0x12c   : > { %4033 = vmatpush1.bf16.msra.mxu0 %v8182_v14  ;;  %3948 = vmatprep.subr.bf16.mxu1 %v8187_v15  ;;  %v8274_v14 = vld [vmem:[%s9641_s25 + $0xa34] ss:$48 sps:$4 sm:$0xff]   ;;  %v8269_v15 = vld [vmem:[%s9641_s25 + $0x1028] ss:$48 sps:$4 sm:$0xff]  }
 0x12d   : > { %4034 = vmatprep.subr.bf16.mxu0 %v8190_v17  ;;  %v8272_v17 = vld [vmem:[%s9641_s25 + $0xa30] ss:$48 sps:$4 sm:$0xff]  }
 0x12f   : > { %3949 = vmatpush1.bf16.msra.mxu1 %v8185_v18  ;;  %v8277_v18 = vld [vmem:[%s9641_s25 + $0x108c] ss:$48 sps:$4 sm:$0xff]  }
 0x130   : > { %4035 = vmatpush1.bf16.msra.mxu0 %v8188_v19  ;;  %3950 = vmatprep.subr.bf16.mxu1 %v8193_v20  ;;  %v8280_v19 = vld [vmem:[%s9641_s25 + $0xa94] ss:$48 sps:$4 sm:$0xff]   ;;  %v8275_v20 = vld [vmem:[%s9641_s25 + $0x1088] ss:$48 sps:$4 sm:$0xff]  }
 0x131   : > { %4036 = vmatprep.subr.bf16.mxu0 %v8196_v21  ;;  %v8278_v21 = vld [vmem:[%s9641_s25 + $0xa90] ss:$48 sps:$4 sm:$0xff]  }
 0x133   : > { %3951 = vmatpush1.bf16.msra.mxu1 %v8191_v22  ;;  %v8283_v22 = vld [vmem:[%s9641_s25 + $0x10ec] ss:$48 sps:$4 sm:$0xff]  }
 0x134   : > { %4037 = vmatpush1.bf16.msra.mxu0 %v8194_v23  ;;  %3952 = vmatprep.subr.bf16.mxu1 %v8199_v25  ;;  %v8286_v23 = vld [vmem:[%s9641_s25 + $0xaf4] ss:$48 sps:$4 sm:$0xff]   ;;  %v8281_v25 = vld [vmem:[%s9641_s25 + $0x10e8] ss:$48 sps:$4 sm:$0xff]  }
 0x135   : > { %4038 = vmatprep.subr.bf16.mxu0 %v8202_v26  ;;  %v8284_v26 = vld [vmem:[%s9641_s25 + $0xaf0] ss:$48 sps:$4 sm:$0xff]  }
 0x137   : > { %3953 = vmatpush1.bf16.msra.mxu1 %v8197_v27  ;;  %v8289_v27 = vld [vmem:[%s9641_s25 + $0x114c] ss:$48 sps:$4 sm:$0xff]  }
 0x138   : > { %4039 = vmatpush1.bf16.msra.mxu0 %v8200_v28  ;;  %3965 = vmatprep.subr.bf16.mxu1 %v8205_v29  ;;  %v8292_v28 = vld [vmem:[%s9641_s25 + $0xb54] ss:$48 sps:$4 sm:$0xff]   ;;  %v8287_v29 = vld [vmem:[%s9641_s25 + $0x1148] ss:$48 sps:$4 sm:$0xff]  }
 0x139   : > { %4051 = vmatprep.subr.bf16.mxu0 %v8208_v30  ;;  %v8290_v30 = vld [vmem:[%s9641_s25 + $0xb50] ss:$48 sps:$4 sm:$0xff]  }
 0x13a   : > { %3955 = vmatmul.mubr.bf16.vlgmr.msra.gmra.mrb[4].mxu1 %v9726_v16 }
 0x13b   : > { %4041 = vmatmul.mubr.bf16.vlgmr.msra.gmra.mrb[4].mxu0 %v9722_v13  ;;  %3966 = vmatpush1.bf16.msra.mxu1 %v8203_v31  ;;  %v8295_v31 = vld [vmem:[%s9641_s25 + $0x11ac] ss:$48 sps:$4 sm:$0xff]  }
 0x13c   : > { %4052 = vmatpush1.bf16.msra.mxu0 %v8206_v32  ;;  %3967 = vmatprep.subr.bf16.mxu1 %v8211_v33  ;;  %v8298_v32 = vld [vmem:[%s9641_s25 + $0xbb4] ss:$48 sps:$4 sm:$0xff]   ;;  %v8293_v33 = vld [vmem:[%s9641_s25 + $0x11a8] ss:$48 sps:$4 sm:$0xff]  }
 0x13d   : > { %4053 = vmatprep.subr.bf16.mxu0 %v8214_v34  ;;  %3997 = vmatprep.mubr.bf16.mxu1 %v9757_v45  ;;  %v8296_v34 = vld [vmem:[%s9641_s25 + $0xbb0] ss:$48 sps:$4 sm:$0xff]  }
 0x13e   : > { %4083 = vmatprep.mubr.bf16.mxu0 %v9702_v56 }
 0x13f   : > { %3968 = vmatpush1.bf16.msra.mxu1 %v8209_v35  ;;  %v8301_v35 = vld [vmem:[%s9641_s25 + $0xc14] ss:$48 sps:$4 sm:$0xff]  }
 0x140   : > { %4054 = vmatpush1.bf16.msra.mxu0 %v8212_v36  ;;  %3969 = vmatprep.subr.bf16.mxu1 %v8217_v37  ;;  %v8304_v36 = vld [vmem:[%s9641_s25 + $0x1c] ss:$48 sps:$4 sm:$0xff]   ;;  %v8299_v37 = vld [vmem:[%s9641_s25 + $0xc10] ss:$48 sps:$4 sm:$0xff]  }
 0x141   : > { %4055 = vmatprep.subr.bf16.mxu0 %v8220_v38  ;;  %v8302_v38 = vld [vmem:[%s9641_s25 + $0x18] ss:$48 sps:$4 sm:$0xff]  }
 0x143   : > { %3970 = vmatpush1.bf16.msra.mxu1 %v8215_v39  ;;  %v8307_v39 = vld [vmem:[%s9641_s25 + $0xc74] ss:$48 sps:$4 sm:$0xff]  }
 0x144   : > { %4056 = vmatpush1.bf16.msra.mxu0 %v8218_v40  ;;  %3971 = vmatprep.subr.bf16.mxu1 %v8223_v41  ;;  %v8310_v40 = vld [vmem:[%s9641_s25 + $0x7c] ss:$48 sps:$4 sm:$0xff]   ;;  %v8305_v41 = vld [vmem:[%s9641_s25 + $0xc70] ss:$48 sps:$4 sm:$0xff]  }
 0x145   : > { %4057 = vmatprep.subr.bf16.mxu0 %v8226_v42  ;;  %v8308_v42 = vld [vmem:[%s9641_s25 + $0x78] ss:$48 sps:$4 sm:$0xff]  }
 0x147   : > { %3972 = vmatpush1.bf16.msra.mxu1 %v8221_v43  ;;  %v8313_v43 = vld [vmem:[%s9641_s25 + $0xcd4] ss:$48 sps:$4 sm:$0xff]  }
 0x148   : > { %4058 = vmatpush1.bf16.msra.mxu0 %v8224_v44  ;;  %3973 = vmatprep.subr.bf16.mxu1 %v8229_v46  ;;  %v8316_v44 = vld [vmem:[%s9641_s25 + $0xdc] ss:$48 sps:$4 sm:$0xff]   ;;  %v8311_v46 = vld [vmem:[%s9641_s25 + $0xcd0] ss:$48 sps:$4 sm:$0xff]  }
 0x149   : > { %4059 = vmatprep.subr.bf16.mxu0 %v8232_v47  ;;  %v8314_v47 = vld [vmem:[%s9641_s25 + $0xd8] ss:$48 sps:$4 sm:$0xff]  }
 0x14b   : > { %3974 = vmatpush1.bf16.msra.mxu1 %v8227_v48  ;;  %v8319_v48 = vld [vmem:[%s9641_s25 + $0xd34] ss:$48 sps:$4 sm:$0xff]  }
 0x14c   : > { %4060 = vmatpush1.bf16.msra.mxu0 %v8230_v49  ;;  %3975 = vmatprep.subr.bf16.mxu1 %v8235_v50  ;;  %v8322_v49 = vld [vmem:[%s9641_s25 + $0x13c] ss:$48 sps:$4 sm:$0xff]   ;;  %v8317_v50 = vld [vmem:[%s9641_s25 + $0xd30] ss:$48 sps:$4 sm:$0xff]  }
 0x14d   : > { %4061 = vmatprep.subr.bf16.mxu0 %v8238_v52  ;;  %v8320_v52 = vld [vmem:[%s9641_s25 + $0x138] ss:$48 sps:$4 sm:$0xff]  }
 0x14f   : > { %3976 = vmatpush1.bf16.msra.mxu1 %v8233_v53  ;;  %v8325_v53 = vld [vmem:[%s9641_s25 + $0xd94] ss:$48 sps:$4 sm:$0xff]  }
 0x150   : > { %4062 = vmatpush1.bf16.msra.mxu0 %v8236_v54  ;;  %3977 = vmatprep.subr.bf16.mxu1 %v8241_v55  ;;  %v8328_v54 = vld [vmem:[%s9641_s25 + $0x19c] ss:$48 sps:$4 sm:$0xff]   ;;  %v8323_v55 = vld [vmem:[%s9641_s25 + $0xd90] ss:$48 sps:$4 sm:$0xff]  }
 0x151   : > { %4063 = vmatprep.subr.bf16.mxu0 %v8244_v57  ;;  %v8326_v57 = vld [vmem:[%s9641_s25 + $0x198] ss:$48 sps:$4 sm:$0xff]  }
 0x153   : > { %3978 = vmatpush1.bf16.msra.mxu1 %v8239_v58  ;;  %v8331_v58 = vld [vmem:[%s9641_s25 + $0xdf4] ss:$48 sps:$4 sm:$0xff]  }
 0x154   : > { %4064 = vmatpush1.bf16.msra.mxu0 %v8242_v59  ;;  %3979 = vmatprep.subr.bf16.mxu1 %v8247_v60  ;;  %v8334_v59 = vld [vmem:[%s9641_s25 + $0x1fc] ss:$48 sps:$4 sm:$0xff]   ;;  %v8329_v60 = vld [vmem:[%s9641_s25 + $0xdf0] ss:$48 sps:$4 sm:$0xff]  }
 0x155   : > { %4065 = vmatprep.subr.bf16.mxu0 %v8250_v61  ;;  %v8332_v61 = vld [vmem:[%s9641_s25 + $0x1f8] ss:$48 sps:$4 sm:$0xff]  }
 0x157   : > { %3980 = vmatpush1.bf16.msra.mxu1 %v8245_v62  ;;  %v8337_v62 = vld [vmem:[%s9641_s25 + $0xe54] ss:$48 sps:$4 sm:$0xff]  }
 0x158   : > { %4066 = vmatpush1.bf16.msra.mxu0 %v8248_v63  ;;  %3981 = vmatprep.subr.bf16.mxu1 %v8253_v0  ;;  %v8340_v63 = vld [vmem:[%s9641_s25 + $0x25c] ss:$48 sps:$4 sm:$0xff]  }
 0x159   : > { %4067 = vmatprep.subr.bf16.mxu0 %v8256_v1 }
 0x15b   : > { %3982 = vmatpush1.bf16.msra.mxu1 %v8251_v2 }
 0x15c   : > { %4068 = vmatpush1.bf16.msra.mxu0 %v8254_v3  ;;  %3983 = vmatprep.subr.bf16.mxu1 %v8259_v4  ;;  %v8335_v3 = vld [vmem:[%s9641_s25 + $0xe50] ss:$48 sps:$4 sm:$0xff]   ;;  %v8338_v4 = vld [vmem:[%s9641_s25 + $0x258] ss:$48 sps:$4 sm:$0xff]  }
 0x15d   : > { %4069 = vmatprep.subr.bf16.mxu0 %v8262_v5 }
 0x15f   : > { %3984 = vmatpush1.bf16.msra.mxu1 %v8257_v6  ;;  %v8343_v6 = vld [vmem:[%s9641_s25 + $0xeb4] ss:$48 sps:$4 sm:$0xff]  }
 0x160   : > { %4070 = vmatpush1.bf16.msra.mxu0 %v8260_v7  ;;  %3985 = vmatprep.subr.bf16.mxu1 %v8265_v8  ;;  %v8346_v7 = vld [vmem:[%s9641_s25 + $0x2bc] ss:$48 sps:$4 sm:$0xff]   ;;  %v8341_v8 = vld [vmem:[%s9641_s25 + $0xeb0] ss:$48 sps:$4 sm:$0xff]  }
 0x161   : > { %4071 = vmatprep.subr.bf16.mxu0 %v8268_v9  ;;  %v8344_v9 = vld [vmem:[%s9641_s25 + $0x2b8] ss:$48 sps:$4 sm:$0xff]  }
 0x163   : > { %3986 = vmatpush1.bf16.msra.mxu1 %v8263_v10  ;;  %v8349_v10 = vld [vmem:[%s9641_s25 + $0xf14] ss:$48 sps:$4 sm:$0xff]  }
 0x164   : > { %4072 = vmatpush1.bf16.msra.mxu0 %v8266_v11  ;;  %3987 = vmatprep.subr.bf16.mxu1 %v8271_v12  ;;  %v8352_v11 = vld [vmem:[%s9641_s25 + $0x31c] ss:$48 sps:$4 sm:$0xff]   ;;  %v8347_v12 = vld [vmem:[%s9641_s25 + $0xf10] ss:$48 sps:$4 sm:$0xff]  }
 0x165   : > { %4073 = vmatprep.subr.bf16.mxu0 %v8274_v14  ;;  %v8350_v14 = vld [vmem:[%s9641_s25 + $0x318] ss:$48 sps:$4 sm:$0xff]  }
 0x167   : > { %3988 = vmatpush1.bf16.msra.mxu1 %v8269_v15  ;;  %v8355_v15 = vld [vmem:[%s9641_s25 + $0xf74] ss:$48 sps:$4 sm:$0xff]  }
 0x168   : > { %4074 = vmatpush1.bf16.msra.mxu0 %v8272_v17  ;;  %3989 = vmatprep.subr.bf16.mxu1 %v8277_v18  ;;  %v8358_v17 = vld [vmem:[%s9641_s25 + $0x37c] ss:$48 sps:$4 sm:$0xff]   ;;  %v8353_v18 = vld [vmem:[%s9641_s25 + $0xf70] ss:$48 sps:$4 sm:$0xff]  }
 0x169   : > { %4075 = vmatprep.subr.bf16.mxu0 %v8280_v19  ;;  %v8356_v19 = vld [vmem:[%s9641_s25 + $0x378] ss:$48 sps:$4 sm:$0xff]  }
 0x16b   : > { %3990 = vmatpush1.bf16.msra.mxu1 %v8275_v20  ;;  %v8361_v20 = vld [vmem:[%s9641_s25 + $0xfd4] ss:$48 sps:$4 sm:$0xff]  }
 0x16c   : > { %4076 = vmatpush1.bf16.msra.mxu0 %v8278_v21  ;;  %3991 = vmatprep.subr.bf16.mxu1 %v8283_v22  ;;  %v8364_v21 = vld [vmem:[%s9641_s25 + $0x3dc] ss:$48 sps:$4 sm:$0xff]   ;;  %v8359_v22 = vld [vmem:[%s9641_s25 + $0xfd0] ss:$48 sps:$4 sm:$0xff]  }
 0x16d   : > { %4077 = vmatprep.subr.bf16.mxu0 %v8286_v23  ;;  %v8362_v23 = vld [vmem:[%s9641_s25 + $0x3d8] ss:$48 sps:$4 sm:$0xff]  }
 0x16f   : > { %3992 = vmatpush1.bf16.msra.mxu1 %v8281_v25  ;;  %v8367_v25 = vld [vmem:[%s9641_s25 + $0x1034] ss:$48 sps:$4 sm:$0xff]  }
 0x170   : > { %4078 = vmatpush1.bf16.msra.mxu0 %v8284_v26  ;;  %3993 = vmatprep.subr.bf16.mxu1 %v8289_v27  ;;  %v8370_v26 = vld [vmem:[%s9641_s25 + $0x43c] ss:$48 sps:$4 sm:$0xff]   ;;  %v8365_v27 = vld [vmem:[%s9641_s25 + $0x1030] ss:$48 sps:$4 sm:$0xff]  }
 0x171   : > { %4079 = vmatprep.subr.bf16.mxu0 %v8292_v28  ;;  %v8368_v28 = vld [vmem:[%s9641_s25 + $0x438] ss:$48 sps:$4 sm:$0xff]  }
 0x173   : > { %3994 = vmatpush1.bf16.msra.mxu1 %v8287_v29  ;;  %v8373_v29 = vld [vmem:[%s9641_s25 + $0x1094] ss:$48 sps:$4 sm:$0xff]  }
 0x174   : > { %4080 = vmatpush1.bf16.msra.mxu0 %v8290_v30  ;;  %3995 = vmatprep.subr.bf16.mxu1 %v8295_v31  ;;  %v8376_v30 = vld [vmem:[%s9641_s25 + $0x49c] ss:$48 sps:$4 sm:$0xff]   ;;  %v8371_v31 = vld [vmem:[%s9641_s25 + $0x1090] ss:$48 sps:$4 sm:$0xff]  }
 0x175   : > { %4081 = vmatprep.subr.bf16.mxu0 %v8298_v32  ;;  %v8374_v32 = vld [vmem:[%s9641_s25 + $0x498] ss:$48 sps:$4 sm:$0xff]  }
 0x177   : > { %3996 = vmatpush1.bf16.msra.mxu1 %v8293_v33  ;;  %v8379_v33 = vld [vmem:[%s9641_s25 + $0x10f4] ss:$48 sps:$4 sm:$0xff]  }
 0x178   : > { %4082 = vmatpush1.bf16.msra.mxu0 %v8296_v34  ;;  %4137 = vmatprep.subr.bf16.mxu1 %v8304_v36  ;;  %v8382_v34 = vld [vmem:[%s9641_s25 + $0x4fc] ss:$48 sps:$4 sm:$0xff]   ;;  %v8380_v36 = vld [vmem:[%s9641_s25 + $0x4f8] ss:$48 sps:$4 sm:$0xff]  }
 0x179   : > { %4094 = vmatprep.subr.bf16.mxu0 %v8301_v35  ;;  %v8377_v35 = vld [vmem:[%s9641_s25 + $0x10f0] ss:$48 sps:$4 sm:$0xff]  }
 0x17a   : > { %3998 = vmatmul.mubr.bf16.vlgmr.msra.gmra.mrb[4].mxu1 %v9796_v24 }
 0x17b   : > { %4084 = vmatmul.mubr.bf16.vlgmr.msra.gmra.mrb[4].mxu0 %v9726_v16  ;;  %4138 = vmatpush1.bf16.msra.mxu1 %v8302_v38  ;;  %v8388_v38 = vld [vmem:[%s9641_s25 + $0x55c] ss:$48 sps:$4 sm:$0xff]  }
 0x17c   : > { %4095 = vmatpush1.bf16.msra.mxu0 %v8299_v37  ;;  %4139 = vmatprep.subr.bf16.mxu1 %v8310_v40  ;;  %v8385_v37 = vld [vmem:[%s9641_s25 + $0x1154] ss:$48 sps:$4 sm:$0xff]   ;;  %v8386_v40 = vld [vmem:[%s9641_s25 + $0x558] ss:$48 sps:$4 sm:$0xff]  }
 0x17d   : > { %4096 = vmatprep.subr.bf16.mxu0 %v8307_v39  ;;  %4126 = vmatprep.mubr.bf16.mxu0 %v9757_v45  ;;  %v8383_v39 = vld [vmem:[%s9641_s25 + $0x1150] ss:$48 sps:$4 sm:$0xff]  }
 0x17e   : > { %4169 = vmatprep.mubr.bf16.mxu1 %v9698_v51 }
 0x17f   : > { %4140 = vmatpush1.bf16.msra.mxu1 %v8308_v42  ;;  %v8394_v42 = vld [vmem:[%s9641_s25 + $0x5bc] ss:$48 sps:$4 sm:$0xff]  }
 0x180   : > { %4097 = vmatpush1.bf16.msra.mxu0 %v8305_v41  ;;  %4141 = vmatprep.subr.bf16.mxu1 %v8316_v44  ;;  %v8391_v41 = vld [vmem:[%s9641_s25 + $0x11b4] ss:$48 sps:$4 sm:$0xff]   ;;  %v8392_v44 = vld [vmem:[%s9641_s25 + $0x5b8] ss:$48 sps:$4 sm:$0xff]  }
 0x181   : > { %4098 = vmatprep.subr.bf16.mxu0 %v8313_v43  ;;  %v8389_v43 = vld [vmem:[%s9641_s25 + $0x11b0] ss:$48 sps:$4 sm:$0xff]  }
 0x183   : > { %4142 = vmatpush1.bf16.msra.mxu1 %v8314_v47  ;;  %v8400_v47 = vld [vmem:[%s9641_s25 + $0x24] ss:$48 sps:$4 sm:$0xff]  }
 0x184   : > { %4099 = vmatpush1.bf16.msra.mxu0 %v8311_v46  ;;  %4143 = vmatprep.subr.bf16.mxu1 %v8322_v49  ;;  %v8397_v46 = vld [vmem:[%s9641_s25 + $0x61c] ss:$48 sps:$4 sm:$0xff]   ;;  %v8398_v49 = vld [vmem:[%s9641_s25 + $0x20] ss:$48 sps:$4 sm:$0xff]  }
 0x185   : > { %4100 = vmatprep.subr.bf16.mxu0 %v8319_v48  ;;  %v8395_v48 = vld [vmem:[%s9641_s25 + $0x618] ss:$48 sps:$4 sm:$0xff]  }
 0x187   : > { %4144 = vmatpush1.bf16.msra.mxu1 %v8320_v52  ;;  %v8406_v52 = vld [vmem:[%s9641_s25 + $0x84] ss:$48 sps:$4 sm:$0xff]  }
 0x188   : > { %4101 = vmatpush1.bf16.msra.mxu0 %v8317_v50  ;;  %4145 = vmatprep.subr.bf16.mxu1 %v8328_v54  ;;  %v8403_v50 = vld [vmem:[%s9641_s25 + $0x67c] ss:$48 sps:$4 sm:$0xff]   ;;  %v8404_v54 = vld [vmem:[%s9641_s25 + $0x80] ss:$48 sps:$4 sm:$0xff]  }
 0x189   : > { %4102 = vmatprep.subr.bf16.mxu0 %v8325_v53  ;;  %v8401_v53 = vld [vmem:[%s9641_s25 + $0x678] ss:$48 sps:$4 sm:$0xff]  }
 0x18b   : > { %4146 = vmatpush1.bf16.msra.mxu1 %v8326_v57  ;;  %v8412_v57 = vld [vmem:[%s9641_s25 + $0xe4] ss:$48 sps:$4 sm:$0xff]  }
 0x18c   : > { %4103 = vmatpush1.bf16.msra.mxu0 %v8323_v55  ;;  %4147 = vmatprep.subr.bf16.mxu1 %v8334_v59  ;;  %v8409_v55 = vld [vmem:[%s9641_s25 + $0x6dc] ss:$48 sps:$4 sm:$0xff]   ;;  %v8410_v59 = vld [vmem:[%s9641_s25 + $0xe0] ss:$48 sps:$4 sm:$0xff]  }
 0x18d   : > { %4104 = vmatprep.subr.bf16.mxu0 %v8331_v58  ;;  %v9962_v0 = vpop.f32.mrb[0].mxu1  ;;  %v8407_v58 = vld [vmem:[%s9641_s25 + $0x6d8] ss:$48 sps:$4 sm:$0xff]  }
 0x18e   : > { %v9964_v1 = vpop.f32.mrb[1].mxu1 }
 0x18f   : > { %v9966_v2 = vpop.f32.mrb[2].mxu1  ;;  %4148 = vmatpush1.bf16.msra.mxu1 %v8332_v61  ;;  %v8418_v61 = vld [vmem:[%s9641_s25 + $0x144] ss:$48 sps:$4 sm:$0xff]  }
 0x190   : > { %4105 = vmatpush1.bf16.msra.mxu0 %v8329_v60  ;;  %v9970_v5 = vpop.f32.mrb[3].mxu1  ;;  %4149 = vmatprep.subr.bf16.mxu1 %v8340_v63  ;;  %v8415_v60 = vld [vmem:[%s9641_s25 + $0x73c] ss:$48 sps:$4 sm:$0xff]   ;;  %v8416_v63 = vld [vmem:[%s9641_s25 + $0x140] ss:$48 sps:$4 sm:$0xff]  }
 0x191   : > { %4106 = vmatprep.subr.bf16.mxu0 %v8337_v62  ;;  %v8413_v62 = vld [vmem:[%s9641_s25 + $0x738] ss:$48 sps:$4 sm:$0xff]  }
 0x193   : > { %4150 = vmatpush1.bf16.msra.mxu1 %v8338_v4  ;;  %v8424_v4 = vld [vmem:[%s9641_s25 + $0x1a4] ss:$48 sps:$4 sm:$0xff]  }
 0x194   : > { %4107 = vmatpush1.bf16.msra.mxu0 %v8335_v3  ;;  %4151 = vmatprep.subr.bf16.mxu1 %v8346_v7  ;;  %v8421_v3 = vld [vmem:[%s9641_s25 + $0x79c] ss:$48 sps:$4 sm:$0xff]   ;;  %v8422_v7 = vld [vmem:[%s9641_s25 + $0x1a0] ss:$48 sps:$4 sm:$0xff]  }
 0x195   : > { %4108 = vmatprep.subr.bf16.mxu0 %v8343_v6  ;;  %v8419_v6 = vld [vmem:[%s9641_s25 + $0x798] ss:$48 sps:$4 sm:$0xff]  }
 0x197   : > { %4152 = vmatpush1.bf16.msra.mxu1 %v8344_v9  ;;  %v8430_v9 = vld [vmem:[%s9641_s25 + $0x204] ss:$48 sps:$4 sm:$0xff]  }
 0x198   : > { %4109 = vmatpush1.bf16.msra.mxu0 %v8341_v8  ;;  %4153 = vmatprep.subr.bf16.mxu1 %v8352_v11  ;;  %v8427_v8 = vld [vmem:[%s9641_s25 + $0x7fc] ss:$48 sps:$4 sm:$0xff]   ;;  %v8428_v11 = vld [vmem:[%s9641_s25 + $0x200] ss:$48 sps:$4 sm:$0xff]  }
 0x199   : > { %4110 = vmatprep.subr.bf16.mxu0 %v8349_v10  ;;  %v8425_v10 = vld [vmem:[%s9641_s25 + $0x7f8] ss:$48 sps:$4 sm:$0xff]  }
 0x19b   : > { %4154 = vmatpush1.bf16.msra.mxu1 %v8350_v14  ;;  %v8436_v14 = vld [vmem:[%s9641_s25 + $0x264] ss:$48 sps:$4 sm:$0xff]  }
 0x19c   : > { %4111 = vmatpush1.bf16.msra.mxu0 %v8347_v12  ;;  %4155 = vmatprep.subr.bf16.mxu1 %v8358_v17  ;;  %v8433_v12 = vld [vmem:[%s9641_s25 + $0x85c] ss:$48 sps:$4 sm:$0xff]   ;;  %v8431_v17 = vld [vmem:[%s9641_s25 + $0x858] ss:$48 sps:$4 sm:$0xff]  }
 0x19d   : > { %4112 = vmatprep.subr.bf16.mxu0 %v8355_v15 }
 0x19f   : > { %4156 = vmatpush1.bf16.msra.mxu1 %v8356_v19 }
 0x1a0   : > { %4113 = vmatpush1.bf16.msra.mxu0 %v8353_v18  ;;  %4157 = vmatprep.subr.bf16.mxu1 %v8364_v21  ;;  %v8434_v18 = vld [vmem:[%s9641_s25 + $0x260] ss:$48 sps:$4 sm:$0xff]  }
 0x1a1   : > { %4114 = vmatprep.subr.bf16.mxu0 %v8361_v20 }
 0x1a3   : > { %4158 = vmatpush1.bf16.msra.mxu1 %v8362_v23 }
 0x1a4   : > { %4115 = vmatpush1.bf16.msra.mxu0 %v8359_v22  ;;  %4159 = vmatprep.subr.bf16.mxu1 %v8370_v26  ;;  %v8439_v26 = vld [vmem:[%s9641_s25 + $0x8bc] ss:$48 sps:$4 sm:$0xff]  }
 0x1a5   : > { %4116 = vmatprep.subr.bf16.mxu0 %v8367_v25 }
 0x1a7   : > { %4160 = vmatpush1.bf16.msra.mxu1 %v8368_v28  ;;  %v8440_v28 = vld [vmem:[%s9641_s25 + $0x2c0] ss:$48 sps:$4 sm:$0xff]  }
 0x1a8   : > { %4117 = vmatpush1.bf16.msra.mxu0 %v8365_v27  ;;  %4161 = vmatprep.subr.bf16.mxu1 %v8376_v30  ;;  %v8443_v30 = vld [vmem:[%s9641_s25 + $0x918] ss:$48 sps:$4 sm:$0xff]  }
 0x1a9   : > { %4118 = vmatprep.subr.bf16.mxu0 %v8373_v29  ;;  %v8448_v29 = vld [vmem:[%s9641_s25 + $0x324] ss:$48 sps:$4 sm:$0xff]  }
 0x1ab   : > { %4162 = vmatpush1.bf16.msra.mxu1 %v8374_v32  ;;  %v8454_v32 = vld [vmem:[%s9641_s25 + $0x384] ss:$48 sps:$4 sm:$0xff]  }
 0x1ac   : > { %4119 = vmatpush1.bf16.msra.mxu0 %v8371_v31  ;;  %4163 = vmatprep.subr.bf16.mxu1 %v8382_v34  ;;  %v8446_v31 = vld [vmem:[%s9641_s25 + $0x320] ss:$48 sps:$4 sm:$0xff]  }
 0x1ad   : > { %4120 = vmatprep.subr.bf16.mxu0 %v8379_v33  ;;  %v8449_v33 = vld [vmem:[%s9641_s25 + $0x978] ss:$48 sps:$4 sm:$0xff]   ;;  %v8452_v34 = vld [vmem:[%s9641_s25 + $0x380] ss:$48 sps:$4 sm:$0xff]  }
 0x1af   : > { %4164 = vmatpush1.bf16.msra.mxu1 %v8380_v36  ;;  %v8460_v36 = vld [vmem:[%s9641_s25 + $0x3e4] ss:$48 sps:$4 sm:$0xff]  }
 0x1b0   : > { %4121 = vmatpush1.bf16.msra.mxu0 %v8377_v35  ;;  %4165 = vmatprep.subr.bf16.mxu1 %v8388_v38  ;;  %v8457_v35 = vld [vmem:[%s9641_s25 + $0x9dc] ss:$48 sps:$4 sm:$0xff]   ;;  %v8458_v38 = vld [vmem:[%s9641_s25 + $0x3e0] ss:$48 sps:$4 sm:$0xff]  }
 0x1b1   : > { %4122 = vmatprep.subr.bf16.mxu0 %v8385_v37  ;;  %v8455_v37 = vld [vmem:[%s9641_s25 + $0x9d8] ss:$48 sps:$4 sm:$0xff]  }
 0x1b3   : > { %4166 = vmatpush1.bf16.msra.mxu1 %v8386_v40  ;;  %v8466_v40 = vld [vmem:[%s9641_s25 + $0x444] ss:$48 sps:$4 sm:$0xff]  }
 0x1b4   : > { %4123 = vmatpush1.bf16.msra.mxu0 %v8383_v39  ;;  %4167 = vmatprep.subr.bf16.mxu1 %v8394_v42  ;;  %v8463_v39 = vld [vmem:[%s9641_s25 + $0xa3c] ss:$48 sps:$4 sm:$0xff]   ;;  %v8464_v42 = vld [vmem:[%s9641_s25 + $0x440] ss:$48 sps:$4 sm:$0xff]  }
 0x1b5   : > { %4124 = vmatprep.subr.bf16.mxu0 %v8391_v41  ;;  %v8461_v41 = vld [vmem:[%s9641_s25 + $0xa38] ss:$48 sps:$4 sm:$0xff]  }
 0x1b7   : > { %4168 = vmatpush1.bf16.msra.mxu1 %v8392_v44  ;;  %v8472_v44 = vld [vmem:[%s9641_s25 + $0x4a4] ss:$48 sps:$4 sm:$0xff]  }
 0x1b8   : > { %4125 = vmatpush1.bf16.msra.mxu0 %v8389_v43  ;;  %4180 = vmatprep.subr.bf16.mxu1 %v8397_v46  ;;  %v8469_v43 = vld [vmem:[%s9641_s25 + $0xa9c] ss:$48 sps:$4 sm:$0xff]   ;;  %v8467_v46 = vld [vmem:[%s9641_s25 + $0xa98] ss:$48 sps:$4 sm:$0xff]  }
 0x1b9   : > { %4266 = vmatprep.subr.bf16.mxu0 %v8400_v47  ;;  %v8470_v47 = vld [vmem:[%s9641_s25 + $0x4a0] ss:$48 sps:$4 sm:$0xff]  }
 0x1ba   : > { %4170 = vmatmul.mubr.bf16.vlgmr.msra.gmra.mrb[8].mxu1 %v9722_v13 }
 0x1bb   : > { %4127 = vmatmul.mubr.bf16.vlgmr.msra.gmra.mrb[4].mxu0 %v9796_v24  ;;  %4181 = vmatpush1.bf16.msra.mxu1 %v8395_v48  ;;  %v8475_v48 = vld [vmem:[%s9641_s25 + $0xafc] ss:$48 sps:$4 sm:$0xff]  }
 0x1bc   : > { %4267 = vmatpush1.bf16.msra.mxu0 %v8398_v49  ;;  %4182 = vmatprep.subr.bf16.mxu1 %v8403_v50  ;;  %v8478_v49 = vld [vmem:[%s9641_s25 + $0x504] ss:$48 sps:$4 sm:$0xff]   ;;  %v8473_v50 = vld [vmem:[%s9641_s25 + $0xaf8] ss:$48 sps:$4 sm:$0xff]  }
 0x1bd   : > { %4268 = vmatprep.subr.bf16.mxu0 %v8406_v52  ;;  %4212 = vmatprep.mubr.bf16.mxu1 %v9702_v56  ;;  %v8476_v52 = vld [vmem:[%s9641_s25 + $0x500] ss:$48 sps:$4 sm:$0xff]  }
 0x1be   : > { %4298 = vmatprep.mubr.bf16.mxu0 %v9698_v51 }
 0x1bf   : > { %4183 = vmatpush1.bf16.msra.mxu1 %v8401_v53  ;;  %v8481_v53 = vld [vmem:[%s9641_s25 + $0xb5c] ss:$48 sps:$4 sm:$0xff]  }
 0x1c0   : > { %4269 = vmatpush1.bf16.msra.mxu0 %v8404_v54  ;;  %4184 = vmatprep.subr.bf16.mxu1 %v8409_v55  ;;  %v8484_v54 = vld [vmem:[%s9641_s25 + $0x564] ss:$48 sps:$4 sm:$0xff]   ;;  %v8479_v55 = vld [vmem:[%s9641_s25 + $0xb58] ss:$48 sps:$4 sm:$0xff]  }
 0x1c1   : > { %4270 = vmatprep.subr.bf16.mxu0 %v8412_v57  ;;  %v8482_v57 = vld [vmem:[%s9641_s25 + $0x560] ss:$48 sps:$4 sm:$0xff]  }
 0x1c3   : > { %4185 = vmatpush1.bf16.msra.mxu1 %v8407_v58  ;;  %v8487_v58 = vld [vmem:[%s9641_s25 + $0xbbc] ss:$48 sps:$4 sm:$0xff]  }
 0x1c4   : > { %4271 = vmatpush1.bf16.msra.mxu0 %v8410_v59  ;;  %4186 = vmatprep.subr.bf16.mxu1 %v8415_v60  ;;  %v8490_v59 = vld [vmem:[%s9641_s25 + $0x5c4] ss:$48 sps:$4 sm:$0xff]   ;;  %v8485_v60 = vld [vmem:[%s9641_s25 + $0xbb8] ss:$48 sps:$4 sm:$0xff]  }
 0x1c5   : > { %4272 = vmatprep.subr.bf16.mxu0 %v8418_v61  ;;  %v8488_v61 = vld [vmem:[%s9641_s25 + $0x5c0] ss:$48 sps:$4 sm:$0xff]  }
 0x1c7   : > { %4187 = vmatpush1.bf16.msra.mxu1 %v8413_v62  ;;  %v8493_v62 = vld [vmem:[%s9641_s25 + $0xc1c] ss:$48 sps:$4 sm:$0xff]  }
 0x1c8   : > { %4273 = vmatpush1.bf16.msra.mxu0 %v8416_v63  ;;  %4188 = vmatprep.subr.bf16.mxu1 %v8421_v3  ;;  %v8496_v63 = vld [vmem:[%s9641_s25 + $0x624] ss:$48 sps:$4 sm:$0xff]   ;;  %v8491_v3 = vld [vmem:[%s9641_s25 + $0xc18] ss:$48 sps:$4 sm:$0xff]  }
 0x1c9   : > { %4274 = vmatprep.subr.bf16.mxu0 %v8424_v4  ;;  %v8494_v4 = vld [vmem:[%s9641_s25 + $0x620] ss:$48 sps:$4 sm:$0xff]  }
 0x1cb   : > { %4189 = vmatpush1.bf16.msra.mxu1 %v8419_v6  ;;  %v8499_v6 = vld [vmem:[%s9641_s25 + $0xc7c] ss:$48 sps:$4 sm:$0xff]  }
 0x1cc   : > { %4275 = vmatpush1.bf16.msra.mxu0 %v8422_v7  ;;  %4190 = vmatprep.subr.bf16.mxu1 %v8427_v8  ;;  %v8502_v7 = vld [vmem:[%s9641_s25 + $0x684] ss:$48 sps:$4 sm:$0xff]   ;;  %v8497_v8 = vld [vmem:[%s9641_s25 + $0xc78] ss:$48 sps:$4 sm:$0xff]  }
 0x1cd   : > { %4276 = vmatprep.subr.bf16.mxu0 %v8430_v9  ;;  %v8500_v9 = vld [vmem:[%s9641_s25 + $0x680] ss:$48 sps:$4 sm:$0xff]  }
 0x1ce   : > { %v3870_v15 = vpop.f32.mrb[0].mxu0 }
 0x1cf   : > { %v10041_v19 = vadd.f32 %v3870_v15, %v9962_v0  ;;  %v3872_v20 = vpop.f32.mrb[1].mxu0  ;;  %4191 = vmatpush1.bf16.msra.mxu1 %v8425_v10  ;;  %v8442_v0 = vld [vmem:[%s9641_s25 + $0x2c4] ss:$48 sps:$4 sm:$0xff]   ;;  %v8505_v10 = vld [vmem:[%s9641_s25 + $0xcdc] ss:$48 sps:$4 sm:$0xff]  }
 0x1d0   : > { %v10044_v21 = vadd.f32 %v3872_v20, %v9964_v1  ;;  %v3874_v22 = vpop.f32.mrb[2].mxu0  ;;  %4277 = vmatpush1.bf16.msra.mxu0 %v8428_v11  ;;  %4192 = vmatprep.subr.bf16.mxu1 %v8433_v12  ;;  %v8437_v1 = vld [vmem:[%s9641_s25 + $0x8b8] ss:$48 sps:$4 sm:$0xff]   ;;  %v8508_v11 = vld [vmem:[%s9641_s25 + $0x6e4] ss:$48 sps:$4 sm:$0xff]  }
 0x1d1   : > { %v10047_v23 = vadd.f32 %v3874_v22, %v9966_v2  ;;  %v3876_v25 = vpop.f32.mrb[3].mxu0  ;;  %4278 = vmatprep.subr.bf16.mxu0 %v8436_v14  ;;  %v8445_v2 = vld [vmem:[%s9641_s25 + $0x91c] ss:$48 sps:$4 sm:$0xff]   ;;  %v8503_v12 = vld [vmem:[%s9641_s25 + $0xcd8] ss:$48 sps:$4 sm:$0xff]  }
 0x1d2   : > { %v10052_v27 = vadd.f32 %v3876_v25, %v9970_v5  ;;  %v8451_v5 = vld [vmem:[%s9641_s25 + $0x97c] ss:$48 sps:$4 sm:$0xff]   ;;  %v8506_v14 = vld [vmem:[%s9641_s25 + $0x6e0] ss:$48 sps:$4 sm:$0xff]   ;;  %v8520_v25 = vld [vmem:[%s9641_s25 + $0x7a4] ss:$48 sps:$4 sm:$0xff]  }
 0x1d3   : > { %4193 = vmatpush1.bf16.msra.mxu1 %v8431_v17  ;;  %v8511_v15 = vld [vmem:[%s9641_s25 + $0xd3c] ss:$48 sps:$4 sm:$0xff]   ;;  %v8514_v17 = vld [vmem:[%s9641_s25 + $0x744] ss:$48 sps:$4 sm:$0xff]   ;;  %v8512_v20 = vld [vmem:[%s9641_s25 + $0x740] ss:$48 sps:$4 sm:$0xff]  }
 0x1d4   : > { %4279 = vmatpush1.bf16.msra.mxu0 %v8434_v18  ;;  %4194 = vmatprep.subr.bf16.mxu1 %v8439_v26  ;;  %v8509_v18 = vld [vmem:[%s9641_s25 + $0xd38] ss:$48 sps:$4 sm:$0xff]   ;;  %v8517_v22 = vld [vmem:[%s9641_s25 + $0xd9c] ss:$48 sps:$4 sm:$0xff]  }
 0x1d5   : > { %4280 = vmatprep.subr.bf16.mxu0 %v8442_v0  ;;  %v8515_v26 = vld [vmem:[%s9641_s25 + $0xd98] ss:$48 sps:$4 sm:$0xff]   ;;  %v8518_v0 = vld [vmem:[%s9641_s25 + $0x7a0] ss:$48 sps:$4 sm:$0xff]  }
 0x1d7   : > { %4195 = vmatpush1.bf16.msra.mxu1 %v8437_v1  ;;  %v8523_v1 = vld [vmem:[%s9641_s25 + $0xdfc] ss:$48 sps:$4 sm:$0xff]  }
 0x1d8   : > { %4281 = vmatpush1.bf16.msra.mxu0 %v8440_v28  ;;  %4196 = vmatprep.subr.bf16.mxu1 %v8445_v2  ;;  %v8526_v28 = vld [vmem:[%s9641_s25 + $0x804] ss:$48 sps:$4 sm:$0xff]   ;;  %v8521_v2 = vld [vmem:[%s9641_s25 + $0xdf8] ss:$48 sps:$4 sm:$0xff]  }
 0x1d9   : > { %4282 = vmatprep.subr.bf16.mxu0 %v8448_v29  ;;  %v8524_v29 = vld [vmem:[%s9641_s25 + $0x800] ss:$48 sps:$4 sm:$0xff]  }
 0x1db   : > { %4197 = vmatpush1.bf16.msra.mxu1 %v8443_v30  ;;  %v8529_v30 = vld [vmem:[%s9641_s25 + $0xe5c] ss:$48 sps:$4 sm:$0xff]  }
 0x1dc   : > { %4283 = vmatpush1.bf16.msra.mxu0 %v8446_v31  ;;  %4198 = vmatprep.subr.bf16.mxu1 %v8451_v5  ;;  %v8532_v31 = vld [vmem:[%s9641_s25 + $0x864] ss:$48 sps:$4 sm:$0xff]   ;;  %v8527_v5 = vld [vmem:[%s9641_s25 + $0xe58] ss:$48 sps:$4 sm:$0xff]  }
 0x1dd   : > { %4284 = vmatprep.subr.bf16.mxu0 %v8454_v32  ;;  %v8530_v32 = vld [vmem:[%s9641_s25 + $0x860] ss:$48 sps:$4 sm:$0xff]  }
 0x1df   : > { %4199 = vmatpush1.bf16.msra.mxu1 %v8449_v33  ;;  %v8535_v33 = vld [vmem:[%s9641_s25 + $0xebc] ss:$48 sps:$4 sm:$0xff]  }
 0x1e0   : > { %4285 = vmatpush1.bf16.msra.mxu0 %v8452_v34  ;;  %4200 = vmatprep.subr.bf16.mxu1 %v8457_v35  ;;  %v8538_v34 = vld [vmem:[%s9641_s25 + $0x8c4] ss:$48 sps:$4 sm:$0xff]   ;;  %v8533_v35 = vld [vmem:[%s9641_s25 + $0xeb8] ss:$48 sps:$4 sm:$0xff]  }
 0x1e1   : > { %4286 = vmatprep.subr.bf16.mxu0 %v8460_v36  ;;  %v8536_v36 = vld [vmem:[%s9641_s25 + $0x8c0] ss:$48 sps:$4 sm:$0xff]  }
 0x1e3   : > { %4201 = vmatpush1.bf16.msra.mxu1 %v8455_v37  ;;  %v8541_v37 = vld [vmem:[%s9641_s25 + $0xf1c] ss:$48 sps:$4 sm:$0xff]  }
 0x1e4   : > { %4287 = vmatpush1.bf16.msra.mxu0 %v8458_v38  ;;  %4202 = vmatprep.subr.bf16.mxu1 %v8463_v39  ;;  %v8544_v38 = vld [vmem:[%s9641_s25 + $0x924] ss:$48 sps:$4 sm:$0xff]   ;;  %v8539_v39 = vld [vmem:[%s9641_s25 + $0xf18] ss:$48 sps:$4 sm:$0xff]  }
 0x1e5   : > { %4288 = vmatprep.subr.bf16.mxu0 %v8466_v40  ;;  %v8542_v40 = vld [vmem:[%s9641_s25 + $0x920] ss:$48 sps:$4 sm:$0xff]  }
 0x1e7   : > { %4203 = vmatpush1.bf16.msra.mxu1 %v8461_v41  ;;  %v8547_v41 = vld [vmem:[%s9641_s25 + $0xf7c] ss:$48 sps:$4 sm:$0xff]  }
 0x1e8   : > { %4289 = vmatpush1.bf16.msra.mxu0 %v8464_v42  ;;  %4204 = vmatprep.subr.bf16.mxu1 %v8469_v43  ;;  %v8550_v42 = vld [vmem:[%s9641_s25 + $0x984] ss:$48 sps:$4 sm:$0xff]   ;;  %v8545_v43 = vld [vmem:[%s9641_s25 + $0xf78] ss:$48 sps:$4 sm:$0xff]  }
 0x1e9   : > { %4290 = vmatprep.subr.bf16.mxu0 %v8472_v44  ;;  %v8548_v44 = vld [vmem:[%s9641_s25 + $0x980] ss:$48 sps:$4 sm:$0xff]  }
 0x1eb   : > { %4205 = vmatpush1.bf16.msra.mxu1 %v8467_v46  ;;  %v8553_v46 = vld [vmem:[%s9641_s25 + $0xfdc] ss:$48 sps:$4 sm:$0xff]  }
 0x1ec   : > { %4291 = vmatpush1.bf16.msra.mxu0 %v8470_v47  ;;  %4206 = vmatprep.subr.bf16.mxu1 %v8475_v48  ;;  %v8556_v47 = vld [vmem:[%s9641_s25 + $0x9e4] ss:$48 sps:$4 sm:$0xff]   ;;  %v8551_v48 = vld [vmem:[%s9641_s25 + $0xfd8] ss:$48 sps:$4 sm:$0xff]  }
 0x1ed   : > { %4292 = vmatprep.subr.bf16.mxu0 %v8478_v49  ;;  %v8554_v49 = vld [vmem:[%s9641_s25 + $0x9e0] ss:$48 sps:$4 sm:$0xff]  }
 0x1ef   : > { %4207 = vmatpush1.bf16.msra.mxu1 %v8473_v50  ;;  %v8559_v50 = vld [vmem:[%s9641_s25 + $0x103c] ss:$48 sps:$4 sm:$0xff]  }
 0x1f0   : > { %4293 = vmatpush1.bf16.msra.mxu0 %v8476_v52  ;;  %4208 = vmatprep.subr.bf16.mxu1 %v8481_v53  ;;  %v8562_v52 = vld [vmem:[%s9641_s25 + $0xa44] ss:$48 sps:$4 sm:$0xff]   ;;  %v8557_v53 = vld [vmem:[%s9641_s25 + $0x1038] ss:$48 sps:$4 sm:$0xff]  }
 0x1f1   : > { %4294 = vmatprep.subr.bf16.mxu0 %v8484_v54  ;;  %v8560_v54 = vld [vmem:[%s9641_s25 + $0xa40] ss:$48 sps:$4 sm:$0xff]  }
 0x1f3   : > { %4209 = vmatpush1.bf16.msra.mxu1 %v8479_v55  ;;  %v8565_v55 = vld [vmem:[%s9641_s25 + $0x109c] ss:$48 sps:$4 sm:$0xff]  }
 0x1f4   : > { %4295 = vmatpush1.bf16.msra.mxu0 %v8482_v57  ;;  %4210 = vmatprep.subr.bf16.mxu1 %v8487_v58  ;;  %v8568_v57 = vld [vmem:[%s9641_s25 + $0xaa4] ss:$48 sps:$4 sm:$0xff]   ;;  %v8563_v58 = vld [vmem:[%s9641_s25 + $0x1098] ss:$48 sps:$4 sm:$0xff]  }
 0x1f5   : > { %4296 = vmatprep.subr.bf16.mxu0 %v8490_v59  ;;  %v8566_v59 = vld [vmem:[%s9641_s25 + $0xaa0] ss:$48 sps:$4 sm:$0xff]  }
 0x1f7   : > { %4211 = vmatpush1.bf16.msra.mxu1 %v8485_v60  ;;  %v8571_v60 = vld [vmem:[%s9641_s25 + $0x10fc] ss:$48 sps:$4 sm:$0xff]  }
 0x1f8   : > { %4297 = vmatpush1.bf16.msra.mxu0 %v8488_v61  ;;  %4223 = vmatprep.subr.bf16.mxu1 %v8493_v62  ;;  %v8574_v61 = vld [vmem:[%s9641_s25 + $0xb04] ss:$48 sps:$4 sm:$0xff]   ;;  %v8569_v62 = vld [vmem:[%s9641_s25 + $0x10f8] ss:$48 sps:$4 sm:$0xff]  }
 0x1f9   : > { %4309 = vmatprep.subr.bf16.mxu0 %v8496_v63  ;;  %v8572_v63 = vld [vmem:[%s9641_s25 + $0xb00] ss:$48 sps:$4 sm:$0xff]  }
 0x1fa   : > { %4213 = vmatmul.mubr.bf16.vlgmr.msra.gmra.mrb[8].mxu1 %v9726_v16 }
 0x1fb   : > { %4299 = vmatmul.mubr.bf16.vlgmr.msra.gmra.mrb[8].mxu0 %v9722_v13  ;;  %4224 = vmatpush1.bf16.msra.mxu1 %v8491_v3  ;;  %v8577_v3 = vld [vmem:[%s9641_s25 + $0x115c] ss:$48 sps:$4 sm:$0xff]  }
 0x1fc   : > { %4310 = vmatpush1.bf16.msra.mxu0 %v8494_v4  ;;  %4225 = vmatprep.subr.bf16.mxu1 %v8499_v6  ;;  %v8580_v4 = vld [vmem:[%s9641_s25 + $0xb64] ss:$48 sps:$4 sm:$0xff]   ;;  %v8575_v6 = vld [vmem:[%s9641_s25 + $0x1158] ss:$48 sps:$4 sm:$0xff]  }
 0x1fd   : > { %4311 = vmatprep.subr.bf16.mxu0 %v8502_v7  ;;  %4255 = vmatprep.mubr.bf16.mxu1 %v9757_v45  ;;  %v8578_v7 = vld [vmem:[%s9641_s25 + $0xb60] ss:$48 sps:$4 sm:$0xff]  }
 0x1fe   : > { %4341 = vmatprep.mubr.bf16.mxu0 %v9702_v56 }
 0x1ff   : > { %4226 = vmatpush1.bf16.msra.mxu1 %v8497_v8  ;;  %v8583_v8 = vld [vmem:[%s9641_s25 + $0x11bc] ss:$48 sps:$4 sm:$0xff]  }
 0x200   : > { %4312 = vmatpush1.bf16.msra.mxu0 %v8500_v9  ;;  %4227 = vmatprep.subr.bf16.mxu1 %v8505_v10  ;;  %v8586_v9 = vld [vmem:[%s9641_s25 + $0xbc4] ss:$48 sps:$4 sm:$0xff]   ;;  %v8581_v10 = vld [vmem:[%s9641_s25 + $0x11b8] ss:$48 sps:$4 sm:$0xff]  }
 0x201   : > { %4313 = vmatprep.subr.bf16.mxu0 %v8508_v11  ;;  %v8584_v11 = vld [vmem:[%s9641_s25 + $0xbc0] ss:$48 sps:$4 sm:$0xff]  }
 0x203   : > { %4228 = vmatpush1.bf16.msra.mxu1 %v8503_v12  ;;  %v8589_v12 = vld [vmem:[%s9641_s25 + $0xc24] ss:$48 sps:$4 sm:$0xff]  }
 0x204   : > { %4314 = vmatpush1.bf16.msra.mxu0 %v8506_v14  ;;  %4229 = vmatprep.subr.bf16.mxu1 %v8511_v15  ;;  %v8592_v14 = vld [vmem:[%s9641_s25 + $0x2c] ss:$48 sps:$4 sm:$0xff]   ;;  %v8587_v15 = vld [vmem:[%s9641_s25 + $0xc20] ss:$48 sps:$4 sm:$0xff]  }
 0x205   : > { %4315 = vmatprep.subr.bf16.mxu0 %v8514_v17  ;;  %v8590_v17 = vld [vmem:[%s9641_s25 + $0x28] ss:$48 sps:$4 sm:$0xff]  }
 0x207   : > { %4230 = vmatpush1.bf16.msra.mxu1 %v8509_v18  ;;  %v8595_v18 = vld [vmem:[%s9641_s25 + $0xc84] ss:$48 sps:$4 sm:$0xff]  }
 0x208   : > { %4316 = vmatpush1.bf16.msra.mxu0 %v8512_v20  ;;  %4231 = vmatprep.subr.bf16.mxu1 %v8517_v22  ;;  %v8598_v20 = vld [vmem:[%s9641_s25 + $0x8c] ss:$48 sps:$4 sm:$0xff]   ;;  %v8593_v22 = vld [vmem:[%s9641_s25 + $0xc80] ss:$48 sps:$4 sm:$0xff]  }
 0x209   : > { %4317 = vmatprep.subr.bf16.mxu0 %v8520_v25  ;;  %v8596_v25 = vld [vmem:[%s9641_s25 + $0x88] ss:$48 sps:$4 sm:$0xff]  }
 0x20b   : > { %4232 = vmatpush1.bf16.msra.mxu1 %v8515_v26  ;;  %v8601_v26 = vld [vmem:[%s9641_s25 + $0xce4] ss:$48 sps:$4 sm:$0xff]  }
 0x20c   : > { %4318 = vmatpush1.bf16.msra.mxu0 %v8518_v0  ;;  %4233 = vmatprep.subr.bf16.mxu1 %v8523_v1  ;;  %v8604_v0 = vld [vmem:[%s9641_s25 + $0xec] ss:$48 sps:$4 sm:$0xff]   ;;  %v8599_v1 = vld [vmem:[%s9641_s25 + $0xce0] ss:$48 sps:$4 sm:$0xff]  }
 0x20d   : > { %4319 = vmatprep.subr.bf16.mxu0 %v8526_v28  ;;  %v8602_v28 = vld [vmem:[%s9641_s25 + $0xe8] ss:$48 sps:$4 sm:$0xff]  }
 0x20f   : > { %4234 = vmatpush1.bf16.msra.mxu1 %v8521_v2  ;;  %v8607_v2 = vld [vmem:[%s9641_s25 + $0xd44] ss:$48 sps:$4 sm:$0xff]  }
 0x210   : > { %4320 = vmatpush1.bf16.msra.mxu0 %v8524_v29  ;;  %4235 = vmatprep.subr.bf16.mxu1 %v8529_v30  ;;  %v8610_v29 = vld [vmem:[%s9641_s25 + $0x14c] ss:$48 sps:$4 sm:$0xff]   ;;  %v8605_v30 = vld [vmem:[%s9641_s25 + $0xd40] ss:$48 sps:$4 sm:$0xff]  }
 0x211   : > { %4321 = vmatprep.subr.bf16.mxu0 %v8532_v31  ;;  %v8608_v31 = vld [vmem:[%s9641_s25 + $0x148] ss:$48 sps:$4 sm:$0xff]  }
 0x213   : > { %4236 = vmatpush1.bf16.msra.mxu1 %v8527_v5  ;;  %v8613_v5 = vld [vmem:[%s9641_s25 + $0xda4] ss:$48 sps:$4 sm:$0xff]  }
 0x214   : > { %4322 = vmatpush1.bf16.msra.mxu0 %v8530_v32  ;;  %4237 = vmatprep.subr.bf16.mxu1 %v8535_v33  ;;  %v8616_v32 = vld [vmem:[%s9641_s25 + $0x1ac] ss:$48 sps:$4 sm:$0xff]   ;;  %v8614_v33 = vld [vmem:[%s9641_s25 + $0x1a8] ss:$48 sps:$4 sm:$0xff]  }
 0x215   : > { %4323 = vmatprep.subr.bf16.mxu0 %v8538_v34  ;;  %v8619_v34 = vld [vmem:[%s9641_s25 + $0xe04] ss:$48 sps:$4 sm:$0xff]  }
 0x217   : > { %4238 = vmatpush1.bf16.msra.mxu1 %v8533_v35  ;;  %v8622_v35 = vld [vmem:[%s9641_s25 + $0x20c] ss:$48 sps:$4 sm:$0xff]  }
 0x218   : > { %4324 = vmatpush1.bf16.msra.mxu0 %v8536_v36  ;;  %4239 = vmatprep.subr.bf16.mxu1 %v8541_v37  ;;  %v8617_v36 = vld [vmem:[%s9641_s25 + $0xe00] ss:$48 sps:$4 sm:$0xff]   ;;  %v8620_v37 = vld [vmem:[%s9641_s25 + $0x208] ss:$48 sps:$4 sm:$0xff]  }
 0x219   : > { %4325 = vmatprep.subr.bf16.mxu0 %v8544_v38  ;;  %v8625_v38 = vld [vmem:[%s9641_s25 + $0xe64] ss:$48 sps:$4 sm:$0xff]  }
 0x21b   : > { %4240 = vmatpush1.bf16.msra.mxu1 %v8539_v39  ;;  %v8628_v39 = vld [vmem:[%s9641_s25 + $0x26c] ss:$48 sps:$4 sm:$0xff]  }
 0x21c   : > { %4326 = vmatpush1.bf16.msra.mxu0 %v8542_v40  ;;  %4241 = vmatprep.subr.bf16.mxu1 %v8547_v41  ;;  %v8623_v41 = vld [vmem:[%s9641_s25 + $0xe60] ss:$48 sps:$4 sm:$0xff]  }
 0x21d   : > { %4327 = vmatprep.subr.bf16.mxu0 %v8550_v42 }
 0x21f   : > { %4242 = vmatpush1.bf16.msra.mxu1 %v8545_v43 }
 0x220   : > { %4328 = vmatpush1.bf16.msra.mxu0 %v8548_v44  ;;  %4243 = vmatprep.subr.bf16.mxu1 %v8553_v46  ;;  %v8626_v44 = vld [vmem:[%s9641_s25 + $0x268] ss:$48 sps:$4 sm:$0xff]   ;;  %v8631_v46 = vld [vmem:[%s9641_s25 + $0xec4] ss:$48 sps:$4 sm:$0xff]  }
 0x221   : > { %4329 = vmatprep.subr.bf16.mxu0 %v8556_v47 }
 0x223   : > { %4244 = vmatpush1.bf16.msra.mxu1 %v8551_v48  ;;  %v8634_v48 = vld [vmem:[%s9641_s25 + $0x2cc] ss:$48 sps:$4 sm:$0xff]  }
 0x224   : > { %4330 = vmatpush1.bf16.msra.mxu0 %v8554_v49  ;;  %4245 = vmatprep.subr.bf16.mxu1 %v8559_v50  ;;  %v8629_v49 = vld [vmem:[%s9641_s25 + $0xec0] ss:$48 sps:$4 sm:$0xff]   ;;  %v8632_v50 = vld [vmem:[%s9641_s25 + $0x2c8] ss:$48 sps:$4 sm:$0xff]  }
 0x225   : > { %4331 = vmatprep.subr.bf16.mxu0 %v8562_v52  ;;  %v8637_v52 = vld [vmem:[%s9641_s25 + $0xf24] ss:$48 sps:$4 sm:$0xff]  }
 0x227   : > { %4246 = vmatpush1.bf16.msra.mxu1 %v8557_v53  ;;  %v8640_v53 = vld [vmem:[%s9641_s25 + $0x32c] ss:$48 sps:$4 sm:$0xff]  }
 0x228   : > { %4332 = vmatpush1.bf16.msra.mxu0 %v8560_v54  ;;  %4247 = vmatprep.subr.bf16.mxu1 %v8565_v55  ;;  %v8635_v54 = vld [vmem:[%s9641_s25 + $0xf20] ss:$48 sps:$4 sm:$0xff]   ;;  %v8638_v55 = vld [vmem:[%s9641_s25 + $0x328] ss:$48 sps:$4 sm:$0xff]  }
 0x229   : > { %4333 = vmatprep.subr.bf16.mxu0 %v8568_v57  ;;  %v8643_v57 = vld [vmem:[%s9641_s25 + $0xf84] ss:$48 sps:$4 sm:$0xff]  }
 0x22b   : > { %4248 = vmatpush1.bf16.msra.mxu1 %v8563_v58  ;;  %v8646_v58 = vld [vmem:[%s9641_s25 + $0x38c] ss:$48 sps:$4 sm:$0xff]  }
 0x22c   : > { %4334 = vmatpush1.bf16.msra.mxu0 %v8566_v59  ;;  %4249 = vmatprep.subr.bf16.mxu1 %v8571_v60  ;;  %v8641_v59 = vld [vmem:[%s9641_s25 + $0xf80] ss:$48 sps:$4 sm:$0xff]   ;;  %v8644_v60 = vld [vmem:[%s9641_s25 + $0x388] ss:$48 sps:$4 sm:$0xff]  }
 0x22d   : > { %4335 = vmatprep.subr.bf16.mxu0 %v8574_v61  ;;  %v8649_v61 = vld [vmem:[%s9641_s25 + $0xfe4] ss:$48 sps:$4 sm:$0xff]  }
 0x22f   : > { %4250 = vmatpush1.bf16.msra.mxu1 %v8569_v62  ;;  %v8652_v62 = vld [vmem:[%s9641_s25 + $0x3ec] ss:$48 sps:$4 sm:$0xff]  }
 0x230   : > { %4336 = vmatpush1.bf16.msra.mxu0 %v8572_v63  ;;  %4251 = vmatprep.subr.bf16.mxu1 %v8577_v3  ;;  %v8647_v63 = vld [vmem:[%s9641_s25 + $0xfe0] ss:$48 sps:$4 sm:$0xff]   ;;  %v8650_v3 = vld [vmem:[%s9641_s25 + $0x3e8] ss:$48 sps:$4 sm:$0xff]  }
 0x231   : > { %4337 = vmatprep.subr.bf16.mxu0 %v8580_v4  ;;  %v8655_v4 = vld [vmem:[%s9641_s25 + $0x1044] ss:$48 sps:$4 sm:$0xff]  }
 0x233   : > { %4252 = vmatpush1.bf16.msra.mxu1 %v8575_v6  ;;  %v8658_v6 = vld [vmem:[%s9641_s25 + $0x44c] ss:$48 sps:$4 sm:$0xff]  }
 0x234   : > { %4338 = vmatpush1.bf16.msra.mxu0 %v8578_v7  ;;  %4253 = vmatprep.subr.bf16.mxu1 %v8583_v8  ;;  %v8653_v7 = vld [vmem:[%s9641_s25 + $0x1040] ss:$48 sps:$4 sm:$0xff]   ;;  %v8656_v8 = vld [vmem:[%s9641_s25 + $0x448] ss:$48 sps:$4 sm:$0xff]  }
 0x235   : > { %4339 = vmatprep.subr.bf16.mxu0 %v8586_v9  ;;  %v8661_v9 = vld [vmem:[%s9641_s25 + $0x10a4] ss:$48 sps:$4 sm:$0xff]  }
 0x237   : > { %4254 = vmatpush1.bf16.msra.mxu1 %v8581_v10  ;;  %v8664_v10 = vld [vmem:[%s9641_s25 + $0x4ac] ss:$48 sps:$4 sm:$0xff]  }
 0x238   : > { %4340 = vmatpush1.bf16.msra.mxu0 %v8584_v11  ;;  %4395 = vmatprep.subr.bf16.mxu1 %v8592_v14  ;;  %v8659_v11 = vld [vmem:[%s9641_s25 + $0x10a0] ss:$48 sps:$4 sm:$0xff]   ;;  %v8667_v14 = vld [vmem:[%s9641_s25 + $0x1104] ss:$48 sps:$4 sm:$0xff]  }
 0x239   : > { %4352 = vmatprep.subr.bf16.mxu0 %v8589_v12  ;;  %v8662_v12 = vld [vmem:[%s9641_s25 + $0x4a8] ss:$48 sps:$4 sm:$0xff]  }
 0x23a   : > { %4256 = vmatmul.mubr.bf16.vlgmr.msra.gmra.mrb[8].mxu1 %v9796_v24 }
 0x23b   : > { %4342 = vmatmul.mubr.bf16.vlgmr.msra.gmra.mrb[8].mxu0 %v9726_v16  ;;  %4396 = vmatpush1.bf16.msra.mxu1 %v8590_v17  ;;  %v8665_v17 = vld [vmem:[%s9641_s25 + $0x1100] ss:$48 sps:$4 sm:$0xff]  }
 0x23c   : > { %4353 = vmatpush1.bf16.msra.mxu0 %v8587_v15  ;;  %4397 = vmatprep.subr.bf16.mxu1 %v8598_v20  ;;  %v8670_v15 = vld [vmem:[%s9641_s25 + $0x50c] ss:$48 sps:$4 sm:$0xff]   ;;  %v8673_v20 = vld [vmem:[%s9641_s25 + $0x1164] ss:$48 sps:$4 sm:$0xff]  }
 0x23d   : > { %4354 = vmatprep.subr.bf16.mxu0 %v8595_v18  ;;  %4384 = vmatprep.mubr.bf16.mxu0 %v9757_v45  ;;  %v8668_v18 = vld [vmem:[%s9641_s25 + $0x508] ss:$48 sps:$4 sm:$0xff]  }
 0x23e   : > { %4427 = vmatprep.mubr.bf16.mxu1 %v9698_v51  ;;  %v8611_v51 = vld [vmem:[%s9641_s25 + $0xda0] ss:$48 sps:$4 sm:$0xff]  }
 0x23f   : > { %4398 = vmatpush1.bf16.msra.mxu1 %v8596_v25  ;;  %v8671_v25 = vld [vmem:[%s9641_s25 + $0x1160] ss:$48 sps:$4 sm:$0xff]  }
 0x240   : > { %4355 = vmatpush1.bf16.msra.mxu0 %v8593_v22  ;;  %4399 = vmatprep.subr.bf16.mxu1 %v8604_v0  ;;  %v8676_v22 = vld [vmem:[%s9641_s25 + $0x56c] ss:$48 sps:$4 sm:$0xff]   ;;  %v8679_v0 = vld [vmem:[%s9641_s25 + $0x11c4] ss:$48 sps:$4 sm:$0xff]  }
 0x241   : > { %4356 = vmatprep.subr.bf16.mxu0 %v8601_v26  ;;  %v8674_v26 = vld [vmem:[%s9641_s25 + $0x568] ss:$48 sps:$4 sm:$0xff]  }
 0x243   : > { %4400 = vmatpush1.bf16.msra.mxu1 %v8602_v28  ;;  %v8677_v28 = vld [vmem:[%s9641_s25 + $0x11c0] ss:$48 sps:$4 sm:$0xff]  }
 0x244   : > { %4357 = vmatpush1.bf16.msra.mxu0 %v8599_v1  ;;  %4401 = vmatprep.subr.bf16.mxu1 %v8610_v29  ;;  %v8682_v1 = vld [vmem:[%s9641_s25 + $0x5cc] ss:$48 sps:$4 sm:$0xff]  }
 0x245   : > { %4358 = vmatprep.subr.bf16.mxu0 %v8607_v2  ;;  %v8680_v2 = vld [vmem:[%s9641_s25 + $0x5c8] ss:$48 sps:$4 sm:$0xff]   ;;  %v8685_v29 = vld [vmem:[%s9641_s25 + $0x62c] ss:$48 sps:$4 sm:$0xff]  }
 0x247   : > { %4402 = vmatpush1.bf16.msra.mxu1 %v8608_v31  ;;  %v8683_v31 = vld [vmem:[%s9641_s25 + $0x628] ss:$48 sps:$4 sm:$0xff]  }
 0x248   : > { %4359 = vmatpush1.bf16.msra.mxu0 %v8605_v30  ;;  %4403 = vmatprep.subr.bf16.mxu1 %v8616_v32  ;;  %v8757_v30 = vld [vmem:[%s9647_s5 + $0x4] ss:$24 sps:$4 sm:$0xff]   ;;  %v8755_v32 = vld [vmem:[%s9647_s5] ss:$24 sps:$4 sm:$0xff]  }
 0x249   : > { %4360 = vmatprep.subr.bf16.mxu0 %v8613_v5  ;;  %v8688_v5 = vld [vmem:[%s9641_s25 + $0x68c] ss:$48 sps:$4 sm:$0xff]  }
 0x24b   : > { %4404 = vmatpush1.bf16.msra.mxu1 %v8614_v33  ;;  %v8686_v33 = vld [vmem:[%s9641_s25 + $0x688] ss:$48 sps:$4 sm:$0xff]  }
 0x24c   : > { %4361 = vmatpush1.bf16.msra.mxu0 %v8611_v51  ;;  %4405 = vmatprep.subr.bf16.mxu1 %v8622_v35  ;;  %v8763_v51 = vld [vmem:[%s9647_s5 + $0x34] ss:$24 sps:$4 sm:$0xff]   ;;  %v8761_v35 = vld [vmem:[%s9647_s5 + $0x30] ss:$24 sps:$4 sm:$0xff]  }
 0x24d   : > { %4362 = vmatprep.subr.bf16.mxu0 %v8619_v34  ;;  %v10186_v40 = vpop.f32.mrb[4].mxu1  ;;  %v8691_v34 = vld [vmem:[%s9641_s25 + $0x6ec] ss:$48 sps:$4 sm:$0xff]  }
 0x24e   : > { %v10189_v42 = vpop.f32.mrb[5].mxu1 }
 0x24f   : > { %v10191_v43 = vpop.f32.mrb[6].mxu1  ;;  %4406 = vmatpush1.bf16.msra.mxu1 %v8620_v37  ;;  %v8689_v37 = vld [vmem:[%s9641_s25 + $0x6e8] ss:$48 sps:$4 sm:$0xff]  }
 0x250   : > { %4363 = vmatpush1.bf16.msra.mxu0 %v8617_v36  ;;  %v10195_v47 = vpop.f32.mrb[7].mxu1  ;;  %4407 = vmatprep.subr.bf16.mxu1 %v8628_v39  ;;  %v8769_v36 = vld [vmem:[%s9647_s5 + $0x64] ss:$24 sps:$4 sm:$0xff]   ;;  %v8692_v39 = vld [vmem:[%s9641_s25 + $0x748] ss:$48 sps:$4 sm:$0xff]  }
 0x251   : > { %4364 = vmatprep.subr.bf16.mxu0 %v8625_v38  ;;  %v8767_v38 = vld [vmem:[%s9647_s5 + $0x60] ss:$24 sps:$4 sm:$0xff]  }
 0x253   : > { %4408 = vmatpush1.bf16.msra.mxu1 %v8626_v44  ;;  %v8773_v44 = vld [vmem:[%s9647_s5 + $0x90] ss:$24 sps:$4 sm:$0xff]  }
 0x254   : > { %4365 = vmatpush1.bf16.msra.mxu0 %v8623_v41  ;;  %4409 = vmatprep.subr.bf16.mxu1 %v8634_v48  ;;  %v8697_v41 = vld [vmem:[%s9641_s25 + $0x7ac] ss:$48 sps:$4 sm:$0xff]   ;;  %v8695_v48 = vld [vmem:[%s9641_s25 + $0x7a8] ss:$48 sps:$4 sm:$0xff]  }
 0x255   : > { %4366 = vmatprep.subr.bf16.mxu0 %v8631_v46  ;;  %v8781_v46 = vld [vmem:[%s9647_s5 + $0xc4] ss:$24 sps:$4 sm:$0xff]  }
 0x257   : > { %4410 = vmatpush1.bf16.msra.mxu1 %v8632_v50  ;;  %v8779_v50 = vld [vmem:[%s9647_s5 + $0xc0] ss:$24 sps:$4 sm:$0xff]  }
 0x258   : > { %4367 = vmatpush1.bf16.msra.mxu0 %v8629_v49  ;;  %4411 = vmatprep.subr.bf16.mxu1 %v8640_v53  ;;  %v8700_v49 = vld [vmem:[%s9641_s25 + $0x80c] ss:$48 sps:$4 sm:$0xff]   ;;  %v8698_v53 = vld [vmem:[%s9641_s25 + $0x808] ss:$48 sps:$4 sm:$0xff]  }
 0x259   : > { %4368 = vmatprep.subr.bf16.mxu0 %v8637_v52  ;;  %v8787_v52 = vld [vmem:[%s9647_s5 + $0xf4] ss:$24 sps:$4 sm:$0xff]  }
 0x25b   : > { %4412 = vmatpush1.bf16.msra.mxu1 %v8638_v55  ;;  %v8785_v55 = vld [vmem:[%s9647_s5 + $0xf0] ss:$24 sps:$4 sm:$0xff]  }
 0x25c   : > { %4369 = vmatpush1.bf16.msra.mxu0 %v8635_v54  ;;  %4413 = vmatprep.subr.bf16.mxu1 %v8646_v58  ;;  %v8703_v54 = vld [vmem:[%s9641_s25 + $0x86c] ss:$48 sps:$4 sm:$0xff]  }
 0x25d   : > { %4370 = vmatprep.subr.bf16.mxu0 %v8643_v57  ;;  %v8793_v58 = vld [vmem:[%s9647_s5 + $0x124] ss:$24 sps:$4 sm:$0xff]  }
 0x25f   : > { %4414 = vmatpush1.bf16.msra.mxu1 %v8644_v60 }
 0x260   : > { %4371 = vmatpush1.bf16.msra.mxu0 %v8641_v59  ;;  %4415 = vmatprep.subr.bf16.mxu1 %v8652_v62 }
 0x261   : > { %4372 = vmatprep.subr.bf16.mxu0 %v8649_v61  ;;  %v8701_v61 = vld [vmem:[%s9641_s25 + $0x868] ss:$48 sps:$4 sm:$0xff]  }
 0x263   : > { %4416 = vmatpush1.bf16.msra.mxu1 %v8650_v3  ;;  %v8791_v3 = vld [vmem:[%s9647_s5 + $0x120] ss:$24 sps:$4 sm:$0xff]  }
 0x264   : > { %4373 = vmatpush1.bf16.msra.mxu0 %v8647_v63  ;;  %4417 = vmatprep.subr.bf16.mxu1 %v8658_v6  ;;  %v8706_v63 = vld [vmem:[%s9641_s25 + $0x8cc] ss:$48 sps:$4 sm:$0xff]   ;;  %v8704_v6 = vld [vmem:[%s9641_s25 + $0x8c8] ss:$48 sps:$4 sm:$0xff]  }
 0x265   : > { %4374 = vmatprep.subr.bf16.mxu0 %v8655_v4  ;;  %v8799_v4 = vld [vmem:[%s9647_s5 + $0x154] ss:$24 sps:$4 sm:$0xff]  }
 0x267   : > { %4418 = vmatpush1.bf16.msra.mxu1 %v8656_v8  ;;  %v8797_v8 = vld [vmem:[%s9647_s5 + $0x150] ss:$24 sps:$4 sm:$0xff]  }
 0x268   : > { %4375 = vmatpush1.bf16.msra.mxu0 %v8653_v7  ;;  %4419 = vmatprep.subr.bf16.mxu1 %v8664_v10  ;;  %v8709_v7 = vld [vmem:[%s9641_s25 + $0x92c] ss:$48 sps:$4 sm:$0xff]   ;;  %v8707_v10 = vld [vmem:[%s9641_s25 + $0x928] ss:$48 sps:$4 sm:$0xff]  }
 0x269   : > { %4376 = vmatprep.subr.bf16.mxu0 %v8661_v9  ;;  %v8805_v9 = vld [vmem:[%s9647_s5 + $0x184] ss:$24 sps:$4 sm:$0xff]  }
 0x26b   : > { %4420 = vmatpush1.bf16.msra.mxu1 %v8662_v12  ;;  %v8803_v12 = vld [vmem:[%s9647_s5 + $0x180] ss:$24 sps:$4 sm:$0xff]  }
 0x26c   : > { %4377 = vmatpush1.bf16.msra.mxu0 %v8659_v11  ;;  %4421 = vmatprep.subr.bf16.mxu1 %v8670_v15  ;;  %v8712_v11 = vld [vmem:[%s9641_s25 + $0x98c] ss:$48 sps:$4 sm:$0xff]   ;;  %v8710_v15 = vld [vmem:[%s9641_s25 + $0x988] ss:$48 sps:$4 sm:$0xff]  }
 0x26d   : > { %4378 = vmatprep.subr.bf16.mxu0 %v8667_v14  ;;  %v8808_v14 = vld [vmem:[%s9647_s5 + $0x1b4] ss:$24 sps:$4 sm:$0xff]  }
 0x26f   : > { %4422 = vmatpush1.bf16.msra.mxu1 %v8668_v18  ;;  %v8806_v18 = vld [vmem:[%s9647_s5 + $0x1b0] ss:$24 sps:$4 sm:$0xff]  }
 0x270   : > { %4379 = vmatpush1.bf16.msra.mxu0 %v8665_v17  ;;  %4423 = vmatprep.subr.bf16.mxu1 %v8676_v22  ;;  %v8715_v17 = vld [vmem:[%s9641_s25 + $0x9ec] ss:$48 sps:$4 sm:$0xff]   ;;  %v8713_v22 = vld [vmem:[%s9641_s25 + $0x9e8] ss:$48 sps:$4 sm:$0xff]  }
 0x271   : > { %4380 = vmatprep.subr.bf16.mxu0 %v8673_v20  ;;  %v8814_v20 = vld [vmem:[%s9647_s5 + $0x1e4] ss:$24 sps:$4 sm:$0xff]  }
 0x273   : > { %4424 = vmatpush1.bf16.msra.mxu1 %v8674_v26  ;;  %v8812_v26 = vld [vmem:[%s9647_s5 + $0x1e0] ss:$24 sps:$4 sm:$0xff]  }
 0x274   : > { %4381 = vmatpush1.bf16.msra.mxu0 %v8671_v25  ;;  %4425 = vmatprep.subr.bf16.mxu1 %v8682_v1  ;;  %v8718_v25 = vld [vmem:[%s9641_s25 + $0xa4c] ss:$48 sps:$4 sm:$0xff]   ;;  %v8716_v1 = vld [vmem:[%s9641_s25 + $0xa48] ss:$48 sps:$4 sm:$0xff]  }
 0x275   : > { %4382 = vmatprep.subr.bf16.mxu0 %v8679_v0  ;;  %v8820_v0 = vld [vmem:[%s9647_s5 + $0x214] ss:$24 sps:$4 sm:$0xff]  }
 0x277   : > { %4426 = vmatpush1.bf16.msra.mxu1 %v8680_v2  ;;  %v8818_v2 = vld [vmem:[%s9647_s5 + $0x210] ss:$24 sps:$4 sm:$0xff]  }
 0x278   : > { %4383 = vmatpush1.bf16.msra.mxu0 %v8677_v28  ;;  %4438 = vmatprep.subr.bf16.mxu1 %v8685_v29  ;;  %v8721_v28 = vld [vmem:[%s9641_s25 + $0xaac] ss:$48 sps:$4 sm:$0xff]  }
 0x279   : > { %6354 = vmatprep.subr.bf16.mxu0 %v8757_v30  ;;  %v8826_v29 = vld [vmem:[%s9647_s5 + $0x244] ss:$24 sps:$4 sm:$0xff]   ;;  %v8719_v30 = vld [vmem:[%s9641_s25 + $0xaa8] ss:$48 sps:$4 sm:$0xff]  }
 0x27a   : > { %4428 = vmatmul.mubr.bf16.vlgmr.msra.gmra.mrb[12].mxu1 %v9722_v13  ;;  %v8694_v13 = vld [vmem:[%s9641_s25 + $0x74c] ss:$48 sps:$4 sm:$0xff]  }
 0x27b   : > { %4385 = vmatmul.mubr.bf16.vlgmr.msra.gmra.mrb[8].mxu0 %v9796_v24  ;;  %4439 = vmatpush1.bf16.msra.mxu1 %v8683_v31  ;;  %v8724_v31 = vld [vmem:[%s9641_s25 + $0xb0c] ss:$48 sps:$4 sm:$0xff]  }
 0x27c   : > { %4470 = vmatprep.mubr.bf16.mxu1 %v9702_v56  ;;  %4440 = vmatprep.subr.bf16.mxu1 %v8688_v5  ;;  %v8775_v56 = vld [vmem:[%s9647_s5 + $0x94] ss:$24 sps:$4 sm:$0xff]   ;;  %v8824_v5 = vld [vmem:[%s9647_s5 + $0x240] ss:$24 sps:$4 sm:$0xff]  }
 0x27d   : > { %6355 = vmatpush1.bf16.msra.mxu0 %v8755_v32  ;;  %v8832_v32 = vld [vmem:[%s9647_s5 + $0x274] ss:$24 sps:$4 sm:$0xff]  }
 0x27e   : > { %6356 = vmatprep.subr.bf16.mxu0 %v8763_v51  ;;  %v8722_v51 = vld [vmem:[%s9641_s25 + $0xb08] ss:$48 sps:$4 sm:$0xff]  }
 0x27f   : > { %4441 = vmatpush1.bf16.msra.mxu1 %v8686_v33  ;;  %v8727_v33 = vld [vmem:[%s9641_s25 + $0xb6c] ss:$48 sps:$4 sm:$0xff]  }
 0x280   : > { %4442 = vmatprep.subr.bf16.mxu1 %v8691_v34  ;;  %v8830_v34 = vld [vmem:[%s9647_s5 + $0x270] ss:$24 sps:$4 sm:$0xff]  }
 0x281   : > { %6357 = vmatpush1.bf16.msra.mxu0 %v8761_v35  ;;  %v8838_v35 = vld [vmem:[%s9647_s5 + $0x2a4] ss:$24 sps:$4 sm:$0xff]  }
 0x282   : > { %6358 = vmatprep.subr.bf16.mxu0 %v8769_v36  ;;  %v8725_v36 = vld [vmem:[%s9641_s25 + $0xb68] ss:$48 sps:$4 sm:$0xff]  }
 0x283   : > { %4443 = vmatpush1.bf16.msra.mxu1 %v8689_v37  ;;  %v8730_v37 = vld [vmem:[%s9641_s25 + $0xbcc] ss:$48 sps:$4 sm:$0xff]  }
 0x284   : > { %4444 = vmatprep.subr.bf16.mxu1 %v8694_v13  ;;  %v8836_v13 = vld [vmem:[%s9647_s5 + $0x2a0] ss:$24 sps:$4 sm:$0xff]  }
 0x285   : > { %6359 = vmatpush1.bf16.msra.mxu0 %v8767_v38  ;;  %v8844_v38 = vld [vmem:[%s9647_s5 + $0x2d4] ss:$24 sps:$4 sm:$0xff]  }
 0x286   : > { %6360 = vmatprep.subr.bf16.mxu0 %v8775_v56  ;;  %v8728_v56 = vld [vmem:[%s9641_s25 + $0xbc8] ss:$48 sps:$4 sm:$0xff]  }
 0x287   : > { %4445 = vmatpush1.bf16.msra.mxu1 %v8692_v39  ;;  %v8733_v39 = vld [vmem:[%s9641_s25 + $0xc2c] ss:$48 sps:$4 sm:$0xff]  }
 0x288   : > { %4446 = vmatprep.subr.bf16.mxu1 %v8697_v41  ;;  %v8842_v41 = vld [vmem:[%s9647_s5 + $0x2d0] ss:$24 sps:$4 sm:$0xff]  }
 0x289   : > { %6361 = vmatpush1.bf16.msra.mxu0 %v8773_v44  ;;  %v8850_v44 = vld [vmem:[%s9647_s5 + $0x304] ss:$24 sps:$4 sm:$0xff]  }
 0x28a   : > { %6362 = vmatprep.subr.bf16.mxu0 %v8781_v46  ;;  %v8731_v46 = vld [vmem:[%s9641_s25 + $0xc28] ss:$48 sps:$4 sm:$0xff]  }
 0x28b   : > { %4447 = vmatpush1.bf16.msra.mxu1 %v8695_v48  ;;  %v8736_v48 = vld [vmem:[%s9641_s25 + $0xc8c] ss:$48 sps:$4 sm:$0xff]  }
 0x28c   : > { %4448 = vmatprep.subr.bf16.mxu1 %v8700_v49  ;;  %v8734_v49 = vld [vmem:[%s9641_s25 + $0xc88] ss:$48 sps:$4 sm:$0xff]  }
 0x28d   : > { %6363 = vmatpush1.bf16.msra.mxu0 %v8779_v50  ;;  %v8739_v50 = vld [vmem:[%s9641_s25 + $0xcec] ss:$48 sps:$4 sm:$0xff]  }
 0x28e   : > { %v10260_v57 = vpop.f32.mrb[4].mxu0  ;;  %6364 = vmatprep.subr.bf16.mxu0 %v8787_v52  ;;  %v8737_v52 = vld [vmem:[%s9641_s25 + $0xce8] ss:$48 sps:$4 sm:$0xff]  }
 0x28f   : > { %v10263_v59 = vpop.f32.mrb[5].mxu0  ;;  %4449 = vmatpush1.bf16.msra.mxu1 %v8698_v53  ;;  %v8742_v53 = vld [vmem:[%s9641_s25 + $0xd4c] ss:$48 sps:$4 sm:$0xff]  }
 0x290   : > { %v10265_v60 = vpop.f32.mrb[6].mxu0  ;;  %4450 = vmatprep.subr.bf16.mxu1 %v8703_v54  ;;  %v8740_v54 = vld [vmem:[%s9641_s25 + $0xd48] ss:$48 sps:$4 sm:$0xff]  }
 0x291   : > { %v10268_v62 = vpop.f32.mrb[7].mxu0  ;;  %6365 = vmatpush1.bf16.msra.mxu0 %v8785_v55  ;;  %v8743_v55 = vld [vmem:[%s9641_s25 + $0xda8] ss:$48 sps:$4 sm:$0xff]  }
 0x292   : > { %6366 = vmatprep.subr.bf16.mxu0 %v8793_v58  ;;  %v8746_v58 = vld [vmem:[%s9641_s25 + $0xe08] ss:$48 sps:$4 sm:$0xff]  }
 0x293   : > { %4451 = vmatpush1.bf16.msra.mxu1 %v8701_v61  ;;  %v8751_v61 = vld [vmem:[%s9641_s25 + $0xe6c] ss:$48 sps:$4 sm:$0xff]  }
 0x294   : > { %4452 = vmatprep.subr.bf16.mxu1 %v8706_v63  ;;  %v8749_v63 = vld [vmem:[%s9641_s25 + $0xe68] ss:$48 sps:$4 sm:$0xff]  }
 0x295   : > { %6367 = vmatpush1.bf16.msra.mxu0 %v8791_v3  ;;  %v8754_v3 = vld [vmem:[%s9641_s25 + $0xecc] ss:$48 sps:$4 sm:$0xff]  }
 0x296   : > { %6368 = vmatprep.subr.bf16.mxu0 %v8799_v4  ;;  %v8752_v4 = vld [vmem:[%s9641_s25 + $0xec8] ss:$48 sps:$4 sm:$0xff]  }
 0x297   : > { %4453 = vmatpush1.bf16.msra.mxu1 %v8704_v6  ;;  %v8760_v6 = vld [vmem:[%s9641_s25 + $0xf2c] ss:$48 sps:$4 sm:$0xff]  }
 0x298   : > { %4454 = vmatprep.subr.bf16.mxu1 %v8709_v7  ;;  %v8758_v7 = vld [vmem:[%s9641_s25 + $0xf28] ss:$48 sps:$4 sm:$0xff]  }
 0x299   : > { %6369 = vmatpush1.bf16.msra.mxu0 %v8797_v8  ;;  %v8766_v8 = vld [vmem:[%s9641_s25 + $0xf8c] ss:$48 sps:$4 sm:$0xff]  }
 0x29a   : > { %6370 = vmatprep.subr.bf16.mxu0 %v8805_v9  ;;  %v8764_v9 = vld [vmem:[%s9641_s25 + $0xf88] ss:$48 sps:$4 sm:$0xff]  }
 0x29b   : > { %4455 = vmatpush1.bf16.msra.mxu1 %v8707_v10  ;;  %v8772_v10 = vld [vmem:[%s9641_s25 + $0xfec] ss:$48 sps:$4 sm:$0xff]  }
 0x29c   : > { %4456 = vmatprep.subr.bf16.mxu1 %v8712_v11  ;;  %v8770_v11 = vld [vmem:[%s9641_s25 + $0xfe8] ss:$48 sps:$4 sm:$0xff]  }
 0x29d   : > { %6371 = vmatpush1.bf16.msra.mxu0 %v8803_v12  ;;  %v8778_v12 = vld [vmem:[%s9641_s25 + $0x104c] ss:$48 sps:$4 sm:$0xff]  }
 0x29e   : > { %6372 = vmatprep.subr.bf16.mxu0 %v8808_v14  ;;  %v8776_v14 = vld [vmem:[%s9641_s25 + $0x1048] ss:$48 sps:$4 sm:$0xff]  }
 0x29f   : > { %4457 = vmatpush1.bf16.msra.mxu1 %v8710_v15  ;;  %v8784_v15 = vld [vmem:[%s9641_s25 + $0x10ac] ss:$48 sps:$4 sm:$0xff]  }
 0x2a0   : > { %4458 = vmatprep.subr.bf16.mxu1 %v8715_v17  ;;  %v4524_v17 = vsub.f32 0.0, %v10041_v19 }
 0x2a1   : > { %6373 = vmatpush1.bf16.msra.mxu0 %v8806_v18  ;;  %v4525_v18 = vsub.f32 0.0, %v10044_v21 }
 0x2a2   : > { %6374 = vmatprep.subr.bf16.mxu0 %v8814_v20  ;;  %v8782_v20 = vld [vmem:[%s9641_s25 + $0x10a8] ss:$48 sps:$4 sm:$0xff]  }
 0x2a3   : > { %4459 = vmatpush1.bf16.msra.mxu1 %v8713_v22  ;;  %v4530_v22 = vsub.f32 0.0, %v10047_v23 }
 0x2a4   : > { %4460 = vmatprep.subr.bf16.mxu1 %v8718_v25  ;;  %v8790_v25 = vld [vmem:[%s9641_s25 + $0x110c] ss:$48 sps:$4 sm:$0xff]  }
 0x2a5   : > { %6375 = vmatpush1.bf16.msra.mxu0 %v8812_v26  ;;  %v4531_v26 = vsub.f32 0.0, %v10052_v27 }
 0x2a6   : > { %6376 = vmatprep.subr.bf16.mxu0 %v8820_v0  ;;  %v4536_v0 = vmul.f32 1.442695, %v4524_v17 }
 0x2a7   : > { %4461 = vmatpush1.bf16.msra.mxu1 %v8716_v1  ;;  %v4538_v1 = vmul.f32 1.442695, %v4525_v18 }
 0x2a8   : > { %4462 = vmatprep.subr.bf16.mxu1 %v8721_v28  ;;  %v8788_v28 = vld [vmem:[%s9641_s25 + $0x1108] ss:$48 sps:$4 sm:$0xff]   ;;  %9211 = vpow2.f32 %v4536_v0  ;;  %v8862_v0 = vld [vmem:[%s9647_s5 + $0x364] ss:$24 sps:$4 sm:$0xff]  }
 0x2a9   : > { %6377 = vmatpush1.bf16.msra.mxu0 %v8818_v2  ;;  %v4548_v2 = vmul.f32 1.442695, %v4530_v22  ;;  %9213 = vpow2.f32 %v4538_v1  ;;  %v8859_v22 = vld [vmem:[%s9647_s5 + $0x18c] ss:$24 sps:$4 sm:$0xff]   ;;  %v8865_v1 = vld [vmem:[%s9647_s5 + $0x1bc] ss:$24 sps:$4 sm:$0xff]  }
 0x2aa   : > { %6378 = vmatprep.subr.bf16.mxu0 %v8826_v29  ;;  %v8796_v29 = vld [vmem:[%s9641_s25 + $0x116c] ss:$48 sps:$4 sm:$0xff]  }
 0x2ab   : > { %4463 = vmatpush1.bf16.msra.mxu1 %v8719_v30  ;;  %v4550_v30 = vmul.f32 1.442695, %v4531_v26  ;;  %9215 = vpow2.f32 %v4548_v2  ;;  %v8857_v26 = vld [vmem:[%s9647_s5 + $0x188] ss:$24 sps:$4 sm:$0xff]   ;;  %v8863_v2 = vld [vmem:[%s9647_s5 + $0x1b8] ss:$24 sps:$4 sm:$0xff]  }
 0x2ac   : > { %4464 = vmatprep.subr.bf16.mxu1 %v8724_v31  ;;  %v8794_v31 = vld [vmem:[%s9641_s25 + $0x1168] ss:$48 sps:$4 sm:$0xff]  }
 0x2ad   : > { %6379 = vmatpush1.bf16.msra.mxu0 %v8824_v5  ;;  %v8802_v5 = vld [vmem:[%s9641_s25 + $0x11cc] ss:$48 sps:$4 sm:$0xff]   ;;  %9217 = vpow2.f32 %v4550_v30 }
 0x2ae   : > { %6380 = vmatprep.subr.bf16.mxu0 %v8832_v32  ;;  %v8800_v32 = vld [vmem:[%s9641_s25 + $0x11c8] ss:$48 sps:$4 sm:$0xff]   ;;  %v8871_v30 = vld [vmem:[%s9647_s5 + $0x1ec] ss:$24 sps:$4 sm:$0xff]  }
 0x2af   : > { %4465 = vmatpush1.bf16.msra.mxu1 %v8722_v51  ;;  %v8811_v51 = vld [vmem:[%s9647_s5 + $0xc] ss:$24 sps:$4 sm:$0xff]  }
 0x2b0   : > { %4466 = vmatprep.subr.bf16.mxu1 %v8727_v33  ;;  %v8809_v33 = vld [vmem:[%s9647_s5 + $0x8] ss:$24 sps:$4 sm:$0xff]  }
 0x2b1   : > { %6381 = vmatpush1.bf16.msra.mxu0 %v8830_v34 }
 0x2b2   : > { %6382 = vmatprep.subr.bf16.mxu0 %v8838_v35  ;;  %v9212_v34 = vpop.eup %9211  ;;  %v8817_v35 = vld [vmem:[%s9647_s5 + $0x3c] ss:$24 sps:$4 sm:$0xff]  }
 0x2b3   : > { %4467 = vmatpush1.bf16.msra.mxu1 %v8725_v36  ;;  %v9214_v36 = vpop.eup %9213 }
 0x2b4   : > { %4468 = vmatprep.subr.bf16.mxu1 %v8730_v37 }
 0x2b5   : > { %6383 = vmatpush1.bf16.msra.mxu0 %v8836_v13  ;;  %v9216_v37 = vpop.eup %9215 }
 0x2b6   : > { %6384 = vmatprep.subr.bf16.mxu0 %v8844_v38  ;;  %v4560_v38 = vadd.f32 1.0, %v9212_v34  ;;  %v8875_v34 = vld [vmem:[%s9647_s5 + $0x218] ss:$24 sps:$4 sm:$0xff]  }
 0x2b7   : > { %4469 = vmatpush1.bf16.msra.mxu1 %v8728_v56  ;;  %v9218_v13 = vpop.eup %9217  ;;  %v8815_v56 = vld [vmem:[%s9647_s5 + $0x38] ss:$24 sps:$4 sm:$0xff]  }
 0x2b8   : > { %4481 = vmatprep.subr.bf16.mxu1 %v8733_v39  ;;  %v4561_v39 = vadd.f32 1.0, %v9214_v36  ;;  %9219 = vrcp.f32 %v4560_v38  ;;  %v8883_v36 = vld [vmem:[%s9647_s5 + $0x24c] ss:$24 sps:$4 sm:$0xff]   ;;  %v8878_v38 = vld [vmem:[%s9647_s5 + $0x3f0] ss:$24 sps:$4 sm:$0xff]  }
 0x2b9   : > { %6385 = vmatpush1.bf16.msra.mxu0 %v8842_v41  ;;  %v8823_v41 = vld [vmem:[%s9647_s5 + $0x6c] ss:$24 sps:$4 sm:$0xff]  }
 0x2ba   : > { %6397 = vmatprep.subr.bf16.mxu0 %v8850_v44  ;;  %4471 = vmatmul.mubr.bf16.vlgmr.msra.gmra.mrb[12].mxu1 %v9726_v16  ;;  %v8745_v16 = vld [vmem:[%s9641_s25 + $0xdac] ss:$48 sps:$4 sm:$0xff]   ;;  %v4566_v44 = vadd.f32 1.0, %v9216_v37  ;;  %9221 = vrcp.f32 %v4561_v39  ;;  %v4526_v37 = vsub.f32 0.0, %v10186_v40  ;;  %v4532_v39 = vsub.f32 0.0, %v10191_v43 }
 0x2bb   : > { %4482 = vmatpush1.bf16.msra.mxu1 %v8731_v46  ;;  %4513 = vmatprep.mubr.bf16.mxu1 %v9757_v45  ;;  %v8748_v45 = vld [vmem:[%s9641_s25 + $0xe0c] ss:$48 sps:$4 sm:$0xff]   ;;  %v4567_v46 = vadd.f32 1.0, %v9218_v13  ;;  %v4527_v13 = vsub.f32 0.0, %v10189_v42 }
 0x2bc   : > { %4483 = vmatprep.subr.bf16.mxu1 %v8736_v48  ;;  %v8821_v48 = vld [vmem:[%s9647_s5 + $0x68] ss:$24 sps:$4 sm:$0xff]   ;;  %9223 = vrcp.f32 %v4566_v44  ;;  %v8889_v44 = vld [vmem:[%s9647_s5 + $0x27c] ss:$24 sps:$4 sm:$0xff]  }
 0x2bd   : > { %9225 = vrcp.f32 %v4567_v46  ;;  %v4533_v46 = vsub.f32 0.0, %v10195_v47 }
 0x2bf   : > { %4484 = vmatpush1.bf16.msra.mxu1 %v8734_v49  ;;  %v8827_v49 = vld [vmem:[%s9647_s5 + $0x98] ss:$24 sps:$4 sm:$0xff]  }
 0x2c0   : > { %4485 = vmatprep.subr.bf16.mxu1 %v8739_v50  ;;  %v8835_v50 = vld [vmem:[%s9647_s5 + $0xcc] ss:$24 sps:$4 sm:$0xff]  }
 0x2c3   : > { %4486 = vmatpush1.bf16.msra.mxu1 %v8737_v52  ;;  %v8833_v52 = vld [vmem:[%s9647_s5 + $0xc8] ss:$24 sps:$4 sm:$0xff]  }
 0x2c4   : > { %4487 = vmatprep.subr.bf16.mxu1 %v8742_v53  ;;  %v8841_v53 = vld [vmem:[%s9647_s5 + $0xfc] ss:$24 sps:$4 sm:$0xff]  }
 0x2c7   : > { %4488 = vmatpush1.bf16.msra.mxu1 %v8740_v54  ;;  %v9220_v54 = vpop.eup %9219 }
 0x2c8   : > { %4489 = vmatprep.subr.bf16.mxu1 %v8745_v16  ;;  %v9222_v16 = vpop.eup %9221 }
 0x2cb   : > { %4490 = vmatpush1.bf16.msra.mxu1 %v8743_v55  ;;  %v9224_v55 = vpop.eup %9223 }
 0x2cc   : > { %4491 = vmatprep.subr.bf16.mxu1 %v8748_v45  ;;  %v8839_v45 = vld [vmem:[%s9647_s5 + $0xf8] ss:$24 sps:$4 sm:$0xff]  }
 0x2cf   : > { %4492 = vmatpush1.bf16.msra.mxu1 %v8746_v58  ;;  %v9226_v58 = vpop.eup %9225 }
 0x2d0   : > { %4493 = vmatprep.subr.bf16.mxu1 %v8751_v61  ;;  %v4584_v61 = vmul.f32 %v9220_v54, %v10041_v19  ;;  %v8845_v19 = vld [vmem:[%s9647_s5 + $0x128] ss:$24 sps:$4 sm:$0xff]   ;;  %v8895_v54 = vld [vmem:[%s9647_s5 + $0x2ac] ss:$24 sps:$4 sm:$0xff]  }
 0x2d3   : > { %4494 = vmatpush1.bf16.msra.mxu1 %v8749_v63  ;;  %v8847_v63 = vld [vmem:[%s9647_s5 + $0x12c] ss:$24 sps:$4 sm:$0xff]  }
 0x2d4   : > { %4495 = vmatprep.subr.bf16.mxu1 %v8754_v3 }
 0x2d7   : > { %4496 = vmatpush1.bf16.msra.mxu1 %v8752_v4  ;;  %v4585_v4 = vmul.f32 %v9222_v16, %v10044_v21  ;;  %v4554_v16 = vmul.f32 1.442695, %v4533_v46 }
 0x2d8   : > { %4497 = vmatprep.subr.bf16.mxu1 %v8760_v6 }
 0x2db   : > { %4498 = vmatpush1.bf16.msra.mxu1 %v8758_v7 }
 0x2dc   : > { %4499 = vmatprep.subr.bf16.mxu1 %v8766_v8  ;;  %v4590_v8 = vmul.f32 %v9224_v55, %v10047_v23  ;;  %v8848_v23 = vld [vmem:[%s9647_s5 + $0x300] ss:$24 sps:$4 sm:$0xff]   ;;  %v8890_v55 = vld [vmem:[%s9647_s5 + $0x450] ss:$24 sps:$4 sm:$0xff]  }
 0x2df   : > { %4500 = vmatpush1.bf16.msra.mxu1 %v8764_v9 }
 0x2e0   : > { %4501 = vmatprep.subr.bf16.mxu1 %v8772_v10 }
 0x2e3   : > { %4502 = vmatpush1.bf16.msra.mxu1 %v8770_v11  ;;  %v4591_v11 = vmul.f32 %v9226_v58, %v10052_v27  ;;  %v8856_v27 = vld [vmem:[%s9647_s5 + $0x334] ss:$24 sps:$4 sm:$0xff]   ;;  %v8898_v58 = vld [vmem:[%s9647_s5 + $0x484] ss:$24 sps:$4 sm:$0xff]  }
 0x2e4   : > { %4503 = vmatprep.subr.bf16.mxu1 %v8778_v12 }
 0x2e7   : > { %4504 = vmatpush1.bf16.msra.mxu1 %v8776_v14 }
 0x2e8   : > { %4505 = vmatprep.subr.bf16.mxu1 %v8784_v15  ;;  %v8853_v15 = vld [vmem:[%s9647_s5 + $0x15c] ss:$24 sps:$4 sm:$0xff]  }
 0x2eb   : > { %4506 = vmatpush1.bf16.msra.mxu1 %v8782_v20  ;;  %v8851_v20 = vld [vmem:[%s9647_s5 + $0x158] ss:$24 sps:$4 sm:$0xff]  }
 0x2ec   : > { %4507 = vmatprep.subr.bf16.mxu1 %v8790_v25  ;;  %v8854_v25 = vld [vmem:[%s9647_s5 + $0x330] ss:$24 sps:$4 sm:$0xff]  }
 0x2ef   : > { %4508 = vmatpush1.bf16.msra.mxu1 %v8788_v28  ;;  %v8860_v28 = vld [vmem:[%s9647_s5 + $0x360] ss:$24 sps:$4 sm:$0xff]  }
 0x2f0   : > { %4509 = vmatprep.subr.bf16.mxu1 %v8796_v29  ;;  %v8868_v29 = vld [vmem:[%s9647_s5 + $0x394] ss:$24 sps:$4 sm:$0xff]  }
 0x2f3   : > { %4510 = vmatpush1.bf16.msra.mxu1 %v8794_v31  ;;  %v8866_v31 = vld [vmem:[%s9647_s5 + $0x390] ss:$24 sps:$4 sm:$0xff]  }
 0x2f4   : > { %4511 = vmatprep.subr.bf16.mxu1 %v8802_v5  ;;  %v8869_v5 = vld [vmem:[%s9647_s5 + $0x1e8] ss:$24 sps:$4 sm:$0xff]  }
 0x2f7   : > { %4512 = vmatpush1.bf16.msra.mxu1 %v8800_v32  ;;  %v8874_v32 = vld [vmem:[%s9647_s5 + $0x3c4] ss:$24 sps:$4 sm:$0xff]  }
 0x2f8   : > { %6483 = vmatprep.subr.bf16.mxu1 %v8811_v51  ;;  %v8877_v51 = vld [vmem:[%s9647_s5 + $0x21c] ss:$24 sps:$4 sm:$0xff]  }
 0x2fa   : > { %4514 = vmatmul.mubr.bf16.vlgmr.msra.gmra.mrb[12].mxu1 %v9796_v24  ;;  %v8829_v24 = vld [vmem:[%s9647_s5 + $0x9c] ss:$24 sps:$4 sm:$0xff]  }
 0x2fb   : > { %6484 = vmatpush1.bf16.msra.mxu1 %v8809_v33  ;;  %v8872_v33 = vld [vmem:[%s9647_s5 + $0x3c0] ss:$24 sps:$4 sm:$0xff]  }
 0x2fc   : > { %6485 = vmatprep.subr.bf16.mxu1 %v8817_v35  ;;  %v8880_v35 = vld [vmem:[%s9647_s5 + $0x3f4] ss:$24 sps:$4 sm:$0xff]  }
 0x2ff   : > { %6486 = vmatpush1.bf16.msra.mxu1 %v8815_v56  ;;  %v8881_v56 = vld [vmem:[%s9647_s5 + $0x248] ss:$24 sps:$4 sm:$0xff]  }
 0x300   : > { %6487 = vmatprep.subr.bf16.mxu1 %v8823_v41  ;;  %v8886_v41 = vld [vmem:[%s9647_s5 + $0x424] ss:$24 sps:$4 sm:$0xff]  }
 0x303   : > { %6488 = vmatpush1.bf16.msra.mxu1 %v8821_v48  ;;  %v4540_v48 = vmul.f32 1.442695, %v4526_v37 }
 0x304   : > { %6489 = vmatprep.subr.bf16.mxu1 %v8829_v24  ;;  %v4542_v24 = vmul.f32 1.442695, %v4527_v13  ;;  %v8932_v13 = vld [vmem:[%s9647_s5 + $0x5a0] ss:$24 sps:$4 sm:$0xff]  }
 0x305   : > { %9227 = vpow2.f32 %v4540_v48 }
 0x306   : > { %9229 = vpow2.f32 %v4542_v24 }
 0x307   : > { %6490 = vmatpush1.bf16.msra.mxu1 %v8827_v49  ;;  %v8884_v49 = vld [vmem:[%s9647_s5 + $0x420] ss:$24 sps:$4 sm:$0xff]  }
 0x308   : > { %6491 = vmatprep.subr.bf16.mxu1 %v8835_v50  ;;  %v8887_v50 = vld [vmem:[%s9647_s5 + $0x278] ss:$24 sps:$4 sm:$0xff]  }
 0x30b   : > { %6492 = vmatpush1.bf16.msra.mxu1 %v8833_v52  ;;  %v4552_v52 = vmul.f32 1.442695, %v4532_v39 }
 0x30c   : > { %6493 = vmatprep.subr.bf16.mxu1 %v8841_v53  ;;  %v8892_v53 = vld [vmem:[%s9647_s5 + $0x454] ss:$24 sps:$4 sm:$0xff]  }
 0x30d   : > { %v4257_v3 = vpop.f32.mrb[8].mxu1  ;;  %9231 = vpow2.f32 %v4552_v52 }
 0x30e   : > { %v4596_v6 = vmul.f32 %v4584_v61, %v4257_v3  ;;  %v4259_v7 = vpop.f32.mrb[9].mxu1  ;;  %v8901_v61 = vld [vmem:[%s9647_s5 + $0x2dc] ss:$24 sps:$4 sm:$0xff]   ;;  %9233 = vpow2.f32 %v4554_v16  ;;  %v8899_v3 = vld [vmem:[%s9647_s5 + $0x2d8] ss:$24 sps:$4 sm:$0xff]  }
 0x30f   : > { %v4597_v9 = vmul.f32 %v4585_v4, %v4259_v7  ;;  %v4261_v10 = vpop.f32.mrb[10].mxu1  ;;  %6494 = vmatpush1.bf16.msra.mxu1 %v8839_v45  ;;  %v8893_v45 = vld [vmem:[%s9647_s5 + $0x2a8] ss:$24 sps:$4 sm:$0xff]   ;;  %v8904_v4 = vld [vmem:[%s9647_s5 + $0x4b4] ss:$24 sps:$4 sm:$0xff]  }
 0x310   : > { %v4602_v12 = vmul.f32 %v4590_v8, %v4261_v10  ;;  %v4263_v14 = vpop.f32.mrb[11].mxu1  ;;  %6495 = vmatprep.subr.bf16.mxu1 %v8847_v63  ;;  %v8896_v63 = vld [vmem:[%s9647_s5 + $0x480] ss:$24 sps:$4 sm:$0xff]   ;;  %v8902_v7 = vld [vmem:[%s9647_s5 + $0x4b0] ss:$24 sps:$4 sm:$0xff]  }
 0x311   : > { %v4603_v21 = vmul.f32 %v4591_v11, %v4263_v14  ;;  %v8905_v8 = vld [vmem:[%s9647_s5 + $0x308] ss:$24 sps:$4 sm:$0xff]   ;;  %v8910_v10 = vld [vmem:[%s9647_s5 + $0x4e4] ss:$24 sps:$4 sm:$0xff]  }
 0x312   : > { %v10366_v17 = vpack.c.bf16 %v4602_v12, %v4596_v6  ;;  %v8907_v6 = vld [vmem:[%s9647_s5 + $0x30c] ss:$24 sps:$4 sm:$0xff]   ;;  %v8913_v11 = vld [vmem:[%s9647_s5 + $0x33c] ss:$24 sps:$4 sm:$0xff]   ;;  %v8941_v16 = vld [vmem:[%s9647_s5 + $0x428] ss:$24 sps:$4 sm:$0xff]  }
 0x313   : > { %v10368_v18 = vpack.c.bf16 %v4603_v21, %v4597_v9  ;;  %6496 = vmatpush1.bf16.msra.mxu1 %v8845_v19  ;;  %v9228_v9 = vpop.eup %9227  ;;  %v8908_v21 = vld [vmem:[%s9647_s5 + $0x4e0] ss:$24 sps:$4 sm:$0xff]  }
 0x314   : > { %6497 = vmatprep.subr.bf16.mxu1 %v8853_v15  ;;  %v9230_v19 = vpop.eup %9229  ;;  %v4562_v15 = vadd.f32 1.0, %v9228_v9  ;;  %v8952_v9 = vld [vmem:[%s9647_s5 + $0x4bc] ss:$24 sps:$4 sm:$0xff]  }
 0x315   : > { %6386 = vmatprep.mubr.bf16.mxu0 %v10368_v18  ;;  %6515 = vmatprep.mubr.bf16.mxu1 %v10368_v18 }
 0x316   : > { %6387 = vmatmul.mubr.bf16.vlgmr.msra.gmra.mrb[12].mxu0 %v10366_v17  ;;  %9235 = vrcp.f32 %v4562_v15  ;;  %v8953_v15 = vld [vmem:[%s9647_s5 + $0x4e8] ss:$24 sps:$4 sm:$0xff]  }
 0x317   : > { %6398 = vmatpush1.bf16.msra.mxu0 %v8848_v23  ;;  %6498 = vmatpush1.bf16.msra.mxu1 %v8851_v20  ;;  %v9232_v12 = vpop.eup %9231  ;;  %v8911_v23 = vld [vmem:[%s9647_s5 + $0x338] ss:$24 sps:$4 sm:$0xff]   ;;  %v4563_v20 = vadd.f32 1.0, %v9230_v19 }
 0x318   : > { %6399 = vmatprep.subr.bf16.mxu0 %v8856_v27  ;;  %6499 = vmatprep.subr.bf16.mxu1 %v8859_v22  ;;  %v9234_v14 = vpop.eup %9233  ;;  %v8916_v27 = vld [vmem:[%s9647_s5 + $0x514] ss:$24 sps:$4 sm:$0xff]   ;;  %v8983_v19 = vld [vmem:[%s9647_s5 + $0x660] ss:$24 sps:$4 sm:$0xff]  }
 0x319   : > { %v8919_v22 = vld [vmem:[%s9647_s5 + $0x36c] ss:$24 sps:$4 sm:$0xff]   ;;  %9237 = vrcp.f32 %v4563_v20 }
 0x31a   : > { %v8997_v20 = vld [vmem:[%s9647_s5 + $0x6c4] ss:$24 sps:$4 sm:$0xff]  }
 0x31b   : > { %6400 = vmatpush1.bf16.msra.mxu0 %v8854_v25  ;;  %6500 = vmatpush1.bf16.msra.mxu1 %v8857_v26  ;;  %v4568_v25 = vadd.f32 1.0, %v9232_v12  ;;  %v4569_v26 = vadd.f32 1.0, %v9234_v14  ;;  %v8955_v12 = vld [vmem:[%s9647_s5 + $0x4ec] ss:$24 sps:$4 sm:$0xff]  }
 0x31c   : > { %6401 = vmatprep.subr.bf16.mxu0 %v8862_v0  ;;  %6501 = vmatprep.subr.bf16.mxu1 %v8865_v1  ;;  %v8914_v0 = vld [vmem:[%s9647_s5 + $0x510] ss:$24 sps:$4 sm:$0xff]   ;;  %v8991_v14 = vld [vmem:[%s9647_s5 + $0x694] ss:$24 sps:$4 sm:$0xff]  }
 0x31d   : > { %v8917_v1 = vld [vmem:[%s9647_s5 + $0x368] ss:$24 sps:$4 sm:$0xff]   ;;  %9239 = vrcp.f32 %v4568_v25  ;;  %v8961_v25 = vld [vmem:[%s9647_s5 + $0x54c] ss:$24 sps:$4 sm:$0xff]  }
 0x31e   : > { %9241 = vrcp.f32 %v4569_v26  ;;  %v9003_v26 = vld [vmem:[%s9647_s5 + $0x6f4] ss:$24 sps:$4 sm:$0xff]  }
 0x31f   : > { %6402 = vmatpush1.bf16.msra.mxu0 %v8860_v28  ;;  %6502 = vmatpush1.bf16.msra.mxu1 %v8863_v2  ;;  %v8922_v28 = vld [vmem:[%s9647_s5 + $0x544] ss:$24 sps:$4 sm:$0xff]  }
 0x320   : > { %6403 = vmatprep.subr.bf16.mxu0 %v8868_v29  ;;  %6503 = vmatprep.subr.bf16.mxu1 %v8871_v30  ;;  %v8925_v2 = vld [vmem:[%s9647_s5 + $0x39c] ss:$24 sps:$4 sm:$0xff]   ;;  %v8920_v29 = vld [vmem:[%s9647_s5 + $0x540] ss:$24 sps:$4 sm:$0xff]  }
 0x321   : > { %v8923_v30 = vld [vmem:[%s9647_s5 + $0x398] ss:$24 sps:$4 sm:$0xff]  }
 0x323   : > { %6404 = vmatpush1.bf16.msra.mxu0 %v8866_v31  ;;  %6504 = vmatpush1.bf16.msra.mxu1 %v8869_v5  ;;  %v8928_v31 = vld [vmem:[%s9647_s5 + $0x574] ss:$24 sps:$4 sm:$0xff]  }
 0x324   : > { %6405 = vmatprep.subr.bf16.mxu0 %v8874_v32  ;;  %6505 = vmatprep.subr.bf16.mxu1 %v8877_v51  ;;  %v8931_v5 = vld [vmem:[%s9647_s5 + $0x3cc] ss:$24 sps:$4 sm:$0xff]   ;;  %v8926_v32 = vld [vmem:[%s9647_s5 + $0x570] ss:$24 sps:$4 sm:$0xff]  }
 0x325   : > { %v8929_v51 = vld [vmem:[%s9647_s5 + $0x3c8] ss:$24 sps:$4 sm:$0xff]  }
 0x327   : > { %6406 = vmatpush1.bf16.msra.mxu0 %v8872_v33  ;;  %6506 = vmatpush1.bf16.msra.mxu1 %v8875_v34  ;;  %v8934_v33 = vld [vmem:[%s9647_s5 + $0x5a4] ss:$24 sps:$4 sm:$0xff]  }
 0x328   : > { %6407 = vmatprep.subr.bf16.mxu0 %v8880_v35  ;;  %6507 = vmatprep.subr.bf16.mxu1 %v8883_v36  ;;  %v8937_v34 = vld [vmem:[%s9647_s5 + $0x3fc] ss:$24 sps:$4 sm:$0xff]   ;;  %v9236_v35 = vpop.eup %9235 }
 0x329   : > { %v9238_v36 = vpop.eup %9237  ;;  %v4586_v39 = vmul.f32 %v9236_v35, %v10186_v40  ;;  %v8938_v40 = vld [vmem:[%s9647_s5 + $0x5d0] ss:$24 sps:$4 sm:$0xff]  }
 0x32a   : > { %v9240_v37 = vpop.eup %9239  ;;  %v4587_v46 = vmul.f32 %v9238_v36, %v10189_v42  ;;  %v8968_v35 = vld [vmem:[%s9647_s5 + $0x5d8] ss:$24 sps:$4 sm:$0xff]  }
 0x32b   : > { %6408 = vmatpush1.bf16.msra.mxu0 %v8878_v38  ;;  %6508 = vmatpush1.bf16.msra.mxu1 %v8881_v56  ;;  %v8935_v38 = vld [vmem:[%s9647_s5 + $0x3f8] ss:$24 sps:$4 sm:$0xff]   ;;  %v9242_v56 = vpop.eup %9241  ;;  %v4592_v24 = vmul.f32 %v9240_v37, %v10191_v43  ;;  %v8973_v43 = vld [vmem:[%s9647_s5 + $0x604] ss:$24 sps:$4 sm:$0xff]  }
 0x32c   : > { %6409 = vmatprep.subr.bf16.mxu0 %v8886_v41  ;;  %6509 = vmatprep.subr.bf16.mxu1 %v8889_v44  ;;  %v8940_v41 = vld [vmem:[%s9647_s5 + $0x5d4] ss:$24 sps:$4 sm:$0xff]   ;;  %v4593_v52 = vmul.f32 %v9242_v56, %v10195_v47  ;;  %v9019_v36 = vld [vmem:[%s9647_s5 + $0x780] ss:$24 sps:$4 sm:$0xff]   ;;  %v9025_v56 = vld [vmem:[%s9647_s5 + $0x7b0] ss:$24 sps:$4 sm:$0xff]  }
 0x32d   : > { %v8943_v44 = vld [vmem:[%s9647_s5 + $0x42c] ss:$24 sps:$4 sm:$0xff]  }
 0x32e   : > { %v8976_v37 = vld [vmem:[%s9647_s5 + $0x60c] ss:$24 sps:$4 sm:$0xff]  }
 0x32f   : > { %6410 = vmatpush1.bf16.msra.mxu0 %v8884_v49  ;;  %6510 = vmatpush1.bf16.msra.mxu1 %v8887_v50 }
 0x330   : > { %6411 = vmatprep.subr.bf16.mxu0 %v8892_v53  ;;  %6511 = vmatprep.subr.bf16.mxu1 %v8895_v54 }
 0x333   : > { %6412 = vmatpush1.bf16.msra.mxu0 %v8890_v55  ;;  %6512 = vmatpush1.bf16.msra.mxu1 %v8893_v45  ;;  %v8946_v45 = vld [vmem:[%s9647_s5 + $0x45c] ss:$24 sps:$4 sm:$0xff]  }
 0x334   : > { %6413 = vmatprep.subr.bf16.mxu0 %v8898_v58  ;;  %6513 = vmatprep.subr.bf16.mxu1 %v8901_v61 }
 0x337   : > { %6414 = vmatpush1.bf16.msra.mxu0 %v8896_v63  ;;  %6514 = vmatpush1.bf16.msra.mxu1 %v8899_v3  ;;  %v8944_v63 = vld [vmem:[%s9647_s5 + $0x458] ss:$24 sps:$4 sm:$0xff]  }
 0x338   : > { %6415 = vmatprep.subr.bf16.mxu0 %v8904_v4  ;;  %6526 = vmatprep.subr.bf16.mxu1 %v8907_v6  ;;  %v8971_v3 = vld [vmem:[%s9647_s5 + $0x600] ss:$24 sps:$4 sm:$0xff]   ;;  %v8949_v4 = vld [vmem:[%s9647_s5 + $0x48c] ss:$24 sps:$4 sm:$0xff]  }
 0x339   : > { %v8979_v6 = vld [vmem:[%s9647_s5 + $0x634] ss:$24 sps:$4 sm:$0xff]  }
 0x33a   : > { %6516 = vmatmul.mubr.bf16.vlgmr.msra.gmra.mrb[16].mxu1 %v10366_v17 }
 0x33b   : > { %6416 = vmatpush1.bf16.msra.mxu0 %v8902_v7  ;;  %6527 = vmatpush1.bf16.msra.mxu1 %v8905_v8  ;;  %v8947_v7 = vld [vmem:[%s9647_s5 + $0x488] ss:$24 sps:$4 sm:$0xff]  }
 0x33c   : > { %6417 = vmatprep.subr.bf16.mxu0 %v8910_v10  ;;  %6528 = vmatprep.subr.bf16.mxu1 %v8913_v11  ;;  %v8977_v8 = vld [vmem:[%s9647_s5 + $0x630] ss:$24 sps:$4 sm:$0xff]   ;;  %v8985_v10 = vld [vmem:[%s9647_s5 + $0x664] ss:$24 sps:$4 sm:$0xff]  }
 0x33d   : > { %v8950_v11 = vld [vmem:[%s9647_s5 + $0x4b8] ss:$24 sps:$4 sm:$0xff]  }
 0x33f   : > { %6418 = vmatpush1.bf16.msra.mxu0 %v8908_v21  ;;  %6529 = vmatpush1.bf16.msra.mxu1 %v8911_v23  ;;  %v8989_v21 = vld [vmem:[%s9647_s5 + $0x690] ss:$24 sps:$4 sm:$0xff]   ;;  %v8958_v23 = vld [vmem:[%s9647_s5 + $0x51c] ss:$24 sps:$4 sm:$0xff]  }
 0x340   : > { %6419 = vmatprep.subr.bf16.mxu0 %v8916_v27  ;;  %6530 = vmatprep.subr.bf16.mxu1 %v8919_v22  ;;  %v8956_v27 = vld [vmem:[%s9647_s5 + $0x518] ss:$24 sps:$4 sm:$0xff]  }
 0x341   : > { %v8995_v22 = vld [vmem:[%s9647_s5 + $0x6c0] ss:$24 sps:$4 sm:$0xff]  }
 0x343   : > { %6420 = vmatpush1.bf16.msra.mxu0 %v8914_v0  ;;  %6531 = vmatpush1.bf16.msra.mxu1 %v8917_v1  ;;  %v8959_v0 = vld [vmem:[%s9647_s5 + $0x548] ss:$24 sps:$4 sm:$0xff]  }
 0x344   : > { %6421 = vmatprep.subr.bf16.mxu0 %v8922_v28  ;;  %6532 = vmatprep.subr.bf16.mxu1 %v8925_v2  ;;  %v9001_v1 = vld [vmem:[%s9647_s5 + $0x6f0] ss:$24 sps:$4 sm:$0xff]   ;;  %v8964_v28 = vld [vmem:[%s9647_s5 + $0x57c] ss:$24 sps:$4 sm:$0xff]  }
 0x345   : > { %v9009_v2 = vld [vmem:[%s9647_s5 + $0x724] ss:$24 sps:$4 sm:$0xff]  }
 0x347   : > { %6422 = vmatpush1.bf16.msra.mxu0 %v8920_v29  ;;  %6533 = vmatpush1.bf16.msra.mxu1 %v8923_v30  ;;  %v8962_v29 = vld [vmem:[%s9647_s5 + $0x578] ss:$24 sps:$4 sm:$0xff]  }
 0x348   : > { %6423 = vmatprep.subr.bf16.mxu0 %v8928_v31  ;;  %6534 = vmatprep.subr.bf16.mxu1 %v8931_v5  ;;  %v9007_v30 = vld [vmem:[%s9647_s5 + $0x720] ss:$24 sps:$4 sm:$0xff]   ;;  %v8967_v31 = vld [vmem:[%s9647_s5 + $0x5ac] ss:$24 sps:$4 sm:$0xff]  }
 0x349   : > { %v9015_v5 = vld [vmem:[%s9647_s5 + $0x754] ss:$24 sps:$4 sm:$0xff]  }
 0x34b   : > { %6424 = vmatpush1.bf16.msra.mxu0 %v8926_v32  ;;  %6535 = vmatpush1.bf16.msra.mxu1 %v8929_v51  ;;  %v8965_v32 = vld [vmem:[%s9647_s5 + $0x5a8] ss:$24 sps:$4 sm:$0xff]  }
 0x34c   : > { %6425 = vmatprep.subr.bf16.mxu0 %v8934_v33  ;;  %6536 = vmatprep.subr.bf16.mxu1 %v8937_v34  ;;  %v9013_v51 = vld [vmem:[%s9647_s5 + $0x750] ss:$24 sps:$4 sm:$0xff]   ;;  %v8970_v33 = vld [vmem:[%s9647_s5 + $0x5dc] ss:$24 sps:$4 sm:$0xff]  }
 0x34d   : > { %v9021_v34 = vld [vmem:[%s9647_s5 + $0x784] ss:$24 sps:$4 sm:$0xff]  }
 0x34e   : > { %v4386_v48 = vpop.f32.mrb[8].mxu0 }
 0x34f   : > { %v4598_v49 = vmul.f32 %v4586_v39, %v4386_v48  ;;  %v4388_v50 = vpop.f32.mrb[9].mxu0  ;;  %6426 = vmatpush1.bf16.msra.mxu0 %v8932_v13  ;;  %6537 = vmatpush1.bf16.msra.mxu1 %v8935_v38  ;;  %v9027_v13 = vld [vmem:[%s9647_s5 + $0x7b4] ss:$24 sps:$4 sm:$0xff]   ;;  %v8974_v38 = vld [vmem:[%s9647_s5 + $0x608] ss:$24 sps:$4 sm:$0xff]  }
 0x350   : > { %v4599_v53 = vmul.f32 %v4587_v46, %v4388_v50  ;;  %v4390_v54 = vpop.f32.mrb[10].mxu0  ;;  %6427 = vmatprep.subr.bf16.mxu0 %v8940_v41  ;;  %6538 = vmatprep.subr.bf16.mxu1 %v8943_v44  ;;  %v8982_v39 = vld [vmem:[%s9647_s5 + $0x63c] ss:$24 sps:$4 sm:$0xff]   ;;  %v8980_v44 = vld [vmem:[%s9647_s5 + $0x638] ss:$24 sps:$4 sm:$0xff]  }
 0x351   : > { %v4604_v55 = vmul.f32 %v4592_v24, %v4390_v54  ;;  %v4392_v42 = vpop.f32.mrb[11].mxu0  ;;  %v9033_v41 = vld [vmem:[%s9647_s5 + $0x7e4] ss:$24 sps:$4 sm:$0xff]   ;;  %v9031_v46 = vld [vmem:[%s9647_s5 + $0x7e0] ss:$24 sps:$4 sm:$0xff]  }
 0x352   : > { %v4605_v58 = vmul.f32 %v4593_v52, %v4392_v42  ;;  %v8988_v48 = vld [vmem:[%s9647_s5 + $0x66c] ss:$24 sps:$4 sm:$0xff]   ;;  %v9037_v50 = vld [vmem:[%s9647_s5 + $0x810] ss:$24 sps:$4 sm:$0xff]   ;;  %v8994_v52 = vld [vmem:[%s9647_s5 + $0x69c] ss:$24 sps:$4 sm:$0xff]  }
 0x353   : > { %v10446_v61 = vpack.c.bf16 %v4604_v55, %v4598_v49  ;;  %6428 = vmatpush1.bf16.msra.mxu0 %v8938_v40  ;;  %6539 = vmatpush1.bf16.msra.mxu1 %v8941_v16  ;;  %v9039_v24 = vld [vmem:[%s9647_s5 + $0x814] ss:$24 sps:$4 sm:$0xff]   ;;  %v8986_v49 = vld [vmem:[%s9647_s5 + $0x668] ss:$24 sps:$4 sm:$0xff]   ;;  %v8992_v54 = vld [vmem:[%s9647_s5 + $0x698] ss:$24 sps:$4 sm:$0xff]  }
 0x354   : > { %v10448_v47 = vpack.c.bf16 %v4605_v58, %v4599_v53  ;;  %6540 = vmatprep.subr.bf16.mxu1 %v8946_v45  ;;  %6440 = vmatprep.subr.bf16.mxu0 %v8973_v43  ;;  %v9045_v53 = vld [vmem:[%s9647_s5 + $0x844] ss:$24 sps:$4 sm:$0xff]   ;;  %v9043_v40 = vld [vmem:[%s9647_s5 + $0x840] ss:$24 sps:$4 sm:$0xff]   ;;  %v9051_v55 = vld [vmem:[%s9647_s5 + $0x874] ss:$24 sps:$4 sm:$0xff]  }
 0x355   : > { %v9000_v16 = vld [vmem:[%s9647_s5 + $0x6cc] ss:$24 sps:$4 sm:$0xff]   ;;  %v8998_v42 = vld [vmem:[%s9647_s5 + $0x6c8] ss:$24 sps:$4 sm:$0xff]   ;;  %v9006_v43 = vld [vmem:[%s9647_s5 + $0x6fc] ss:$24 sps:$4 sm:$0xff]  }
 0x356   : > { %6429 = vmatprep.mubr.bf16.mxu0 %v10448_v47  ;;  %6558 = vmatprep.mubr.bf16.mxu1 %v10448_v47  ;;  %v9049_v45 = vld [vmem:[%s9647_s5 + $0x870] ss:$24 sps:$4 sm:$0xff]   ;;  %v9057_v58 = vld [vmem:[%s9647_s5 + $0x8a4] ss:$24 sps:$4 sm:$0xff]  }
 0x357   : > { %6430 = vmatmul.mubr.bf16.vlgmr.msra.gmra.mrb[12].mxu0 %v10446_v61  ;;  %6541 = vmatpush1.bf16.msra.mxu1 %v8944_v63  ;;  %v9004_v63 = vld [vmem:[%s9647_s5 + $0x6f8] ss:$24 sps:$4 sm:$0xff]  }
 0x358   : > { %6441 = vmatpush1.bf16.msra.mxu0 %v8971_v3  ;;  %6542 = vmatprep.subr.bf16.mxu1 %v8949_v4  ;;  %v9055_v3 = vld [vmem:[%s9647_s5 + $0x8a0] ss:$24 sps:$4 sm:$0xff]   ;;  %v9012_v4 = vld [vmem:[%s9647_s5 + $0x72c] ss:$24 sps:$4 sm:$0xff]  }
 0x359   : > { %6442 = vmatprep.subr.bf16.mxu0 %v8979_v6  ;;  %v9063_v6 = vld [vmem:[%s9647_s5 + $0x8d4] ss:$24 sps:$4 sm:$0xff]  }
 0x35b   : > { %6543 = vmatpush1.bf16.msra.mxu1 %v8947_v7  ;;  %v9010_v7 = vld [vmem:[%s9647_s5 + $0x728] ss:$24 sps:$4 sm:$0xff]  }
 0x35c   : > { %6443 = vmatpush1.bf16.msra.mxu0 %v8977_v8  ;;  %6544 = vmatprep.subr.bf16.mxu1 %v8952_v9  ;;  %v9061_v8 = vld [vmem:[%s9647_s5 + $0x8d0] ss:$24 sps:$4 sm:$0xff]   ;;  %v9018_v9 = vld [vmem:[%s9647_s5 + $0x75c] ss:$24 sps:$4 sm:$0xff]  }
 0x35d   : > { %6444 = vmatprep.subr.bf16.mxu0 %v8985_v10  ;;  %v9069_v10 = vld [vmem:[%s9647_s5 + $0x14] ss:$24 sps:$4 sm:$0xff]  }
 0x35f   : > { %6545 = vmatpush1.bf16.msra.mxu1 %v8950_v11  ;;  %v9016_v11 = vld [vmem:[%s9647_s5 + $0x758] ss:$24 sps:$4 sm:$0xff]  }
 0x360   : > { %6445 = vmatpush1.bf16.msra.mxu0 %v8983_v19  ;;  %6546 = vmatprep.subr.bf16.mxu1 %v8955_v12  ;;  %v9024_v19 = vld [vmem:[%s9647_s5 + $0x78c] ss:$24 sps:$4 sm:$0xff]   ;;  %v9022_v12 = vld [vmem:[%s9647_s5 + $0x788] ss:$24 sps:$4 sm:$0xff]  }
 0x361   : > { %6446 = vmatprep.subr.bf16.mxu0 %v8991_v14  ;;  %v9030_v14 = vld [vmem:[%s9647_s5 + $0x7bc] ss:$24 sps:$4 sm:$0xff]  }
 0x363   : > { %6547 = vmatpush1.bf16.msra.mxu1 %v8953_v15  ;;  %v9028_v15 = vld [vmem:[%s9647_s5 + $0x7b8] ss:$24 sps:$4 sm:$0xff]  }
 0x364   : > { %6447 = vmatpush1.bf16.msra.mxu0 %v8989_v21  ;;  %6548 = vmatprep.subr.bf16.mxu1 %v8958_v23  ;;  %v9036_v21 = vld [vmem:[%s9647_s5 + $0x7ec] ss:$24 sps:$4 sm:$0xff]   ;;  %v9034_v23 = vld [vmem:[%s9647_s5 + $0x7e8] ss:$24 sps:$4 sm:$0xff]  }
 0x365   : > { %6448 = vmatprep.subr.bf16.mxu0 %v8997_v20  ;;  %v9042_v20 = vld [vmem:[%s9647_s5 + $0x81c] ss:$24 sps:$4 sm:$0xff]  }
 0x367   : > { %6549 = vmatpush1.bf16.msra.mxu1 %v8956_v27  ;;  %v9040_v27 = vld [vmem:[%s9647_s5 + $0x818] ss:$24 sps:$4 sm:$0xff]  }
 0x368   : > { %6449 = vmatpush1.bf16.msra.mxu0 %v8995_v22  ;;  %6550 = vmatprep.subr.bf16.mxu1 %v8961_v25  ;;  %v9048_v22 = vld [vmem:[%s9647_s5 + $0x84c] ss:$24 sps:$4 sm:$0xff]   ;;  %v4528_v25 = vsub.f32 0.0, %v10260_v57 }
 0x369   : > { %6450 = vmatprep.subr.bf16.mxu0 %v9003_v26  ;;  %v4529_v26 = vsub.f32 0.0, %v10263_v59 }
 0x36b   : > { %6551 = vmatpush1.bf16.msra.mxu1 %v8959_v0  ;;  %v9046_v0 = vld [vmem:[%s9647_s5 + $0x848] ss:$24 sps:$4 sm:$0xff]  }
 0x36c   : > { %6451 = vmatpush1.bf16.msra.mxu0 %v9001_v1  ;;  %6552 = vmatprep.subr.bf16.mxu1 %v8964_v28  ;;  %v4534_v1 = vsub.f32 0.0, %v10265_v60  ;;  %v9054_v28 = vld [vmem:[%s9647_s5 + $0x87c] ss:$24 sps:$4 sm:$0xff]  }
 0x36d   : > { %6452 = vmatprep.subr.bf16.mxu0 %v9009_v2  ;;  %v4535_v2 = vsub.f32 0.0, %v10268_v62 }
 0x36f   : > { %6553 = vmatpush1.bf16.msra.mxu1 %v8962_v29  ;;  %v4544_v29 = vmul.f32 1.442695, %v4528_v25  ;;  %v9097_v25 = vld [vmem:[%s9647_s5 + $0x1f0] ss:$24 sps:$4 sm:$0xff]  }
 0x370   : > { %6453 = vmatpush1.bf16.msra.mxu0 %v9007_v30  ;;  %6554 = vmatprep.subr.bf16.mxu1 %v8967_v31  ;;  %v4546_v30 = vmul.f32 1.442695, %v4529_v26  ;;  %v9052_v31 = vld [vmem:[%s9647_s5 + $0x878] ss:$24 sps:$4 sm:$0xff]   ;;  %v9102_v26 = vld [vmem:[%s9647_s5 + $0x224] ss:$24 sps:$4 sm:$0xff]  }
 0x371   : > { %6454 = vmatprep.subr.bf16.mxu0 %v9015_v5  ;;  %v4556_v5 = vmul.f32 1.442695, %v4534_v1  ;;  %9243 = vpow2.f32 %v4544_v29  ;;  %v9105_v1 = vld [vmem:[%s9647_s5 + $0x254] ss:$24 sps:$4 sm:$0xff]   ;;  %v9106_v29 = vld [vmem:[%s9647_s5 + $0x280] ss:$24 sps:$4 sm:$0xff]  }
 0x372   : > { %9245 = vpow2.f32 %v4546_v30  ;;  %v9111_v30 = vld [vmem:[%s9647_s5 + $0x2b4] ss:$24 sps:$4 sm:$0xff]  }
 0x373   : > { %6555 = vmatpush1.bf16.msra.mxu1 %v8965_v32  ;;  %v9060_v32 = vld [vmem:[%s9647_s5 + $0x8ac] ss:$24 sps:$4 sm:$0xff]   ;;  %9247 = vpow2.f32 %v4556_v5 }
 0x374   : > { %6455 = vmatpush1.bf16.msra.mxu0 %v9013_v51  ;;  %6556 = vmatprep.subr.bf16.mxu1 %v8970_v33  ;;  %v4558_v51 = vmul.f32 1.442695, %v4535_v2  ;;  %v9058_v33 = vld [vmem:[%s9647_s5 + $0x8a8] ss:$24 sps:$4 sm:$0xff]   ;;  %v9108_v2 = vld [vmem:[%s9647_s5 + $0x284] ss:$24 sps:$4 sm:$0xff]  }
 0x375   : > { %6456 = vmatprep.subr.bf16.mxu0 %v9021_v34  ;;  %v9066_v34 = vld [vmem:[%s9647_s5 + $0x8dc] ss:$24 sps:$4 sm:$0xff]  }
 0x376   : > { %9249 = vpow2.f32 %v4558_v51  ;;  %v9114_v5 = vld [vmem:[%s9647_s5 + $0x2e4] ss:$24 sps:$4 sm:$0xff]   ;;  %v9117_v51 = vld [vmem:[%s9647_s5 + $0x314] ss:$24 sps:$4 sm:$0xff]  }
 0x377   : > { %6557 = vmatpush1.bf16.msra.mxu1 %v8968_v35  ;;  %v9064_v35 = vld [vmem:[%s9647_s5 + $0x8d8] ss:$24 sps:$4 sm:$0xff]  }
 0x378   : > { %6457 = vmatpush1.bf16.msra.mxu0 %v9019_v36  ;;  %6569 = vmatprep.subr.bf16.mxu1 %v8976_v37 }
 0x379   : > { %6458 = vmatprep.subr.bf16.mxu0 %v9027_v13 }
 0x37a   : > { %6559 = vmatmul.mubr.bf16.vlgmr.msra.gmra.mrb[16].mxu1 %v10446_v61 }
 0x37b   : > { %6570 = vmatpush1.bf16.msra.mxu1 %v8974_v38  ;;  %v9244_v36 = vpop.eup %9243 }
 0x37c   : > { %6459 = vmatpush1.bf16.msra.mxu0 %v9025_v56  ;;  %6571 = vmatprep.subr.bf16.mxu1 %v8982_v39  ;;  %v9246_v37 = vpop.eup %9245  ;;  %v4564_v56 = vadd.f32 1.0, %v9244_v36  ;;  %v9123_v36 = vld [vmem:[%s9647_s5 + $0x374] ss:$24 sps:$4 sm:$0xff]  }
 0x37d   : > { %6460 = vmatprep.subr.bf16.mxu0 %v9033_v41  ;;  %v9248_v13 = vpop.eup %9247  ;;  %v4565_v39 = vadd.f32 1.0, %v9246_v37  ;;  %v9121_v37 = vld [vmem:[%s9647_s5 + $0x370] ss:$24 sps:$4 sm:$0xff]  }
 0x37e   : > { %v4570_v41 = vadd.f32 1.0, %v9248_v13  ;;  %9251 = vrcp.f32 %v4564_v56  ;;  %v9126_v13 = vld [vmem:[%s9647_s5 + $0x3a4] ss:$24 sps:$4 sm:$0xff]   ;;  %v9127_v56 = vld [vmem:[%s9647_s5 + $0x3d0] ss:$24 sps:$4 sm:$0xff]  }
 0x37f   : > { %6572 = vmatpush1.bf16.msra.mxu1 %v8980_v44  ;;  %9253 = vrcp.f32 %v4565_v39  ;;  %v9130_v39 = vld [vmem:[%s9647_s5 + $0x400] ss:$24 sps:$4 sm:$0xff]  }
 0x380   : > { %6461 = vmatpush1.bf16.msra.mxu0 %v9031_v46  ;;  %6573 = vmatprep.subr.bf16.mxu1 %v8988_v48  ;;  %v9250_v38 = vpop.eup %9249  ;;  %9255 = vrcp.f32 %v4570_v41  ;;  %v9135_v41 = vld [vmem:[%s9647_s5 + $0x434] ss:$24 sps:$4 sm:$0xff]  }
 0x381   : > { %6462 = vmatprep.subr.bf16.mxu0 %v9039_v24  ;;  %v4571_v44 = vadd.f32 1.0, %v9250_v38  ;;  %v9124_v38 = vld [vmem:[%s9647_s5 + $0x3a0] ss:$24 sps:$4 sm:$0xff]  }
 0x383   : > { %6574 = vmatpush1.bf16.msra.mxu1 %v8986_v49  ;;  %9257 = vrcp.f32 %v4571_v44  ;;  %v9133_v44 = vld [vmem:[%s9647_s5 + $0x430] ss:$24 sps:$4 sm:$0xff]  }
 0x384   : > { %6463 = vmatpush1.bf16.msra.mxu0 %v9037_v50  ;;  %6575 = vmatprep.subr.bf16.mxu1 %v8994_v52 }
 0x385   : > { %6464 = vmatprep.subr.bf16.mxu0 %v9045_v53 }
 0x387   : > { %6576 = vmatpush1.bf16.msra.mxu1 %v8992_v54 }
 0x388   : > { %6465 = vmatpush1.bf16.msra.mxu0 %v9043_v40  ;;  %6577 = vmatprep.subr.bf16.mxu1 %v9000_v16  ;;  %v9252_v46 = vpop.eup %9251 }
 0x389   : > { %6466 = vmatprep.subr.bf16.mxu0 %v9051_v55  ;;  %v9254_v48 = vpop.eup %9253  ;;  %v4588_v50 = vmul.f32 %v9252_v46, %v10260_v57  ;;  %v9138_v46 = vld [vmem:[%s9647_s5 + $0x464] ss:$24 sps:$4 sm:$0xff]  }
 0x38a   : > { %v9256_v24 = vpop.eup %9255  ;;  %v4589_v52 = vmul.f32 %v9254_v48, %v10263_v59  ;;  %v9067_v59 = vld [vmem:[%s9647_s5 + $0x10] ss:$24 sps:$4 sm:$0xff]   ;;  %v9136_v48 = vld [vmem:[%s9647_s5 + $0x460] ss:$24 sps:$4 sm:$0xff]  }
 0x38b   : > { %6578 = vmatpush1.bf16.msra.mxu1 %v8998_v42  ;;  %v4594_v54 = vmul.f32 %v9256_v24, %v10265_v60  ;;  %v9072_v60 = vld [vmem:[%s9647_s5 + $0x44] ss:$24 sps:$4 sm:$0xff]   ;;  %v9141_v24 = vld [vmem:[%s9647_s5 + $0x494] ss:$24 sps:$4 sm:$0xff]  }
 0x38c   : > { %6467 = vmatpush1.bf16.msra.mxu0 %v9049_v45  ;;  %6579 = vmatprep.subr.bf16.mxu1 %v9006_v43 }
 0x38d   : > { %6468 = vmatprep.subr.bf16.mxu0 %v9057_v58  ;;  %v9258_v49 = vpop.eup %9257 }
 0x38e   : > { %v4595_v55 = vmul.f32 %v9258_v49, %v10268_v62  ;;  %v9070_v62 = vld [vmem:[%s9647_s5 + $0x40] ss:$24 sps:$4 sm:$0xff]   ;;  %v9139_v49 = vld [vmem:[%s9647_s5 + $0x490] ss:$24 sps:$4 sm:$0xff]  }
 0x38f   : > { %6580 = vmatpush1.bf16.msra.mxu1 %v9004_v63 }
 0x390   : > { %6469 = vmatpush1.bf16.msra.mxu0 %v9055_v3  ;;  %6581 = vmatprep.subr.bf16.mxu1 %v9012_v4  ;;  %v9075_v4 = vld [vmem:[%s9647_s5 + $0x74] ss:$24 sps:$4 sm:$0xff]  }
 0x391   : > { %6470 = vmatprep.subr.bf16.mxu0 %v9063_v6  ;;  %v9073_v6 = vld [vmem:[%s9647_s5 + $0x70] ss:$24 sps:$4 sm:$0xff]  }
 0x393   : > { %6582 = vmatpush1.bf16.msra.mxu1 %v9010_v7  ;;  %v9078_v7 = vld [vmem:[%s9647_s5 + $0xa4] ss:$24 sps:$4 sm:$0xff]  }
 0x394   : > { %6471 = vmatpush1.bf16.msra.mxu0 %v9061_v8  ;;  %6583 = vmatprep.subr.bf16.mxu1 %v9018_v9  ;;  %v9076_v8 = vld [vmem:[%s9647_s5 + $0xa0] ss:$24 sps:$4 sm:$0xff]   ;;  %v9081_v9 = vld [vmem:[%s9647_s5 + $0xd4] ss:$24 sps:$4 sm:$0xff]  }
 0x395   : > { %6612 = vmatprep.subr.bf16.mxu0 %v9069_v10  ;;  %v9079_v10 = vld [vmem:[%s9647_s5 + $0xd0] ss:$24 sps:$4 sm:$0xff]  }
 0x397   : > { %6584 = vmatpush1.bf16.msra.mxu1 %v9016_v11  ;;  %v9082_v11 = vld [vmem:[%s9647_s5 + $0x100] ss:$24 sps:$4 sm:$0xff]  }
 0x398   : > { %6585 = vmatprep.subr.bf16.mxu1 %v9024_v19  ;;  %v9087_v19 = vld [vmem:[%s9647_s5 + $0x134] ss:$24 sps:$4 sm:$0xff]  }
 0x39b   : > { %6586 = vmatpush1.bf16.msra.mxu1 %v9022_v12  ;;  %v9085_v12 = vld [vmem:[%s9647_s5 + $0x130] ss:$24 sps:$4 sm:$0xff]  }
 0x39c   : > { %6587 = vmatprep.subr.bf16.mxu1 %v9030_v14  ;;  %v9090_v14 = vld [vmem:[%s9647_s5 + $0x164] ss:$24 sps:$4 sm:$0xff]  }
 0x39f   : > { %6588 = vmatpush1.bf16.msra.mxu1 %v9028_v15  ;;  %v9088_v15 = vld [vmem:[%s9647_s5 + $0x160] ss:$24 sps:$4 sm:$0xff]  }
 0x3a0   : > { %6589 = vmatprep.subr.bf16.mxu1 %v9036_v21  ;;  %v9093_v21 = vld [vmem:[%s9647_s5 + $0x194] ss:$24 sps:$4 sm:$0xff]  }
 0x3a3   : > { %6590 = vmatpush1.bf16.msra.mxu1 %v9034_v23  ;;  %v9091_v23 = vld [vmem:[%s9647_s5 + $0x190] ss:$24 sps:$4 sm:$0xff]  }
 0x3a4   : > { %6591 = vmatprep.subr.bf16.mxu1 %v9042_v20  ;;  %v9096_v20 = vld [vmem:[%s9647_s5 + $0x1c4] ss:$24 sps:$4 sm:$0xff]  }
 0x3a7   : > { %6592 = vmatpush1.bf16.msra.mxu1 %v9040_v27  ;;  %v9094_v27 = vld [vmem:[%s9647_s5 + $0x1c0] ss:$24 sps:$4 sm:$0xff]  }
 0x3a8   : > { %6593 = vmatprep.subr.bf16.mxu1 %v9048_v22  ;;  %v9099_v22 = vld [vmem:[%s9647_s5 + $0x1f4] ss:$24 sps:$4 sm:$0xff]  }
 0x3ab   : > { %6594 = vmatpush1.bf16.msra.mxu1 %v9046_v0  ;;  %v9100_v0 = vld [vmem:[%s9647_s5 + $0x220] ss:$24 sps:$4 sm:$0xff]  }
 0x3ac   : > { %6595 = vmatprep.subr.bf16.mxu1 %v9054_v28  ;;  %v9103_v28 = vld [vmem:[%s9647_s5 + $0x250] ss:$24 sps:$4 sm:$0xff]  }
 0x3af   : > { %6596 = vmatpush1.bf16.msra.mxu1 %v9052_v31  ;;  %v9109_v31 = vld [vmem:[%s9647_s5 + $0x2b0] ss:$24 sps:$4 sm:$0xff]  }
 0x3b0   : > { %6597 = vmatprep.subr.bf16.mxu1 %v9060_v32  ;;  %v9112_v32 = vld [vmem:[%s9647_s5 + $0x2e0] ss:$24 sps:$4 sm:$0xff]  }
 0x3b3   : > { %6598 = vmatpush1.bf16.msra.mxu1 %v9058_v33  ;;  %v9115_v33 = vld [vmem:[%s9647_s5 + $0x310] ss:$24 sps:$4 sm:$0xff]  }
 0x3b4   : > { %6599 = vmatprep.subr.bf16.mxu1 %v9066_v34  ;;  %v9120_v34 = vld [vmem:[%s9647_s5 + $0x344] ss:$24 sps:$4 sm:$0xff]  }
 0x3b7   : > { %6600 = vmatpush1.bf16.msra.mxu1 %v9064_v35  ;;  %v9118_v35 = vld [vmem:[%s9647_s5 + $0x340] ss:$24 sps:$4 sm:$0xff]  }
 0x3cd   : > { %v4515_v53 = vpop.f32.mrb[12].mxu1 }
 0x3ce   : > { %v4600_v40 = vmul.f32 %v4588_v50, %v4515_v53  ;;  %v4517_v16 = vpop.f32.mrb[13].mxu1  ;;  %v9144_v50 = vld [vmem:[%s9647_s5 + $0x4c4] ss:$24 sps:$4 sm:$0xff]   ;;  %v9147_v53 = vld [vmem:[%s9647_s5 + $0x4f4] ss:$24 sps:$4 sm:$0xff]  }
 0x3cf   : > { %v4601_v42 = vmul.f32 %v4589_v52, %v4517_v16  ;;  %v4519_v45 = vpop.f32.mrb[14].mxu1  ;;  %v9142_v52 = vld [vmem:[%s9647_s5 + $0x4c0] ss:$24 sps:$4 sm:$0xff]  }
 0x3d0   : > { %v4606_v43 = vmul.f32 %v4594_v54, %v4519_v45  ;;  %v4521_v58 = vpop.f32.mrb[15].mxu1  ;;  %v9145_v54 = vld [vmem:[%s9647_s5 + $0x4f0] ss:$24 sps:$4 sm:$0xff]   ;;  %v9148_v16 = vld [vmem:[%s9647_s5 + $0x520] ss:$24 sps:$4 sm:$0xff]  }
 0x3d1   : > { %v4607_v63 = vmul.f32 %v4595_v55, %v4521_v58  ;;  %v9153_v55 = vld [vmem:[%s9647_s5 + $0x554] ss:$24 sps:$4 sm:$0xff]   ;;  %v9156_v45 = vld [vmem:[%s9647_s5 + $0x584] ss:$24 sps:$4 sm:$0xff]  }
 0x3d2   : > { %v10543_v3 = vpack.c.bf16 %v4606_v43, %v4600_v40  ;;  %v9150_v40 = vld [vmem:[%s9647_s5 + $0x524] ss:$24 sps:$4 sm:$0xff]   ;;  %v9154_v43 = vld [vmem:[%s9647_s5 + $0x580] ss:$24 sps:$4 sm:$0xff]   ;;  %v9159_v58 = vld [vmem:[%s9647_s5 + $0x5b4] ss:$24 sps:$4 sm:$0xff]  }
 0x3d3   : > { %v10545_v57 = vpack.c.bf16 %v4607_v63, %v4601_v42  ;;  %v9151_v42 = vld [vmem:[%s9647_s5 + $0x550] ss:$24 sps:$4 sm:$0xff]  }
 0x3d4   : > { %v9157_v63 = vld [vmem:[%s9647_s5 + $0x5b0] ss:$24 sps:$4 sm:$0xff]  }
 0x3d5   : > { %6472 = vmatprep.mubr.bf16.mxu0 %v10545_v57  ;;  %6601 = vmatprep.mubr.bf16.mxu1 %v10545_v57 }
 0x3d6   : > { %6473 = vmatmul.mubr.bf16.vlgmr.msra.gmra.mrb[12].mxu0 %v10543_v3  ;;  %6602 = vmatmul.mubr.bf16.vlgmr.msra.gmra.mrb[16].mxu1 %v10543_v3 }
 0x3d7   : > { %6613 = vmatpush1.bf16.msra.mxu0 %v9067_v59  ;;  %6644 = vmatprep.mubr.bf16.mxu0 %v10368_v18  ;;  %v9084_v18 = vld [vmem:[%s9647_s5 + $0x104] ss:$24 sps:$4 sm:$0xff]  }
 0x3d8   : > { %6614 = vmatprep.subr.bf16.mxu0 %v9072_v60  ;;  %v9162_v59 = vld [vmem:[%s9647_s5 + $0x5e4] ss:$24 sps:$4 sm:$0xff]   ;;  %v9160_v60 = vld [vmem:[%s9647_s5 + $0x5e0] ss:$24 sps:$4 sm:$0xff]  }
 0x3db   : > { %6615 = vmatpush1.bf16.msra.mxu0 %v9070_v62  ;;  %v9165_v62 = vld [vmem:[%s9647_s5 + $0x614] ss:$24 sps:$4 sm:$0xff]  }
 0x3dc   : > { %6616 = vmatprep.subr.bf16.mxu0 %v9075_v4  ;;  %v9163_v4 = vld [vmem:[%s9647_s5 + $0x610] ss:$24 sps:$4 sm:$0xff]  }
 0x3df   : > { %6617 = vmatpush1.bf16.msra.mxu0 %v9073_v6  ;;  %v9168_v6 = vld [vmem:[%s9647_s5 + $0x644] ss:$24 sps:$4 sm:$0xff]  }
 0x3e0   : > { %6618 = vmatprep.subr.bf16.mxu0 %v9078_v7  ;;  %v9166_v7 = vld [vmem:[%s9647_s5 + $0x640] ss:$24 sps:$4 sm:$0xff]  }
 0x3e3   : > { %6619 = vmatpush1.bf16.msra.mxu0 %v9076_v8  ;;  %v9171_v8 = vld [vmem:[%s9647_s5 + $0x674] ss:$24 sps:$4 sm:$0xff]  }
 0x3e4   : > { %6620 = vmatprep.subr.bf16.mxu0 %v9081_v9  ;;  %v9169_v9 = vld [vmem:[%s9647_s5 + $0x670] ss:$24 sps:$4 sm:$0xff]  }
 0x3e7   : > { %6621 = vmatpush1.bf16.msra.mxu0 %v9079_v10  ;;  %v9174_v10 = vld [vmem:[%s9647_s5 + $0x6a4] ss:$24 sps:$4 sm:$0xff]  }
 0x3e8   : > { %6622 = vmatprep.subr.bf16.mxu0 %v9084_v18  ;;  %v9172_v18 = vld [vmem:[%s9647_s5 + $0x6a0] ss:$24 sps:$4 sm:$0xff]  }
 0x3eb   : > { %6623 = vmatpush1.bf16.msra.mxu0 %v9082_v11  ;;  %v9175_v11 = vld [vmem:[%s9647_s5 + $0x6d0] ss:$24 sps:$4 sm:$0xff]  }
 0x3ec   : > { %6624 = vmatprep.subr.bf16.mxu0 %v9087_v19  ;;  %v9178_v19 = vld [vmem:[%s9647_s5 + $0x700] ss:$24 sps:$4 sm:$0xff]  }
 0x3ef   : > { %6625 = vmatpush1.bf16.msra.mxu0 %v9085_v12  ;;  %v9183_v12 = vld [vmem:[%s9647_s5 + $0x734] ss:$24 sps:$4 sm:$0xff]  }
 0x3f0   : > { %6626 = vmatprep.subr.bf16.mxu0 %v9090_v14  ;;  %v9181_v14 = vld [vmem:[%s9647_s5 + $0x730] ss:$24 sps:$4 sm:$0xff]  }
 0x3f3   : > { %6627 = vmatpush1.bf16.msra.mxu0 %v9088_v15  ;;  %v9186_v15 = vld [vmem:[%s9647_s5 + $0x764] ss:$24 sps:$4 sm:$0xff]  }
 0x3f4   : > { %6628 = vmatprep.subr.bf16.mxu0 %v9093_v21  ;;  %v9184_v21 = vld [vmem:[%s9647_s5 + $0x760] ss:$24 sps:$4 sm:$0xff]  }
 0x3f7   : > { %6629 = vmatpush1.bf16.msra.mxu0 %v9091_v23  ;;  %v9189_v23 = vld [vmem:[%s9647_s5 + $0x794] ss:$24 sps:$4 sm:$0xff]  }
 0x3f8   : > { %6630 = vmatprep.subr.bf16.mxu0 %v9096_v20  ;;  %v9187_v20 = vld [vmem:[%s9647_s5 + $0x790] ss:$24 sps:$4 sm:$0xff]  }
 0x3fb   : > { %6631 = vmatpush1.bf16.msra.mxu0 %v9094_v27  ;;  %v9192_v27 = vld [vmem:[%s9647_s5 + $0x7c4] ss:$24 sps:$4 sm:$0xff]  }
 0x3fc   : > { %6632 = vmatprep.subr.bf16.mxu0 %v9099_v22  ;;  %v9190_v22 = vld [vmem:[%s9647_s5 + $0x7c0] ss:$24 sps:$4 sm:$0xff]  }
 0x3ff   : > { %6633 = vmatpush1.bf16.msra.mxu0 %v9097_v25  ;;  %v9195_v25 = vld [vmem:[%s9647_s5 + $0x7f4] ss:$24 sps:$4 sm:$0xff]  }
 0x400   : > { %6634 = vmatprep.subr.bf16.mxu0 %v9102_v26  ;;  %v9193_v26 = vld [vmem:[%s9647_s5 + $0x7f0] ss:$24 sps:$4 sm:$0xff]  }
 0x403   : > { %6635 = vmatpush1.bf16.msra.mxu0 %v9100_v0  ;;  %v9198_v0 = vld [vmem:[%s9647_s5 + $0x824] ss:$24 sps:$4 sm:$0xff]  }
 0x404   : > { %6636 = vmatprep.subr.bf16.mxu0 %v9105_v1  ;;  %v9196_v1 = vld [vmem:[%s9647_s5 + $0x820] ss:$24 sps:$4 sm:$0xff]  }
 0x407   : > { %6637 = vmatpush1.bf16.msra.mxu0 %v9103_v28  ;;  %v9201_v28 = vld [vmem:[%s9647_s5 + $0x854] ss:$24 sps:$4 sm:$0xff]  }
 0x408   : > { %6638 = vmatprep.subr.bf16.mxu0 %v9108_v2  ;;  %v9199_v2 = vld [vmem:[%s9647_s5 + $0x850] ss:$24 sps:$4 sm:$0xff]  }
 0x40b   : > { %6639 = vmatpush1.bf16.msra.mxu0 %v9106_v29  ;;  %v9204_v29 = vld [vmem:[%s9647_s5 + $0x884] ss:$24 sps:$4 sm:$0xff]  }
 0x40c   : > { %6640 = vmatprep.subr.bf16.mxu0 %v9111_v30  ;;  %v9202_v30 = vld [vmem:[%s9647_s5 + $0x880] ss:$24 sps:$4 sm:$0xff]  }
 0x40f   : > { %6641 = vmatpush1.bf16.msra.mxu0 %v9109_v31  ;;  %v9207_v31 = vld [vmem:[%s9647_s5 + $0x8b4] ss:$24 sps:$4 sm:$0xff]  }
 0x410   : > { %6642 = vmatprep.subr.bf16.mxu0 %v9114_v5  ;;  %v9205_v5 = vld [vmem:[%s9647_s5 + $0x8b0] ss:$24 sps:$4 sm:$0xff]  }
 0x413   : > { %6643 = vmatpush1.bf16.msra.mxu0 %v9112_v32  ;;  %v9210_v32 = vld [vmem:[%s9647_s5 + $0x8e4] ss:$24 sps:$4 sm:$0xff]  }
 0x414   : > { %6655 = vmatprep.subr.bf16.mxu0 %v9117_v51  ;;  %v9208_v51 = vld [vmem:[%s9647_s5 + $0x8e0] ss:$24 sps:$4 sm:$0xff]  }
 0x416   : > { %6645 = vmatmul.mubr.bf16.vlgmr.msra.gmra.mrb[16].mxu0 %v10366_v17  ;;  %v9129_v17 = vld [vmem:[%s9647_s5 + $0x3d4] ss:$24 sps:$4 sm:$0xff]  }
 0x417   : > { %6656 = vmatpush1.bf16.msra.mxu0 %v9115_v33  ;;  %6687 = vmatprep.mubr.bf16.mxu0 %v10448_v47  ;;  %v9132_v47 = vld [vmem:[%s9647_s5 + $0x404] ss:$24 sps:$4 sm:$0xff]  }
 0x418   : > { %6657 = vmatprep.subr.bf16.mxu0 %v9120_v34  ;;  %v4608_v33 = vld [vmem:[#allocation8] sm:$0xff]  ;;  %v4610_v34 = vld [vmem:[#allocation8 + $0x10] sm:$0xff] }
 0x41b   : > { %6658 = vmatpush1.bf16.msra.mxu0 %v9118_v35  ;;  %v4609_v35 = vld [vmem:[#allocation8 + $0x8] sm:$0xff] }
 0x41c   : > { %6659 = vmatprep.subr.bf16.mxu0 %v9123_v36  ;;  %v4611_v36 = vld [vmem:[#allocation8 + $0x18] sm:$0xff] }
 0x41f   : > { %6660 = vmatpush1.bf16.msra.mxu0 %v9121_v37 }
 0x420   : > { %6661 = vmatprep.subr.bf16.mxu0 %v9126_v13 }
 0x423   : > { %6662 = vmatpush1.bf16.msra.mxu0 %v9124_v38  ;;  %v4614_v38 = vld [vmem:[#allocation8 + $0x30] sm:$0xff] }
 0x424   : > { %6663 = vmatprep.subr.bf16.mxu0 %v9129_v17  ;;  %v4616_v17 = vld [vmem:[#allocation8 + $0x40] sm:$0xff] }
 0x427   : > { %6664 = vmatpush1.bf16.msra.mxu0 %v9127_v56 }
 0x428   : > { %6665 = vmatprep.subr.bf16.mxu0 %v9132_v47 }
 0x42b   : > { %6666 = vmatpush1.bf16.msra.mxu0 %v9130_v39 }
 0x42c   : > { %6667 = vmatprep.subr.bf16.mxu0 %v9135_v41 }
 0x42f   : > { %6668 = vmatpush1.bf16.msra.mxu0 %v9133_v44  ;;  %v4615_v44 = vld [vmem:[#allocation8 + $0x38] sm:$0xff] }
 0x430   : > { %6669 = vmatprep.subr.bf16.mxu0 %v9138_v46  ;;  %v4617_v46 = vld [vmem:[#allocation8 + $0x48] sm:$0xff] }
 0x433   : > { %6670 = vmatpush1.bf16.msra.mxu0 %v9136_v48 }
 0x434   : > { %6671 = vmatprep.subr.bf16.mxu0 %v9141_v24 }
 0x437   : > { %6672 = vmatpush1.bf16.msra.mxu0 %v9139_v49 }
 0x438   : > { %6673 = vmatprep.subr.bf16.mxu0 %v9144_v50 }
 0x43b   : > { %6674 = vmatpush1.bf16.msra.mxu0 %v9142_v52 }
 0x43c   : > { %6675 = vmatprep.subr.bf16.mxu0 %v9147_v53 }
 0x43f   : > { %6676 = vmatpush1.bf16.msra.mxu0 %v9145_v54 }
 0x440   : > { %6677 = vmatprep.subr.bf16.mxu0 %v9150_v40 }
 0x443   : > { %6678 = vmatpush1.bf16.msra.mxu0 %v9148_v16 }
 0x444   : > { %6679 = vmatprep.subr.bf16.mxu0 %v9153_v55  ;;  %v4612_v55 = vld [vmem:[#allocation8 + $0x20] sm:$0xff] }
 0x447   : > { %6680 = vmatpush1.bf16.msra.mxu0 %v9151_v42  ;;  %v4613_v42 = vld [vmem:[#allocation8 + $0x28] sm:$0xff] }
 0x448   : > { %6681 = vmatprep.subr.bf16.mxu0 %v9156_v45 }
 0x44b   : > { %6682 = vmatpush1.bf16.msra.mxu0 %v9154_v43  ;;  %v4618_v43 = vld [vmem:[#allocation8 + $0x50] sm:$0xff] }
 0x44c   : > { %6683 = vmatprep.subr.bf16.mxu0 %v9159_v58 }
 0x44f   : > { %6684 = vmatpush1.bf16.msra.mxu0 %v9157_v63 }
 0x450   : > { %6685 = vmatprep.subr.bf16.mxu0 %v9162_v59  ;;  %v4619_v59 = vld [vmem:[#allocation8 + $0x58] sm:$0xff] }
 0x453   : > { %6686 = vmatpush1.bf16.msra.mxu0 %v9160_v60 }
 0x454   : > { %6698 = vmatprep.subr.bf16.mxu0 %v9165_v62 }
 0x456   : > { %6688 = vmatmul.mubr.bf16.vlgmr.msra.gmra.mrb[16].mxu0 %v10446_v61  ;;  %v9177_v61 = vld [vmem:[%s9647_s5 + $0x6d4] ss:$24 sps:$4 sm:$0xff]  }
 0x457   : > { %6699 = vmatpush1.bf16.msra.mxu0 %v9163_v4  ;;  %6730 = vmatprep.mubr.bf16.mxu0 %v10545_v57  ;;  %v9180_v57 = vld [vmem:[%s9647_s5 + $0x704] ss:$24 sps:$4 sm:$0xff]  }
 0x458   : > { %6700 = vmatprep.subr.bf16.mxu0 %v9168_v6 }
 0x45b   : > { %6701 = vmatpush1.bf16.msra.mxu0 %v9166_v7 }
 0x45c   : > { %6702 = vmatprep.subr.bf16.mxu0 %v9171_v8 }
 0x45f   : > { %6703 = vmatpush1.bf16.msra.mxu0 %v9169_v9 }
 0x460   : > { %6704 = vmatprep.subr.bf16.mxu0 %v9174_v10 }
 0x463   : > { %6705 = vmatpush1.bf16.msra.mxu0 %v9172_v18 }
 0x464   : > { %6706 = vmatprep.subr.bf16.mxu0 %v9177_v61 }
 0x467   : > { %6707 = vmatpush1.bf16.msra.mxu0 %v9175_v11 }
 0x468   : > { %6708 = vmatprep.subr.bf16.mxu0 %v9180_v57 }
 0x46b   : > { %6709 = vmatpush1.bf16.msra.mxu0 %v9178_v19 }
 0x46c   : > { %6710 = vmatprep.subr.bf16.mxu0 %v9183_v12 }
 0x46f   : > { %6711 = vmatpush1.bf16.msra.mxu0 %v9181_v14 }
 0x470   : > { %6712 = vmatprep.subr.bf16.mxu0 %v9186_v15 }
 0x473   : > { %6713 = vmatpush1.bf16.msra.mxu0 %v9184_v21 }
 0x474   : > { %6714 = vmatprep.subr.bf16.mxu0 %v9189_v23 }
 0x477   : > { %6715 = vmatpush1.bf16.msra.mxu0 %v9187_v20 }
 0x478   : > { %6716 = vmatprep.subr.bf16.mxu0 %v9192_v27 }
 0x47b   : > { %6717 = vmatpush1.bf16.msra.mxu0 %v9190_v22 }
 0x47c   : > { %6718 = vmatprep.subr.bf16.mxu0 %v9195_v25 }
 0x47f   : > { %6719 = vmatpush1.bf16.msra.mxu0 %v9193_v26 }
 0x480   : > { %6720 = vmatprep.subr.bf16.mxu0 %v9198_v0 }
 0x483   : > { %6721 = vmatpush1.bf16.msra.mxu0 %v9196_v1 }
 0x484   : > { %6722 = vmatprep.subr.bf16.mxu0 %v9201_v28 }
 0x487   : > { %6723 = vmatpush1.bf16.msra.mxu0 %v9199_v2 }
 0x488   : > { %6724 = vmatprep.subr.bf16.mxu0 %v9204_v29 }
 0x48b   : > { %6725 = vmatpush1.bf16.msra.mxu0 %v9202_v30 }
 0x48c   : > { %6726 = vmatprep.subr.bf16.mxu0 %v9207_v31 }
 0x48f   : > { %6727 = vmatpush1.bf16.msra.mxu0 %v9205_v5 }
 0x490   : > { %6728 = vmatprep.subr.bf16.mxu0 %v9210_v32 }
 0x493   : > { %6729 = vmatpush1.bf16.msra.mxu0 %v9208_v51 }
 0x496   : > { %6731 = vmatmul.mubr.bf16.vlgmr.msra.gmra.mrb[16].mxu0 %v10543_v3 }
 0x4a9   : > { %v6474_v37 = vpop.f32.mrb[12].mxu0  ;;  %v6603_v13 = vpop.f32.mrb[16].mxu1 }
 0x4aa   : > { %v6741_v56 = vadd.f32 %v6474_v37, %v4608_v33  ;;  %v6743_v47 = vadd.f32 %v6603_v13, %v4610_v34  ;;  %v6476_v39 = vpop.f32.mrb[13].mxu0  ;;  %v6605_v41 = vpop.f32.mrb[17].mxu1 }
 0x4ab   : > { %v6742_v48 = vadd.f32 %v6476_v39, %v4609_v35  ;;  %v6744_v24 = vadd.f32 %v6605_v41, %v4611_v36  ;;  %v6478_v49 = vpop.f32.mrb[14].mxu0  ;;  %v6607_v50 = vpop.f32.mrb[18].mxu1 }
 0x4ac   : > { %6753 = vst [vmem:[#allocation8] sm:$0xff] %v6741_v56  ;;  %6755 = vst [vmem:[#allocation8 + $0x10] sm:$0xff] %v6743_v47  ;;  %v6747_v3 = vadd.f32 %v6478_v49, %v4614_v38  ;;  %v6749_v52 = vadd.f32 %v6607_v50, %v4616_v17  ;;  %v6480_v53 = vpop.f32.mrb[15].mxu0  ;;  %v6609_v54 = vpop.f32.mrb[19].mxu1 }
 0x4ad   : > { %6754 = vst [vmem:[#allocation8 + $0x8] sm:$0xff] %v6742_v48  ;;  %6756 = vst [vmem:[#allocation8 + $0x18] sm:$0xff] %v6744_v24  ;;  %v6748_v40 = vadd.f32 %v6480_v53, %v4615_v44  ;;  %v6750_v16 = vadd.f32 %v6609_v54, %v4617_v46 }
 0x4ae   : > { %6759 = vst [vmem:[#allocation8 + $0x30] sm:$0xff] %v6747_v3  ;;  %6761 = vst [vmem:[#allocation8 + $0x40] sm:$0xff] %v6749_v52 }
 0x4af   : > { %6760 = vst [vmem:[#allocation8 + $0x38] sm:$0xff] %v6748_v40  ;;  %6762 = vst [vmem:[#allocation8 + $0x48] sm:$0xff] %v6750_v16 }
 0x569   : > { %v6732_v45 = vpop.f32.mrb[16].mxu0 }
 0x56a   : > { %v6745_v58 = vadd.f32 %v6732_v45, %v4612_v55  ;;  %v6734_v63 = vpop.f32.mrb[17].mxu0 }
 0x56b   : > { %v6746_v60 = vadd.f32 %v6734_v63, %v4613_v42  ;;  %v6736_v62 = vpop.f32.mrb[18].mxu0 }
 0x56c   : > { %6757 = vst [vmem:[#allocation8 + $0x20] sm:$0xff] %v6745_v58  ;;  %v6751_v4 = vadd.f32 %v6736_v62, %v4618_v43  ;;  %v6738_v6 = vpop.f32.mrb[19].mxu0 }
 0x56d   : > { %6758 = vst [vmem:[#allocation8 + $0x28] sm:$0xff] %v6746_v60  ;;  %v6752_v7 = vadd.f32 %v6738_v6, %v4619_v59 }
 0x56e   : > { %6763 = vst [vmem:[#allocation8 + $0x50] sm:$0xff] %v6751_v4 }
 0x56f   : > { %6764 = vst [vmem:[#allocation8 + $0x58] sm:$0xff] %v6752_v7 }
 0x570   : > { %9360 = shalt.err (!%p9357_p2)
}
 0x571   : > { %s9361_s29 = scalar_lea.hbm %s10696_s3, 1536 }
 0x572   : > { %p9362_p3 = scmp.ne.s32.totalorder %s10696_s3, %s9361_s29  ;;  %p9367_p12 = scmp.lt.u32.totalorder %s9361_s29, %s10696_s3 }
 0x574   : > { %p9363_p6 = pnand %p9362_p3, %p7855_p0 }
 0x576   : > { %p9364_p11 = pneg %p9363_p6 }
 0x578   : > { %p9369_p10 = pnand %p9367_p12, %p9364_p11 }
 0x57a   : > { %9372 = shalt.err (!%p9369_p10)
}
 0x57b   : > { %s9443_s12 = smov 768   ;;  %s9444_s27 = smov 48  }
 0x57c   : > { %7837 = dma.vmem_to_hbm [thread:$0]  (%p7855_p0), %s6776_s6, 1536, %s10696_s3, [#allocation4], %s9443_s12, %s9443_s12, %s9444_s27  }
 0x57d   : > { %9406 = dma.done.wait (%p7855_p0), [#allocation4], 1536  }
 0x57e   : > { %9408 = vsyncadd (%p7855_p0), [#allocation4], 4294965760 }
 0x57f PF: > { %s18_s17 = sadd.s32 1, %s9431_s17   ;;  %s10716_s12 = smov %s9415_s13 }
 0x580   : > { %p15_p9 = scmp.ge.s32.totalorder %s18_s17, 6   ;;  %s10717_s13 = smov %s9419_s14 }
 0x581   : > { %s10718_s14 = smov %s9508_s23  ;;  %s10719_s15 = smov %s9427_s16 }
 0x582   : > { %s10720_s16 = smov %s10722_s18  ;;  %17 = sbr.rel (!%p15_p9) target bundleno = 6 (0x6), region = 91 }
 0x589   :  { %6791 = vsyncpa [#allocation3], 1 }
 0x58a   :  { %6793 = vsyncpa [#allocation3 + $0x1], 1 }
 0x58b   :  { %6794 = vsyncpa [#allocation6], 1 }
 0x58c   :  { %6796 = vsyncpa [#allocation6 + $0x1], 1 }
 0x58d   :  { %6797 = vsyncpa [#allocation4], 1 }
 0x58e   :  { %6799 = vsyncpa [#allocation4 + $0x1], 1 }

</bundles_post_ra>
